<compile_context>
chip_gen: v5e
topology: v5e:2x2
jax: 0.10.0
libtpu: 0.0.40
codegen_flags: <defaults>
</compile_context>

<pallas_src>
import jax
import jax.numpy as jnp
import numpy as np
from jax.experimental import pallas as pl
from jax.experimental.pallas import tpu as pltpu


def _round_up(x, m):
    return (x + m - 1) // m * m


def _lstm_classifier_kernel(ids_ref, tbl_ref, whh_ref, wfc_ref, bfc_ref, out_ref):
    """Fused embedding-gather + LSTM + FC, single invocation.

    ids_ref : (B, T)    int32  raw token ids (time-major slicing done in-kernel)
    tbl_ref : (V, 4Hp)  f32    fused  emb @ W_ih_pad + (b_ih + b_hh)_pad
    whh_ref : (Hp, 4Hp) f32    lane-padded recurrent weights (gate bands at k*Hp)
    wfc_ref : (Hp, Cp)  f32    lane-padded classifier weights
    bfc_ref : (1, Cp)   f32
    out_ref : (B, Cp)   f32    logits of the LAST time step (lane-dense store)
    """
    B, T = ids_ref.shape
    V = tbl_ref.shape[0]
    Hp = whh_ref.shape[0]

    ids = ids_ref[...]                                               # (B, T)
    lane = jax.lax.broadcasted_iota(jnp.int32, (B, V), 1)            # (B, V)
    tbl = tbl_ref[...]

    # ---- Hoisted, recurrence-independent input projections for ALL steps. ----
    # One-hot gather fused with W_ih and bias via the precomputed table; these
    # matmuls have no dependence on h/c so they sit off the serial critical path.
    x_proj = []
    for t in range(T):
        onehot_t = (ids[:, t:t + 1] == lane).astype(jnp.float32)     # (B, V)
        x_proj.append(jnp.dot(onehot_t, tbl,
                              preferred_element_type=jnp.float32))   # (B, 4Hp)

    # ---- Recurrence: fully-unrolled static loop; loop-invariant W_hh. ----
    # TODO(synk): on v7x, pltpu.matmul_push_rhs/matmul_acc_lhs could pin W_hh in
    # MXU weight registers across the 8 steps and accumulate x_proj[t] in the MRB.
    whh = whh_ref[...]
    h = jnp.zeros((B, Hp), jnp.float32)
    c = jnp.zeros((B, Hp), jnp.float32)
    for t in range(T):
        gates = x_proj[t] + jnp.dot(h, whh,
                                    preferred_element_type=jnp.float32)  # (B, 4Hp)
        # Each gate band is a full lane-aligned (B, 128) tile: no lane rotates.
        i = jax.nn.sigmoid(gates[:, 0 * Hp:1 * Hp])
        f = jax.nn.sigmoid(gates[:, 1 * Hp:2 * Hp])
        g = jnp.tanh(gates[:, 2 * Hp:3 * Hp])
        o = jax.nn.sigmoid(gates[:, 3 * Hp:4 * Hp])
        c = f * c + i * g
        h = o * jnp.tanh(c)

    # ---- Final classifier on the last hidden state (lane-dense 128-wide store).
    logits = jnp.dot(h, wfc_ref[...],
                     preferred_element_type=jnp.float32) + bfc_ref[...]
    out_ref[...] = logits.astype(out_ref.dtype)


def prepare_kernel_params(params):
    """ONE-TIME (init) prep: fuse embedding+W_ih+bias and lane-pad everything.

    Keeps the per-call forward path free of padding / reshaping XLA ops.
    """
    emb = params["embedding"].astype(jnp.float32)     # (V, D)
    w_ih = params["w_ih"].astype(jnp.float32)         # (D, 4H)
    w_hh = params["w_hh"].astype(jnp.float32)         # (H, 4H)
    b = params["b"].astype(jnp.float32)               # (1, 4H) = b_ih + b_hh
    w_fc = params["w_fc"].astype(jnp.float32)         # (H, C)
    b_fc = params["b_fc"].astype(jnp.float32)         # (1, C)

    H = w_hh.shape[0]
    C = w_fc.shape[1]
    Hp = _round_up(H, 128)                            # lane-aligned gate bands
    Cp = _round_up(C, 128)                            # lane-dense output slab

    def pad_gate_cols(m):                             # (rows, 4H) -> (rows, 4Hp)
        out = jnp.zeros((m.shape[0], 4 * Hp), jnp.float32)
        for g in range(4):                            # PyTorch gate order i,f,g,o
            out = out.at[:, g * Hp:g * Hp + H].set(m[:, g * H:(g + 1) * H])
        return out

    w_ih_p = pad_gate_cols(w_ih)                                       # (D, 4Hp)
    b_p = pad_gate_cols(b)                                             # (1, 4Hp)
    w_hh_p = jnp.zeros((Hp, 4 * Hp), jnp.float32).at[:H, :].set(
        pad_gate_cols(w_hh))                                           # (Hp, 4Hp)

    # Fused gather+projection+bias table: onehot(id) @ tbl == emb[id]@W_ih + b.
    tbl = emb @ w_ih_p + b_p                                           # (V, 4Hp)

    w_fc_p = jnp.zeros((Hp, Cp), jnp.float32).at[:H, :C].set(w_fc)
    b_fc_p = jnp.zeros((1, Cp), jnp.float32).at[:, :C].set(b_fc)

    # TODO(synk): for v5e, a bf16 copy of tbl/w_hh/w_fc (f32 accumulation kept
    # via preferred_element_type) halves MXU passes at ~1e-3 accuracy cost.
    return {"tbl": tbl, "w_hh": w_hh_p, "w_fc": w_fc_p, "b_fc": b_fc_p,
            "num_classes": C}


def column_classifier_forward(x_tokens, kparams):
    """x_tokens: (B, T) int32 token ids in [0, 128). Returns (B, num_classes) f32."""
    B, T = x_tokens.shape
    Cp = kparams["w_fc"].shape[1]
    C = kparams["num_classes"]

    vmem = pltpu.MemorySpace.VMEM
    out = pl.pallas_call(
        _lstm_classifier_kernel,
        out_shape=jax.ShapeDtypeStruct((B, Cp), jnp.float32),
        in_specs=[pl.BlockSpec(memory_space=vmem)] * 5,
        out_specs=pl.BlockSpec(memory_space=vmem),
    )(x_tokens.astype(jnp.int32), kparams["tbl"], kparams["w_hh"],
      kparams["w_fc"], kparams["b_fc"])

    # TODO(synk): for the real many-column workload, add a batch grid axis with
    # dimension_semantics=("parallel",) (constant index_map on all weights so
    # they stay VMEM-resident) to fill MXU rows and use v7x's second TensorCore.
    return out[:, :C]


def _reference_forward(x_tokens, params):
    """Pure-JAX reference (PyTorch LSTM semantics, gate order i,f,g,o)."""
    emb = params["embedding"]
    x_emb = jnp.take(emb, x_tokens, axis=0)          # (B, T, D)
    B, T, D = x_emb.shape
    H = params["w_hh"].shape[0]

    def step(carry, x_t):
        h, c = carry
        gates = x_t @ params["w_ih"] + h @ params["w_hh"] + params["b"][0]
        i = jax.nn.sigmoid(gates[:, 0 * H:1 * H])
        f = jax.nn.sigmoid(gates[:, 1 * H:2 * H])
        g = jnp.tanh(gates[:, 2 * H:3 * H])
        o = jax.nn.sigmoid(gates[:, 3 * H:4 * H])
        c = f * c + i * g
        h = o * jnp.tanh(c)
        return (h, c), None

    h0 = jnp.zeros((B, H), jnp.float32)
    c0 = jnp.zeros((B, H), jnp.float32)
    (h_last, _), _ = jax.lax.scan(step, (h0, c0), jnp.transpose(x_emb, (1, 0, 2)))
    return h_last @ params["w_fc"] + params["b_fc"][0]


def make_params(key, input_size, hidden_size, num_classes, vocab=128):
    ks = jax.random.split(key, 7)
    scale = 0.1
    return {
        "embedding": scale * jax.random.normal(ks[0], (vocab, input_size), jnp.float32),
        # Stored pre-transposed relative to PyTorch's (4H, D)/(4H, H):
        "w_ih": scale * jax.random.normal(ks[1], (input_size, 4 * hidden_size), jnp.float32),
        "w_hh": scale * jax.random.normal(ks[2], (hidden_size, 4 * hidden_size), jnp.float32),
        # b = b_ih + b_hh folded into one (1, 4H) bias.
        "b": scale * jax.random.normal(ks[3], (1, 4 * hidden_size), jnp.float32),
        "w_fc": scale * jax.random.normal(ks[4], (hidden_size, num_classes), jnp.float32),
        "b_fc": scale * jax.random.normal(ks[5], (1, num_classes), jnp.float32),
    }


if __name__ == "__main__":
    # Small shapes consistent with the module's forward:
    #   x: (batch=2, seq=8) int32 token ids in [0, 128)
    #   input_size=16, hidden_size=32, num_classes=5
    B, T = 2, 8
    input_size, hidden_size, num_classes = 16, 32, 5

    key = jax.random.PRNGKey(0)
    k_tok, k_par = jax.random.split(key)
    x_tokens = jax.random.randint(k_tok, (B, T), 0, 128, dtype=jnp.int32)
    params = make_params(k_par, input_size, hidden_size, num_classes)

    # One-time param fusion/padding (init-time, not per forward call).
    kparams = prepare_kernel_params(params)
    kparams = jax.tree_util.tree_map(
        lambda x: jax.block_until_ready(x) if isinstance(x, jax.Array) else x, kparams)

    out = column_classifier_forward(x_tokens, kparams)
    out = jax.block_until_ready(out)

    ref = jax.block_until_ready(_reference_forward(x_tokens, params))
    assert out.shape == (B, num_classes)
    np.testing.assert_allclose(np.asarray(out), np.asarray(ref), rtol=1e-4, atol=1e-4)

    print("KERNEL_OK")
</pallas_src>

<mosaic_0001>
module attributes {stable_mosaic.version = 11 : i64} {
  func.func @_lstm_classifier_kernel(%arg0: memref<2x8xi32, #tpu.memory_space<vmem>>, %arg1: memref<128x512xf32, #tpu.memory_space<vmem>>, %arg2: memref<128x512xf32, #tpu.memory_space<vmem>>, %arg3: memref<128x128xf32, #tpu.memory_space<vmem>>, %arg4: memref<1x128xf32, #tpu.memory_space<vmem>>, %arg5: memref<2x128xf32, #tpu.memory_space<vmem>>) attributes {dimension_semantics = [], scalar_prefetch = 0 : i64, scratch_operands = 0 : i64, tpu.core_type = #tpu.core_type<tc>} {
    %c0 = arith.constant 0 : index
    %c0_0 = arith.constant 0 : index
    %0 = vector.load %arg0[%c0, %c0_0] : memref<2x8xi32, #tpu.memory_space<vmem>>, vector<2x8xi32>
    %1 = tpu.iota {dimensions = array<i32: 1>} : vector<2x128xi32>
    %c0_1 = arith.constant 0 : index
    %c0_2 = arith.constant 0 : index
    %2 = vector.load %arg1[%c0_1, %c0_2] : memref<128x512xf32, #tpu.memory_space<vmem>>, vector<128x512xf32>
    %3 = vector.extract_strided_slice %0 {offsets = [0, 0], sizes = [2, 1], strides = [1, 1]} : vector<2x8xi32> to vector<2x1xi32>
    %4 = vector.broadcast %3 : vector<2x1xi32> to vector<2x128xi32>
    %5 = arith.cmpi eq, %4, %1 : vector<2x128xi32>
    %6 = arith.extui %5 : vector<2x128xi1> to vector<2x128xi32>
    %7 = arith.sitofp %6 : vector<2x128xi32> to vector<2x128xf32>
    %cst = arith.constant dense<0.000000e+00> : vector<2x512xf32>
    %8 = tpu.matmul %7, %2, %cst {dimension_numbers = #tpu.dot_dimension_numbers<[1], [0], [0], [1], [0, 0, 1, 1], [], []>} : vector<2x128xf32>, vector<128x512xf32>, vector<2x512xf32> -> vector<2x512xf32>
    %9 = vector.extract_strided_slice %0 {offsets = [0, 1], sizes = [2, 1], strides = [1, 1]} : vector<2x8xi32> to vector<2x1xi32>
    %10 = vector.broadcast %9 : vector<2x1xi32> to vector<2x128xi32>
    %11 = arith.cmpi eq, %10, %1 : vector<2x128xi32>
    %12 = arith.extui %11 : vector<2x128xi1> to vector<2x128xi32>
    %13 = arith.sitofp %12 : vector<2x128xi32> to vector<2x128xf32>
    %cst_3 = arith.constant dense<0.000000e+00> : vector<2x512xf32>
    %14 = tpu.matmul %13, %2, %cst_3 {dimension_numbers = #tpu.dot_dimension_numbers<[1], [0], [0], [1], [0, 0, 1, 1], [], []>} : vector<2x128xf32>, vector<128x512xf32>, vector<2x512xf32> -> vector<2x512xf32>
    %15 = vector.extract_strided_slice %0 {offsets = [0, 2], sizes = [2, 1], strides = [1, 1]} : vector<2x8xi32> to vector<2x1xi32>
    %16 = vector.broadcast %15 : vector<2x1xi32> to vector<2x128xi32>
    %17 = arith.cmpi eq, %16, %1 : vector<2x128xi32>
    %18 = arith.extui %17 : vector<2x128xi1> to vector<2x128xi32>
    %19 = arith.sitofp %18 : vector<2x128xi32> to vector<2x128xf32>
    %cst_4 = arith.constant dense<0.000000e+00> : vector<2x512xf32>
    %20 = tpu.matmul %19, %2, %cst_4 {dimension_numbers = #tpu.dot_dimension_numbers<[1], [0], [0], [1], [0, 0, 1, 1], [], []>} : vector<2x128xf32>, vector<128x512xf32>, vector<2x512xf32> -> vector<2x512xf32>
    %21 = vector.extract_strided_slice %0 {offsets = [0, 3], sizes = [2, 1], strides = [1, 1]} : vector<2x8xi32> to vector<2x1xi32>
    %22 = vector.broadcast %21 : vector<2x1xi32> to vector<2x128xi32>
    %23 = arith.cmpi eq, %22, %1 : vector<2x128xi32>
    %24 = arith.extui %23 : vector<2x128xi1> to vector<2x128xi32>
    %25 = arith.sitofp %24 : vector<2x128xi32> to vector<2x128xf32>
    %cst_5 = arith.constant dense<0.000000e+00> : vector<2x512xf32>
    %26 = tpu.matmul %25, %2, %cst_5 {dimension_numbers = #tpu.dot_dimension_numbers<[1], [0], [0], [1], [0, 0, 1, 1], [], []>} : vector<2x128xf32>, vector<128x512xf32>, vector<2x512xf32> -> vector<2x512xf32>
    %27 = vector.extract_strided_slice %0 {offsets = [0, 4], sizes = [2, 1], strides = [1, 1]} : vector<2x8xi32> to vector<2x1xi32>
    %28 = vector.broadcast %27 : vector<2x1xi32> to vector<2x128xi32>
    %29 = arith.cmpi eq, %28, %1 : vector<2x128xi32>
    %30 = arith.extui %29 : vector<2x128xi1> to vector<2x128xi32>
    %31 = arith.sitofp %30 : vector<2x128xi32> to vector<2x128xf32>
    %cst_6 = arith.constant dense<0.000000e+00> : vector<2x512xf32>
    %32 = tpu.matmul %31, %2, %cst_6 {dimension_numbers = #tpu.dot_dimension_numbers<[1], [0], [0], [1], [0, 0, 1, 1], [], []>} : vector<2x128xf32>, vector<128x512xf32>, vector<2x512xf32> -> vector<2x512xf32>
    %33 = vector.extract_strided_slice %0 {offsets = [0, 5], sizes = [2, 1], strides = [1, 1]} : vector<2x8xi32> to vector<2x1xi32>
    %34 = vector.broadcast %33 : vector<2x1xi32> to vector<2x128xi32>
    %35 = arith.cmpi eq, %34, %1 : vector<2x128xi32>
    %36 = arith.extui %35 : vector<2x128xi1> to vector<2x128xi32>
    %37 = arith.sitofp %36 : vector<2x128xi32> to vector<2x128xf32>
    %cst_7 = arith.constant dense<0.000000e+00> : vector<2x512xf32>
    %38 = tpu.matmul %37, %2, %cst_7 {dimension_numbers = #tpu.dot_dimension_numbers<[1], [0], [0], [1], [0, 0, 1, 1], [], []>} : vector<2x128xf32>, vector<128x512xf32>, vector<2x512xf32> -> vector<2x512xf32>
    %39 = vector.extract_strided_slice %0 {offsets = [0, 6], sizes = [2, 1], strides = [1, 1]} : vector<2x8xi32> to vector<2x1xi32>
    %40 = vector.broadcast %39 : vector<2x1xi32> to vector<2x128xi32>
    %41 = arith.cmpi eq, %40, %1 : vector<2x128xi32>
    %42 = arith.extui %41 : vector<2x128xi1> to vector<2x128xi32>
    %43 = arith.sitofp %42 : vector<2x128xi32> to vector<2x128xf32>
    %cst_8 = arith.constant dense<0.000000e+00> : vector<2x512xf32>
    %44 = tpu.matmul %43, %2, %cst_8 {dimension_numbers = #tpu.dot_dimension_numbers<[1], [0], [0], [1], [0, 0, 1, 1], [], []>} : vector<2x128xf32>, vector<128x512xf32>, vector<2x512xf32> -> vector<2x512xf32>
    %45 = vector.extract_strided_slice %0 {offsets = [0, 7], sizes = [2, 1], strides = [1, 1]} : vector<2x8xi32> to vector<2x1xi32>
    %46 = vector.broadcast %45 : vector<2x1xi32> to vector<2x128xi32>
    %47 = arith.cmpi eq, %46, %1 : vector<2x128xi32>
    %48 = arith.extui %47 : vector<2x128xi1> to vector<2x128xi32>
    %49 = arith.sitofp %48 : vector<2x128xi32> to vector<2x128xf32>
    %cst_9 = arith.constant dense<0.000000e+00> : vector<2x512xf32>
    %50 = tpu.matmul %49, %2, %cst_9 {dimension_numbers = #tpu.dot_dimension_numbers<[1], [0], [0], [1], [0, 0, 1, 1], [], []>} : vector<2x128xf32>, vector<128x512xf32>, vector<2x512xf32> -> vector<2x512xf32>
    %c0_10 = arith.constant 0 : index
    %c0_11 = arith.constant 0 : index
    %51 = vector.load %arg2[%c0_10, %c0_11] : memref<128x512xf32, #tpu.memory_space<vmem>>, vector<128x512xf32>
    %cst_12 = arith.constant 0.000000e+00 : f32
    %52 = vector.broadcast %cst_12 : f32 to vector<2x128xf32>
    %cst_13 = arith.constant 0.000000e+00 : f32
    %53 = vector.broadcast %cst_13 : f32 to vector<2x128xf32>
    %cst_14 = arith.constant dense<0.000000e+00> : vector<2x512xf32>
    %54 = tpu.matmul %52, %51, %cst_14 {dimension_numbers = #tpu.dot_dimension_numbers<[1], [0], [0], [1], [0, 0, 1, 1], [], []>} : vector<2x128xf32>, vector<128x512xf32>, vector<2x512xf32> -> vector<2x512xf32>
    %55 = arith.addf %8, %54 : vector<2x512xf32>
    %56 = vector.extract_strided_slice %55 {offsets = [0, 0], sizes = [2, 128], strides = [1, 1]} : vector<2x512xf32> to vector<2x128xf32>
    %57 = arith.negf %56 : vector<2x128xf32>
    %58 = math.exp %57 : vector<2x128xf32>
    %cst_15 = arith.constant 1.000000e+00 : f32
    %59 = vector.broadcast %cst_15 : f32 to vector<2x128xf32>
    %60 = arith.addf %59, %58 : vector<2x128xf32>
    %61 = arith.divf %59, %60 : vector<2x128xf32>
    %62 = vector.extract_strided_slice %55 {offsets = [0, 128], sizes = [2, 128], strides = [1, 1]} : vector<2x512xf32> to vector<2x128xf32>
    %63 = arith.negf %62 : vector<2x128xf32>
    %64 = math.exp %63 : vector<2x128xf32>
    %cst_16 = arith.constant 1.000000e+00 : f32
    %65 = vector.broadcast %cst_16 : f32 to vector<2x128xf32>
    %66 = arith.addf %65, %64 : vector<2x128xf32>
    %67 = arith.divf %65, %66 : vector<2x128xf32>
    %68 = vector.extract_strided_slice %55 {offsets = [0, 256], sizes = [2, 128], strides = [1, 1]} : vector<2x512xf32> to vector<2x128xf32>
    %69 = math.tanh %68 : vector<2x128xf32>
    %70 = vector.extract_strided_slice %55 {offsets = [0, 384], sizes = [2, 128], strides = [1, 1]} : vector<2x512xf32> to vector<2x128xf32>
    %71 = arith.negf %70 : vector<2x128xf32>
    %72 = math.exp %71 : vector<2x128xf32>
    %cst_17 = arith.constant 1.000000e+00 : f32
    %73 = vector.broadcast %cst_17 : f32 to vector<2x128xf32>
    %74 = arith.addf %73, %72 : vector<2x128xf32>
    %75 = arith.divf %73, %74 : vector<2x128xf32>
    %76 = arith.mulf %67, %53 : vector<2x128xf32>
    %77 = arith.mulf %61, %69 : vector<2x128xf32>
    %78 = arith.addf %76, %77 : vector<2x128xf32>
    %79 = math.tanh %78 : vector<2x128xf32>
    %80 = arith.mulf %75, %79 : vector<2x128xf32>
    %cst_18 = arith.constant dense<0.000000e+00> : vector<2x512xf32>
    %81 = tpu.matmul %80, %51, %cst_18 {dimension_numbers = #tpu.dot_dimension_numbers<[1], [0], [0], [1], [0, 0, 1, 1], [], []>} : vector<2x128xf32>, vector<128x512xf32>, vector<2x512xf32> -> vector<2x512xf32>
    %82 = arith.addf %14, %81 : vector<2x512xf32>
    %83 = vector.extract_strided_slice %82 {offsets = [0, 0], sizes = [2, 128], strides = [1, 1]} : vector<2x512xf32> to vector<2x128xf32>
    %84 = arith.negf %83 : vector<2x128xf32>
    %85 = math.exp %84 : vector<2x128xf32>
    %cst_19 = arith.constant 1.000000e+00 : f32
    %86 = vector.broadcast %cst_19 : f32 to vector<2x128xf32>
    %87 = arith.addf %86, %85 : vector<2x128xf32>
    %88 = arith.divf %86, %87 : vector<2x128xf32>
    %89 = vector.extract_strided_slice %82 {offsets = [0, 128], sizes = [2, 128], strides = [1, 1]} : vector<2x512xf32> to vector<2x128xf32>
    %90 = arith.negf %89 : vector<2x128xf32>
    %91 = math.exp %90 : vector<2x128xf32>
    %cst_20 = arith.constant 1.000000e+00 : f32
    %92 = vector.broadcast %cst_20 : f32 to vector<2x128xf32>
    %93 = arith.addf %92, %91 : vector<2x128xf32>
    %94 = arith.divf %92, %93 : vector<2x128xf32>
    %95 = vector.extract_strided_slice %82 {offsets = [0, 256], sizes = [2, 128], strides = [1, 1]} : vector<2x512xf32> to vector<2x128xf32>
    %96 = math.tanh %95 : vector<2x128xf32>
    %97 = vector.extract_strided_slice %82 {offsets = [0, 384], sizes = [2, 128], strides = [1, 1]} : vector<2x512xf32> to vector<2x128xf32>
    %98 = arith.negf %97 : vector<2x128xf32>
    %99 = math.exp %98 : vector<2x128xf32>
    %cst_21 = arith.constant 1.000000e+00 : f32
    %100 = vector.broadcast %cst_21 : f32 to vector<2x128xf32>
    %101 = arith.addf %100, %99 : vector<2x128xf32>
    %102 = arith.divf %100, %101 : vector<2x128xf32>
    %103 = arith.mulf %94, %78 : vector<2x128xf32>
    %104 = arith.mulf %88, %96 : vector<2x128xf32>
    %105 = arith.addf %103, %104 : vector<2x128xf32>
    %106 = math.tanh %105 : vector<2x128xf32>
    %107 = arith.mulf %102, %106 : vector<2x128xf32>
    %cst_22 = arith.constant dense<0.000000e+00> : vector<2x512xf32>
    %108 = tpu.matmul %107, %51, %cst_22 {dimension_numbers = #tpu.dot_dimension_numbers<[1], [0], [0], [1], [0, 0, 1, 1], [], []>} : vector<2x128xf32>, vector<128x512xf32>, vector<2x512xf32> -> vector<2x512xf32>
    %109 = arith.addf %20, %108 : vector<2x512xf32>
    %110 = vector.extract_strided_slice %109 {offsets = [0, 0], sizes = [2, 128], strides = [1, 1]} : vector<2x512xf32> to vector<2x128xf32>
    %111 = arith.negf %110 : vector<2x128xf32>
    %112 = math.exp %111 : vector<2x128xf32>
    %cst_23 = arith.constant 1.000000e+00 : f32
    %113 = vector.broadcast %cst_23 : f32 to vector<2x128xf32>
    %114 = arith.addf %113, %112 : vector<2x128xf32>
    %115 = arith.divf %113, %114 : vector<2x128xf32>
    %116 = vector.extract_strided_slice %109 {offsets = [0, 128], sizes = [2, 128], strides = [1, 1]} : vector<2x512xf32> to vector<2x128xf32>
    %117 = arith.negf %116 : vector<2x128xf32>
    %118 = math.exp %117 : vector<2x128xf32>
    %cst_24 = arith.constant 1.000000e+00 : f32
    %119 = vector.broadcast %cst_24 : f32 to vector<2x128xf32>
    %120 = arith.addf %119, %118 : vector<2x128xf32>
    %121 = arith.divf %119, %120 : vector<2x128xf32>
    %122 = vector.extract_strided_slice %109 {offsets = [0, 256], sizes = [2, 128], strides = [1, 1]} : vector<2x512xf32> to vector<2x128xf32>
    %123 = math.tanh %122 : vector<2x128xf32>
    %124 = vector.extract_strided_slice %109 {offsets = [0, 384], sizes = [2, 128], strides = [1, 1]} : vector<2x512xf32> to vector<2x128xf32>
    %125 = arith.negf %124 : vector<2x128xf32>
    %126 = math.exp %125 : vector<2x128xf32>
    %cst_25 = arith.constant 1.000000e+00 : f32
    %127 = vector.broadcast %cst_25 : f32 to vector<2x128xf32>
    %128 = arith.addf %127, %126 : vector<2x128xf32>
    %129 = arith.divf %127, %128 : vector<2x128xf32>
    %130 = arith.mulf %121, %105 : vector<2x128xf32>
    %131 = arith.mulf %115, %123 : vector<2x128xf32>
    %132 = arith.addf %130, %131 : vector<2x128xf32>
    %133 = math.tanh %132 : vector<2x128xf32>
    %134 = arith.mulf %129, %133 : vector<2x128xf32>
    %cst_26 = arith.constant dense<0.000000e+00> : vector<2x512xf32>
    %135 = tpu.matmul %134, %51, %cst_26 {dimension_numbers = #tpu.dot_dimension_numbers<[1], [0], [0], [1], [0, 0, 1, 1], [], []>} : vector<2x128xf32>, vector<128x512xf32>, vector<2x512xf32> -> vector<2x512xf32>
    %136 = arith.addf %26, %135 : vector<2x512xf32>
    %137 = vector.extract_strided_slice %136 {offsets = [0, 0], sizes = [2, 128], strides = [1, 1]} : vector<2x512xf32> to vector<2x128xf32>
    %138 = arith.negf %137 : vector<2x128xf32>
    %139 = math.exp %138 : vector<2x128xf32>
    %cst_27 = arith.constant 1.000000e+00 : f32
    %140 = vector.broadcast %cst_27 : f32 to vector<2x128xf32>
    %141 = arith.addf %140, %139 : vector<2x128xf32>
    %142 = arith.divf %140, %141 : vector<2x128xf32>
    %143 = vector.extract_strided_slice %136 {offsets = [0, 128], sizes = [2, 128], strides = [1, 1]} : vector<2x512xf32> to vector<2x128xf32>
    %144 = arith.negf %143 : vector<2x128xf32>
    %145 = math.exp %144 : vector<2x128xf32>
    %cst_28 = arith.constant 1.000000e+00 : f32
    %146 = vector.broadcast %cst_28 : f32 to vector<2x128xf32>
    %147 = arith.addf %146, %145 : vector<2x128xf32>
    %148 = arith.divf %146, %147 : vector<2x128xf32>
    %149 = vector.extract_strided_slice %136 {offsets = [0, 256], sizes = [2, 128], strides = [1, 1]} : vector<2x512xf32> to vector<2x128xf32>
    %150 = math.tanh %149 : vector<2x128xf32>
    %151 = vector.extract_strided_slice %136 {offsets = [0, 384], sizes = [2, 128], strides = [1, 1]} : vector<2x512xf32> to vector<2x128xf32>
    %152 = arith.negf %151 : vector<2x128xf32>
    %153 = math.exp %152 : vector<2x128xf32>
    %cst_29 = arith.constant 1.000000e+00 : f32
    %154 = vector.broadcast %cst_29 : f32 to vector<2x128xf32>
    %155 = arith.addf %154, %153 : vector<2x128xf32>
    %156 = arith.divf %154, %155 : vector<2x128xf32>
    %157 = arith.mulf %148, %132 : vector<2x128xf32>
    %158 = arith.mulf %142, %150 : vector<2x128xf32>
    %159 = arith.addf %157, %158 : vector<2x128xf32>
    %160 = math.tanh %159 : vector<2x128xf32>
    %161 = arith.mulf %156, %160 : vector<2x128xf32>
    %cst_30 = arith.constant dense<0.000000e+00> : vector<2x512xf32>
    %162 = tpu.matmul %161, %51, %cst_30 {dimension_numbers = #tpu.dot_dimension_numbers<[1], [0], [0], [1], [0, 0, 1, 1], [], []>} : vector<2x128xf32>, vector<128x512xf32>, vector<2x512xf32> -> vector<2x512xf32>
    %163 = arith.addf %32, %162 : vector<2x512xf32>
    %164 = vector.extract_strided_slice %163 {offsets = [0, 0], sizes = [2, 128], strides = [1, 1]} : vector<2x512xf32> to vector<2x128xf32>
    %165 = arith.negf %164 : vector<2x128xf32>
    %166 = math.exp %165 : vector<2x128xf32>
    %cst_31 = arith.constant 1.000000e+00 : f32
    %167 = vector.broadcast %cst_31 : f32 to vector<2x128xf32>
    %168 = arith.addf %167, %166 : vector<2x128xf32>
    %169 = arith.divf %167, %168 : vector<2x128xf32>
    %170 = vector.extract_strided_slice %163 {offsets = [0, 128], sizes = [2, 128], strides = [1, 1]} : vector<2x512xf32> to vector<2x128xf32>
    %171 = arith.negf %170 : vector<2x128xf32>
    %172 = math.exp %171 : vector<2x128xf32>
    %cst_32 = arith.constant 1.000000e+00 : f32
    %173 = vector.broadcast %cst_32 : f32 to vector<2x128xf32>
    %174 = arith.addf %173, %172 : vector<2x128xf32>
    %175 = arith.divf %173, %174 : vector<2x128xf32>
    %176 = vector.extract_strided_slice %163 {offsets = [0, 256], sizes = [2, 128], strides = [1, 1]} : vector<2x512xf32> to vector<2x128xf32>
    %177 = math.tanh %176 : vector<2x128xf32>
    %178 = vector.extract_strided_slice %163 {offsets = [0, 384], sizes = [2, 128], strides = [1, 1]} : vector<2x512xf32> to vector<2x128xf32>
    %179 = arith.negf %178 : vector<2x128xf32>
    %180 = math.exp %179 : vector<2x128xf32>
    %cst_33 = arith.constant 1.000000e+00 : f32
    %181 = vector.broadcast %cst_33 : f32 to vector<2x128xf32>
    %182 = arith.addf %181, %180 : vector<2x128xf32>
    %183 = arith.divf %181, %182 : vector<2x128xf32>
    %184 = arith.mulf %175, %159 : vector<2x128xf32>
    %185 = arith.mulf %169, %177 : vector<2x128xf32>
    %186 = arith.addf %184, %185 : vector<2x128xf32>
    %187 = math.tanh %186 : vector<2x128xf32>
    %188 = arith.mulf %183, %187 : vector<2x128xf32>
    %cst_34 = arith.constant dense<0.000000e+00> : vector<2x512xf32>
    %189 = tpu.matmul %188, %51, %cst_34 {dimension_numbers = #tpu.dot_dimension_numbers<[1], [0], [0], [1], [0, 0, 1, 1], [], []>} : vector<2x128xf32>, vector<128x512xf32>, vector<2x512xf32> -> vector<2x512xf32>
    %190 = arith.addf %38, %189 : vector<2x512xf32>
    %191 = vector.extract_strided_slice %190 {offsets = [0, 0], sizes = [2, 128], strides = [1, 1]} : vector<2x512xf32> to vector<2x128xf32>
    %192 = arith.negf %191 : vector<2x128xf32>
    %193 = math.exp %192 : vector<2x128xf32>
    %cst_35 = arith.constant 1.000000e+00 : f32
    %194 = vector.broadcast %cst_35 : f32 to vector<2x128xf32>
    %195 = arith.addf %194, %193 : vector<2x128xf32>
    %196 = arith.divf %194, %195 : vector<2x128xf32>
    %197 = vector.extract_strided_slice %190 {offsets = [0, 128], sizes = [2, 128], strides = [1, 1]} : vector<2x512xf32> to vector<2x128xf32>
    %198 = arith.negf %197 : vector<2x128xf32>
    %199 = math.exp %198 : vector<2x128xf32>
    %cst_36 = arith.constant 1.000000e+00 : f32
    %200 = vector.broadcast %cst_36 : f32 to vector<2x128xf32>
    %201 = arith.addf %200, %199 : vector<2x128xf32>
    %202 = arith.divf %200, %201 : vector<2x128xf32>
    %203 = vector.extract_strided_slice %190 {offsets = [0, 256], sizes = [2, 128], strides = [1, 1]} : vector<2x512xf32> to vector<2x128xf32>
    %204 = math.tanh %203 : vector<2x128xf32>
    %205 = vector.extract_strided_slice %190 {offsets = [0, 384], sizes = [2, 128], strides = [1, 1]} : vector<2x512xf32> to vector<2x128xf32>
    %206 = arith.negf %205 : vector<2x128xf32>
    %207 = math.exp %206 : vector<2x128xf32>
    %cst_37 = arith.constant 1.000000e+00 : f32
    %208 = vector.broadcast %cst_37 : f32 to vector<2x128xf32>
    %209 = arith.addf %208, %207 : vector<2x128xf32>
    %210 = arith.divf %208, %209 : vector<2x128xf32>
    %211 = arith.mulf %202, %186 : vector<2x128xf32>
    %212 = arith.mulf %196, %204 : vector<2x128xf32>
    %213 = arith.addf %211, %212 : vector<2x128xf32>
    %214 = math.tanh %213 : vector<2x128xf32>
    %215 = arith.mulf %210, %214 : vector<2x128xf32>
    %cst_38 = arith.constant dense<0.000000e+00> : vector<2x512xf32>
    %216 = tpu.matmul %215, %51, %cst_38 {dimension_numbers = #tpu.dot_dimension_numbers<[1], [0], [0], [1], [0, 0, 1, 1], [], []>} : vector<2x128xf32>, vector<128x512xf32>, vector<2x512xf32> -> vector<2x512xf32>
    %217 = arith.addf %44, %216 : vector<2x512xf32>
    %218 = vector.extract_strided_slice %217 {offsets = [0, 0], sizes = [2, 128], strides = [1, 1]} : vector<2x512xf32> to vector<2x128xf32>
    %219 = arith.negf %218 : vector<2x128xf32>
    %220 = math.exp %219 : vector<2x128xf32>
    %cst_39 = arith.constant 1.000000e+00 : f32
    %221 = vector.broadcast %cst_39 : f32 to vector<2x128xf32>
    %222 = arith.addf %221, %220 : vector<2x128xf32>
    %223 = arith.divf %221, %222 : vector<2x128xf32>
    %224 = vector.extract_strided_slice %217 {offsets = [0, 128], sizes = [2, 128], strides = [1, 1]} : vector<2x512xf32> to vector<2x128xf32>
    %225 = arith.negf %224 : vector<2x128xf32>
    %226 = math.exp %225 : vector<2x128xf32>
    %cst_40 = arith.constant 1.000000e+00 : f32
    %227 = vector.broadcast %cst_40 : f32 to vector<2x128xf32>
    %228 = arith.addf %227, %226 : vector<2x128xf32>
    %229 = arith.divf %227, %228 : vector<2x128xf32>
    %230 = vector.extract_strided_slice %217 {offsets = [0, 256], sizes = [2, 128], strides = [1, 1]} : vector<2x512xf32> to vector<2x128xf32>
    %231 = math.tanh %230 : vector<2x128xf32>
    %232 = vector.extract_strided_slice %217 {offsets = [0, 384], sizes = [2, 128], strides = [1, 1]} : vector<2x512xf32> to vector<2x128xf32>
    %233 = arith.negf %232 : vector<2x128xf32>
    %234 = math.exp %233 : vector<2x128xf32>
    %cst_41 = arith.constant 1.000000e+00 : f32
    %235 = vector.broadcast %cst_41 : f32 to vector<2x128xf32>
    %236 = arith.addf %235, %234 : vector<2x128xf32>
    %237 = arith.divf %235, %236 : vector<2x128xf32>
    %238 = arith.mulf %229, %213 : vector<2x128xf32>
    %239 = arith.mulf %223, %231 : vector<2x128xf32>
    %240 = arith.addf %238, %239 : vector<2x128xf32>
    %241 = math.tanh %240 : vector<2x128xf32>
    %242 = arith.mulf %237, %241 : vector<2x128xf32>
    %cst_42 = arith.constant dense<0.000000e+00> : vector<2x512xf32>
    %243 = tpu.matmul %242, %51, %cst_42 {dimension_numbers = #tpu.dot_dimension_numbers<[1], [0], [0], [1], [0, 0, 1, 1], [], []>} : vector<2x128xf32>, vector<128x512xf32>, vector<2x512xf32> -> vector<2x512xf32>
    %244 = arith.addf %50, %243 : vector<2x512xf32>
    %245 = vector.extract_strided_slice %244 {offsets = [0, 0], sizes = [2, 128], strides = [1, 1]} : vector<2x512xf32> to vector<2x128xf32>
    %246 = arith.negf %245 : vector<2x128xf32>
    %247 = math.exp %246 : vector<2x128xf32>
    %cst_43 = arith.constant 1.000000e+00 : f32
    %248 = vector.broadcast %cst_43 : f32 to vector<2x128xf32>
    %249 = arith.addf %248, %247 : vector<2x128xf32>
    %250 = arith.divf %248, %249 : vector<2x128xf32>
    %251 = vector.extract_strided_slice %244 {offsets = [0, 128], sizes = [2, 128], strides = [1, 1]} : vector<2x512xf32> to vector<2x128xf32>
    %252 = arith.negf %251 : vector<2x128xf32>
    %253 = math.exp %252 : vector<2x128xf32>
    %cst_44 = arith.constant 1.000000e+00 : f32
    %254 = vector.broadcast %cst_44 : f32 to vector<2x128xf32>
    %255 = arith.addf %254, %253 : vector<2x128xf32>
    %256 = arith.divf %254, %255 : vector<2x128xf32>
    %257 = vector.extract_strided_slice %244 {offsets = [0, 256], sizes = [2, 128], strides = [1, 1]} : vector<2x512xf32> to vector<2x128xf32>
    %258 = math.tanh %257 : vector<2x128xf32>
    %259 = vector.extract_strided_slice %244 {offsets = [0, 384], sizes = [2, 128], strides = [1, 1]} : vector<2x512xf32> to vector<2x128xf32>
    %260 = arith.negf %259 : vector<2x128xf32>
    %261 = math.exp %260 : vector<2x128xf32>
    %cst_45 = arith.constant 1.000000e+00 : f32
    %262 = vector.broadcast %cst_45 : f32 to vector<2x128xf32>
    %263 = arith.addf %262, %261 : vector<2x128xf32>
    %264 = arith.divf %262, %263 : vector<2x128xf32>
    %265 = arith.mulf %256, %240 : vector<2x128xf32>
    %266 = arith.mulf %250, %258 : vector<2x128xf32>
    %267 = arith.addf %265, %266 : vector<2x128xf32>
    %268 = math.tanh %267 : vector<2x128xf32>
    %269 = arith.mulf %264, %268 : vector<2x128xf32>
    %c0_46 = arith.constant 0 : index
    %c0_47 = arith.constant 0 : index
    %270 = vector.load %arg3[%c0_46, %c0_47] : memref<128x128xf32, #tpu.memory_space<vmem>>, vector<128x128xf32>
    %cst_48 = arith.constant dense<0.000000e+00> : vector<2x128xf32>
    %271 = tpu.matmul %269, %270, %cst_48 {dimension_numbers = #tpu.dot_dimension_numbers<[1], [0], [0], [1], [0, 0, 1, 1], [], []>} : vector<2x128xf32>, vector<128x128xf32>, vector<2x128xf32> -> vector<2x128xf32>
    %c0_49 = arith.constant 0 : index
    %c0_50 = arith.constant 0 : index
    %272 = vector.load %arg4[%c0_49, %c0_50] : memref<1x128xf32, #tpu.memory_space<vmem>>, vector<1x128xf32>
    %273 = vector.broadcast %272 : vector<1x128xf32> to vector<2x128xf32>
    %274 = arith.addf %271, %273 : vector<2x128xf32>
    %c0_51 = arith.constant 0 : index
    %c0_52 = arith.constant 0 : index
    %275 = vector.load %arg5[%c0_51, %c0_52] : memref<2x128xf32, #tpu.memory_space<vmem>>, vector<2x128xf32>
    tpu.vector_store %arg5[%c0_51, %c0_52], %274 {strides = array<i32>} : memref<2x128xf32, #tpu.memory_space<vmem>>, vector<2x128xf32>,
    return
  }
}

</mosaic_0001>

<bundles_post_ra>
// kernel: tpu_custom_call.1
= control target key start
LH: loop header
LB: loop body
LE: loop exit
PB: predicated region body
PF: predicated region fallthrough
CT: control target
= control target key end

     0   :  { %10 = vsyncpa [#allocation3], 0  ;;  %s4671_s0 = inlined_call_operand.hbm [shape: s32[2,8], index: 0, kind: input, shape index: {}]   ;;  %s4672_s1 = inlined_call_operand.hbm [shape: f32[128,512], index: 1, kind: input, shape index: {}]   ;;  %s4673_s2 = inlined_call_operand.hbm [shape: f32[128,512], index: 2, kind: input, shape index: {}]   ;;  %s4674_s3 = inlined_call_operand.hbm [shape: f32[128,128], index: 3, kind: input, shape index: {}]   ;;  %s4675_s4 = inlined_call_operand.vmem [shape: f32[1,128], index: 4, kind: input, shape index: {}]   ;;  %s4676_s5 = inlined_call_operand.hbm [shape: f32[2,128], index: 5, kind: output, shape index: {}]  }
   0x1   :  { %11 = vsyncpa [#allocation6], 0 }
   0x2   :  { %12 = vsyncpa [#allocation9], 0  ;;  %s29_s20 = sshll.u32 %s4672_s1, 4  ;;  %s30_s20 = int_to_ptr.hbm [resolvable:$true] %s29_s20 }
   0x3   :  { %13 = vsyncpa [#allocation4], 0  ;;  %s2712_s21 = smov [#allocation5]   ;;  %s19_s25 = sshll.u32 %s4671_s0, 4  ;;  %s20_s25 = int_to_ptr.hbm [resolvable:$true] %s19_s25 }
   0x4   :  { %s31_s22 = sshll.u32 %s2712_s21, 4  ;;  %s2713_s26 = smov 512   ;;  %s32_s22 = int_to_ptr.vmem [resolvable:$true] %s31_s22 }
   0x5   :  { %s2714_s27 = smov 32   ;;  %s2715_s28 = smov [#allocation2]  }
   0x6   :  { %37 = dma.hbm_to_vmem [thread:$0]  %s30_s20, 8192, %s32_s22, [#allocation6], %s2713_s26, %s2713_s26, %s2714_s27  }
   0x7   :  { %s21_s29 = sshll.u32 %s2715_s28, 4  ;;  %s42_s7 = sshll.u32 %s4673_s2, 4  ;;  %s22_s29 = int_to_ptr.vmem [resolvable:$true] %s21_s29  ;;  %s43_s7 = int_to_ptr.hbm [resolvable:$true] %s42_s7 }
   0x8   :  { %24 = dma.hbm_to_vmem [thread:$0]  %s20_s25, 32, %s22_s29, [#allocation3]  }
   0x9   :  { %s55_s9 = sshll.u32 %s4674_s3, 4  ;;  %s2716_s10 = smov [#allocation7]   ;;  %s56_s9 = int_to_ptr.hbm [resolvable:$true] %s55_s9 }
   0xa   :  { %s44_s11 = sshll.u32 %s2716_s10, 4  ;;  %s2717_s0 = smov [#allocation8]   ;;  %s45_s11 = int_to_ptr.vmem [resolvable:$true] %s44_s11 }
   0xb   :  { %50 = dma.hbm_to_vmem [thread:$0]  %s43_s7, 8192, %s45_s11, [#allocation6], %s2713_s26, %s2713_s26, %s2714_s27  }
   0xc   :  { %s57_s12 = sshll.u32 %s2717_s0, 4  ;;  %s2718_s13 = smov 128   ;;  %s58_s12 = int_to_ptr.vmem [resolvable:$true] %s57_s12 }
   0xd   :  { %s2719_s14 = smov 8  }
   0xe   :  { %63 = dma.hbm_to_vmem [thread:$0]  %s56_s9, 2048, %s58_s12, [#allocation9], %s2718_s13, %s2718_s13, %s2719_s14  }
   0xf   :  { %2704 = dma.done.wait [#allocation3], 32  }
  0x10   :  { %2705 = vsyncadd [#allocation3], 4294967264 }
  0x11   :  { %2706 = dma.done.wait [#allocation6], 16384  }
  0x12   :  { %2707 = vsyncadd [#allocation6], 4294950912 }
  0x13   :  { %2708 = dma.done.wait [#allocation9], 2048  }
  0x14   :  { %2709 = vsyncadd [#allocation9], 4294965248  ;;  %v2720_v0 = vmov 0   ;;  %v2773_v1 = vld [vmem:[#allocation2] sm:$0x3]  ;;  %v2775_v2 = vld [vmem:[#allocation7 + $0x1e0] sm:$0xff] }
  0x15   :  { %2188 = vset.pattern.permute.xlu0 %v2720_v0  ;;  %v2777_v3 = vld [vmem:[#allocation7 + $0x1e8] sm:$0xff]  ;;  %261 = vmatpush.msra.mxu0 %v2775_v2  ;;  %v2781_v4 = vld [vmem:[#allocation7 + $0x1f0] sm:$0xff]  ;;  %v2783_v5 = vld [vmem:[#allocation7 + $0x1f8] sm:$0xff]  ;;  %s2730_s15 = smov [#allocation10]   ;;  %s2093_s19 = sshll.u32 %s4676_s5, 4  ;;  %s2094_s19 = int_to_ptr.hbm [resolvable:$true] %s2093_s19 }
  0x16   :  { %150 = vperm.xlu0 %2188, %v2773_v1   ;;  %v2785_v6 = vld [vmem:[#allocation7 + $0x1c0] sm:$0xff]  ;;  %281 = vmatpush.msra.mxu1 %v2777_v3  ;;  %v2789_v7 = vld [vmem:[#allocation7 + $0x1c8] sm:$0xff]  ;;  %v2791_v8 = vld [vmem:[#allocation7 + $0x1d0] sm:$0xff]  ;;  %s2091_s16 = sshll.u32 %s2730_s15, 4  ;;  %s2092_s16 = int_to_ptr.vmem [resolvable:$true] %s2091_s16 }
  0x17   :  { %301 = vmatpush.msra.mxu2 %v2781_v4  ;;  %v2793_v9 = vld [vmem:[#allocation7 + $0x1d8] sm:$0xff]  ;;  %321 = vmatpush.msra.mxu3 %v2783_v5  ;;  %v2797_v10 = vld [vmem:[#allocation7 + $0x1a0] sm:$0xff]  ;;  %v2799_v11 = vld [vmem:[#allocation7 + $0x1a8] sm:$0xff] }
  0x18   :  { %262 = vmatpush.msra.mxu0 %v2785_v6  ;;  %v2801_v12 = vld [vmem:[#allocation7 + $0x1b0] sm:$0xff]  ;;  %282 = vmatpush.msra.mxu1 %v2789_v7  ;;  %v2805_v13 = vld [vmem:[#allocation7 + $0x1b8] sm:$0xff]  ;;  %v2807_v14 = vld [vmem:[#allocation7 + $0x180] sm:$0xff] }
  0x19   :  { %302 = vmatpush.msra.mxu2 %v2791_v8  ;;  %322 = vmatpush.msra.mxu3 %v2793_v9  ;;  %v2811_v15 = vld [vmem:[#allocation7 + $0x188] sm:$0xff]  ;;  %v2813_v16 = vld [vmem:[#allocation7 + $0x190] sm:$0xff]  ;;  %v2817_v17 = vld [vmem:[#allocation7 + $0x198] sm:$0xff] }
  0x1a   :  { %263 = vmatpush.msra.mxu0 %v2797_v10  ;;  %283 = vmatpush.msra.mxu1 %v2799_v11  ;;  %v2819_v18 = vld [vmem:[#allocation7 + $0x160] sm:$0xff]  ;;  %v2823_v19 = vld [vmem:[#allocation7 + $0x168] sm:$0xff]  ;;  %v2825_v20 = vld [vmem:[#allocation7 + $0x170] sm:$0xff] }
  0x1b   :  { %303 = vmatpush.msra.mxu2 %v2801_v12  ;;  %323 = vmatpush.msra.mxu3 %v2805_v13  ;;  %v2829_v21 = vld [vmem:[#allocation7 + $0x178] sm:$0xff]  ;;  %v2831_v22 = vld [vmem:[#allocation7 + $0x140] sm:$0xff]  ;;  %v2835_v23 = vld [vmem:[#allocation7 + $0x148] sm:$0xff] }
  0x1c   :  { %264 = vmatpush.msra.mxu0 %v2807_v14  ;;  %284 = vmatpush.msra.mxu1 %v2811_v15  ;;  %v2837_v24 = vld [vmem:[#allocation7 + $0x150] sm:$0xff]  ;;  %v2841_v25 = vld [vmem:[#allocation7 + $0x158] sm:$0xff]  ;;  %v2843_v26 = vld [vmem:[#allocation7 + $0x120] sm:$0xff] }
  0x1d   :  { %304 = vmatpush.msra.mxu2 %v2813_v16  ;;  %324 = vmatpush.msra.mxu3 %v2817_v17  ;;  %v2847_v27 = vld [vmem:[#allocation7 + $0x128] sm:$0xff]  ;;  %v2849_v28 = vld [vmem:[#allocation7 + $0x130] sm:$0xff]  ;;  %v2853_v29 = vld [vmem:[#allocation7 + $0x138] sm:$0xff] }
  0x1e   :  { %265 = vmatpush.msra.mxu0 %v2819_v18  ;;  %285 = vmatpush.msra.mxu1 %v2823_v19  ;;  %v2855_v30 = vld [vmem:[#allocation7 + $0x100] sm:$0xff]  ;;  %v2859_v31 = vld [vmem:[#allocation7 + $0x108] sm:$0xff]  ;;  %v2861_v32 = vld [vmem:[#allocation7 + $0x110] sm:$0xff] }
  0x1f   :  { %305 = vmatpush.msra.mxu2 %v2825_v20  ;;  %325 = vmatpush.msra.mxu3 %v2829_v21  ;;  %v2865_v33 = vld [vmem:[#allocation7 + $0x118] sm:$0xff]  ;;  %v2867_v34 = vld [vmem:[#allocation7 + $0xe0] sm:$0xff]  ;;  %v2871_v35 = vld [vmem:[#allocation7 + $0xe8] sm:$0xff] }
  0x20   :  { %266 = vmatpush.msra.mxu0 %v2831_v22  ;;  %286 = vmatpush.msra.mxu1 %v2835_v23  ;;  %v2873_v36 = vld [vmem:[#allocation7 + $0xf0] sm:$0xff]  ;;  %v2877_v37 = vld [vmem:[#allocation7 + $0xf8] sm:$0xff]  ;;  %v2879_v38 = vld [vmem:[#allocation7 + $0xc0] sm:$0xff] }
  0x21   :  { %306 = vmatpush.msra.mxu2 %v2837_v24  ;;  %326 = vmatpush.msra.mxu3 %v2841_v25  ;;  %v2883_v39 = vld [vmem:[#allocation7 + $0xc8] sm:$0xff]  ;;  %v2885_v40 = vld [vmem:[#allocation7 + $0xd0] sm:$0xff]  ;;  %v2889_v41 = vld [vmem:[#allocation7 + $0xd8] sm:$0xff] }
  0x22   :  { %267 = vmatpush.msra.mxu0 %v2843_v26  ;;  %287 = vmatpush.msra.mxu1 %v2847_v27  ;;  %5113 = vst [vmem:[#allocation15_spill] sm:$0xff] %v2883_v39  ;;  %v2891_v42 = vld [vmem:[#allocation7 + $0xa0] sm:$0xff]  ;;  %v2895_v43 = vld [vmem:[#allocation7 + $0xa8] sm:$0xff]  ;;  %v2897_v44 = vld [vmem:[#allocation7 + $0xb0] sm:$0xff] }
  0x23   :  { %307 = vmatpush.msra.mxu2 %v2849_v28  ;;  %327 = vmatpush.msra.mxu3 %v2853_v29  ;;  %5114 = vst [vmem:[#allocation16_spill] sm:$0xff] %v2885_v40  ;;  %v2901_v45 = vld [vmem:[#allocation7 + $0xb8] sm:$0xff]  ;;  %v2903_v46 = vld [vmem:[#allocation7 + $0x80] sm:$0xff]  ;;  %v2907_v47 = vld [vmem:[#allocation7 + $0x88] sm:$0xff] }
  0x24   :  { %268 = vmatpush.msra.mxu0 %v2855_v30  ;;  %288 = vmatpush.msra.mxu1 %v2859_v31  ;;  %5115 = vst [vmem:[#allocation17_spill] sm:$0xff] %v2889_v41  ;;  %v2909_v48 = vld [vmem:[#allocation7 + $0x90] sm:$0xff]  ;;  %v2913_v49 = vld [vmem:[#allocation7 + $0x98] sm:$0xff]  ;;  %v2915_v50 = vld [vmem:[#allocation7 + $0x60] sm:$0xff] }
  0x25   :  { %308 = vmatpush.msra.mxu2 %v2861_v32  ;;  %328 = vmatpush.msra.mxu3 %v2865_v33  ;;  %5116 = vst [vmem:[#allocation18_spill] sm:$0xff] %v2891_v42  ;;  %v2919_v51 = vld [vmem:[#allocation7 + $0x68] sm:$0xff]  ;;  %v2921_v52 = vld [vmem:[#allocation7 + $0x70] sm:$0xff]  ;;  %v2925_v53 = vld [vmem:[#allocation7 + $0x78] sm:$0xff] }
  0x26   :  { %269 = vmatpush.msra.mxu0 %v2867_v34  ;;  %289 = vmatpush.msra.mxu1 %v2871_v35  ;;  %5117 = vst [vmem:[#allocation19_spill] sm:$0xff] %v2895_v43  ;;  %v2927_v54 = vld [vmem:[#allocation7 + $0x40] sm:$0xff]  ;;  %v2931_v55 = vld [vmem:[#allocation7 + $0x48] sm:$0xff]  ;;  %v2933_v56 = vld [vmem:[#allocation7 + $0x50] sm:$0xff] }
  0x27   :  { %309 = vmatpush.msra.mxu2 %v2873_v36  ;;  %329 = vmatpush.msra.mxu3 %v2877_v37  ;;  %5118 = vst [vmem:[#allocation20_spill] sm:$0xff] %v2897_v44  ;;  %v2937_v57 = vld [vmem:[#allocation7 + $0x58] sm:$0xff]  ;;  %v2939_v58 = vld [vmem:[#allocation7 + $0x20] sm:$0xff]  ;;  %v2943_v59 = vld [vmem:[#allocation7 + $0x28] sm:$0xff] }
  0x28   :  { %270 = vmatpush.msra.mxu0 %v2879_v38  ;;  %290 = vmatpush.msra.mxu1 %v2883_v39  ;;  %5119 = vst [vmem:[#allocation21_spill] sm:$0xff] %v2901_v45  ;;  %v2945_v60 = vld [vmem:[#allocation7 + $0x30] sm:$0xff]  ;;  %v2949_v61 = vld [vmem:[#allocation7 + $0x38] sm:$0xff]  ;;  %v2951_v62 = vld [vmem:[#allocation7] sm:$0xff] }
  0x29   :  { %310 = vmatpush.msra.mxu2 %v2885_v40  ;;  %5120 = vst [vmem:[#allocation22_spill] sm:$0xff] %v2903_v46  ;;  %330 = vmatpush.msra.mxu3 %v2889_v41  ;;  %v2955_v63 = vld [vmem:[#allocation7 + $0x8] sm:$0xff]  ;;  %v2957_v0 = vld [vmem:[#allocation7 + $0x10] sm:$0xff] }
  0x2a   :  { %271 = vmatpush.msra.mxu0 %v2891_v42  ;;  %5121 = vst [vmem:[#allocation23_spill] sm:$0xff] %v2907_v47  ;;  %291 = vmatpush.msra.mxu1 %v2895_v43 }
  0x2b   :  { %5122 = vst [vmem:[#allocation24_spill] sm:$0xff] %v2909_v48  ;;  %311 = vmatpush.msra.mxu2 %v2897_v44  ;;  %331 = vmatpush.msra.mxu3 %v2901_v45 }
  0x2c   :  { %5123 = vst [vmem:[#allocation25_spill] sm:$0xff] %v2913_v49  ;;  %272 = vmatpush.msra.mxu0 %v2903_v46  ;;  %292 = vmatpush.msra.mxu1 %v2907_v47 }
  0x2d   :  { %5124 = vst [vmem:[#allocation26_spill] sm:$0xff] %v2915_v50  ;;  %312 = vmatpush.msra.mxu2 %v2909_v48  ;;  %332 = vmatpush.msra.mxu3 %v2913_v49 }
  0x2e   :  { %5125 = vst [vmem:[#allocation27_spill] sm:$0xff] %v2919_v51  ;;  %273 = vmatpush.msra.mxu0 %v2915_v50  ;;  %293 = vmatpush.msra.mxu1 %v2919_v51 }
  0x2f   :  { %5126 = vst [vmem:[#allocation28_spill] sm:$0xff] %v2921_v52  ;;  %313 = vmatpush.msra.mxu2 %v2921_v52  ;;  %333 = vmatpush.msra.mxu3 %v2925_v53 }
  0x30   :  { %5127 = vst [vmem:[#allocation29_spill] sm:$0xff] %v2925_v53  ;;  %274 = vmatpush.msra.mxu0 %v2927_v54  ;;  %294 = vmatpush.msra.mxu1 %v2931_v55 }
  0x31   :  { %5128 = vst [vmem:[#allocation30_spill] sm:$0xff] %v2927_v54  ;;  %314 = vmatpush.msra.mxu2 %v2933_v56  ;;  %334 = vmatpush.msra.mxu3 %v2937_v57  ;;  %v2961_v54 = vld [vmem:[#allocation7 + $0x18] sm:$0xff] }
  0x32   :  { %5129 = vst [vmem:[#allocation31_spill] sm:$0xff] %v2931_v55  ;;  %275 = vmatpush.msra.mxu0 %v2939_v58  ;;  %295 = vmatpush.msra.mxu1 %v2943_v59  ;;  %v2963_v55 = vld [vmem:[#allocation5 + $0x1e0] sm:$0xff] }
  0x33   :  { %5130 = vst [vmem:[#allocation32_spill] sm:$0xff] %v2933_v56  ;;  %315 = vmatpush.msra.mxu2 %v2945_v60  ;;  %335 = vmatpush.msra.mxu3 %v2949_v61  ;;  %v2967_v56 = vld [vmem:[#allocation5 + $0x1e8] sm:$0xff] }
  0x34   :  { %5131 = vst [vmem:[#allocation33_spill] sm:$0xff] %v2937_v57  ;;  %276 = vmatpush.msra.mxu0 %v2951_v62  ;;  %v2969_v57 = vld [vmem:[#allocation5 + $0x1f0] sm:$0xff]  ;;  %296 = vmatpush.msra.mxu1 %v2955_v63 }
  0x35   :  { %5132 = vst [vmem:[#allocation34_spill] sm:$0xff] %v2939_v58  ;;  %316 = vmatpush.msra.mxu2 %v2957_v0  ;;  %v2973_v58 = vld [vmem:[#allocation5 + $0x1f8] sm:$0xff]  ;;  %336 = vmatpush.msra.mxu3 %v2961_v54 }
  0x36   :  { %5133 = vst [vmem:[#allocation35_spill] sm:$0xff] %v2943_v59  ;;  %v2975_v59 = vld [vmem:[#allocation5 + $0x1c0] sm:$0xff]  ;;  %341 = vmatpush.msrb.mxu0 %v2963_v55  ;;  %361 = vmatpush.msrb.mxu1 %v2967_v56 }
  0x37   :  { %5134 = vst [vmem:[#allocation36_spill] sm:$0xff] %v2945_v60  ;;  %v2979_v60 = vld [vmem:[#allocation5 + $0x1c8] sm:$0xff]  ;;  %381 = vmatpush.msrb.mxu2 %v2969_v57  ;;  %401 = vmatpush.msrb.mxu3 %v2973_v58 }
  0x38   :  { %5135 = vst [vmem:[#allocation37_spill] sm:$0xff] %v2949_v61  ;;  %v2981_v61 = vld [vmem:[#allocation5 + $0x1d0] sm:$0xff]  ;;  %342 = vmatpush.msrb.mxu0 %v2975_v59  ;;  %362 = vmatpush.msrb.mxu1 %v2979_v60 }
  0x39   :  { %5136 = vst [vmem:[#allocation38_spill] sm:$0xff] %v2951_v62  ;;  %v2985_v62 = vld [vmem:[#allocation5 + $0x1d8] sm:$0xff]  ;;  %382 = vmatpush.msrb.mxu2 %v2981_v61 }
  0x3a   :  { %5137 = vst [vmem:[#allocation39_spill] sm:$0xff] %v2955_v63  ;;  %v2987_v63 = vld [vmem:[#allocation5 + $0x1a0] sm:$0xff]  ;;  %402 = vmatpush.msrb.mxu3 %v2985_v62 }
  0x3b   :  { %5138 = vst [vmem:[#allocation40_spill] sm:$0xff] %v2957_v0  ;;  %v2991_v0 = vld [vmem:[#allocation5 + $0x1a8] sm:$0xff]  ;;  %343 = vmatpush.msrb.mxu0 %v2987_v63 }
  0x3c   :  { %5139 = vst [vmem:[#allocation41_spill] sm:$0xff] %v2961_v54  ;;  %v2993_v54 = vld [vmem:[#allocation5 + $0x1b0] sm:$0xff]  ;;  %363 = vmatpush.msrb.mxu1 %v2991_v0 }
  0x3d   :  { %5140 = vst [vmem:[#allocation42_spill] sm:$0xff] %v2963_v55  ;;  %v2997_v55 = vld [vmem:[#allocation5 + $0x1b8] sm:$0xff]  ;;  %383 = vmatpush.msrb.mxu2 %v2993_v54 }
  0x3e   :  { %5141 = vst [vmem:[#allocation43_spill] sm:$0xff] %v2967_v56  ;;  %v2999_v56 = vld [vmem:[#allocation5 + $0x180] sm:$0xff]  ;;  %403 = vmatpush.msrb.mxu3 %v2997_v55 }
  0x3f   :  { %5142 = vst [vmem:[#allocation44_spill] sm:$0xff] %v2969_v57  ;;  %v3003_v57 = vld [vmem:[#allocation5 + $0x188] sm:$0xff]  ;;  %344 = vmatpush.msrb.mxu0 %v2999_v56 }
  0x40   :  { %5143 = vst [vmem:[#allocation45_spill] sm:$0xff] %v2973_v58  ;;  %v3005_v58 = vld [vmem:[#allocation5 + $0x190] sm:$0xff]  ;;  %364 = vmatpush.msrb.mxu1 %v3003_v57 }
  0x41   :  { %5144 = vst [vmem:[#allocation46_spill] sm:$0xff] %v2975_v59  ;;  %v3009_v59 = vld [vmem:[#allocation5 + $0x198] sm:$0xff]  ;;  %384 = vmatpush.msrb.mxu2 %v3005_v58 }
  0x42   :  { %5145 = vst [vmem:[#allocation47_spill] sm:$0xff] %v2979_v60  ;;  %v3011_v60 = vld [vmem:[#allocation5 + $0x160] sm:$0xff]  ;;  %404 = vmatpush.msrb.mxu3 %v3009_v59 }
  0x43   :  { %5146 = vst [vmem:[#allocation48_spill] sm:$0xff] %v2981_v61  ;;  %v3015_v61 = vld [vmem:[#allocation5 + $0x168] sm:$0xff]  ;;  %345 = vmatpush.msrb.mxu0 %v3011_v60 }
  0x44   :  { %5147 = vst [vmem:[#allocation49_spill] sm:$0xff] %v2985_v62  ;;  %v3017_v62 = vld [vmem:[#allocation5 + $0x170] sm:$0xff]  ;;  %365 = vmatpush.msrb.mxu1 %v3015_v61 }
  0x45   :  { %5148 = vst [vmem:[#allocation50_spill] sm:$0xff] %v2987_v63  ;;  %v3021_v63 = vld [vmem:[#allocation5 + $0x178] sm:$0xff]  ;;  %385 = vmatpush.msrb.mxu2 %v3017_v62 }
  0x46   :  { %5149 = vst [vmem:[#allocation51_spill] sm:$0xff] %v2991_v0  ;;  %v3023_v0 = vld [vmem:[#allocation5 + $0x140] sm:$0xff]  ;;  %405 = vmatpush.msrb.mxu3 %v3021_v63 }
  0x47   :  { %5150 = vst [vmem:[#allocation52_spill] sm:$0xff] %v2993_v54  ;;  %v3027_v54 = vld [vmem:[#allocation5 + $0x148] sm:$0xff]  ;;  %346 = vmatpush.msrb.mxu0 %v3023_v0 }
  0x48   :  { %5151 = vst [vmem:[#allocation53_spill] sm:$0xff] %v2997_v55  ;;  %v3029_v55 = vld [vmem:[#allocation5 + $0x150] sm:$0xff]  ;;  %366 = vmatpush.msrb.mxu1 %v3027_v54 }
  0x49   :  { %5152 = vst [vmem:[#allocation54_spill] sm:$0xff] %v2999_v56  ;;  %v3033_v56 = vld [vmem:[#allocation5 + $0x158] sm:$0xff]  ;;  %386 = vmatpush.msrb.mxu2 %v3029_v55 }
  0x4a   :  { %5153 = vst [vmem:[#allocation55_spill] sm:$0xff] %v3003_v57  ;;  %v3035_v57 = vld [vmem:[#allocation5 + $0x120] sm:$0xff]  ;;  %406 = vmatpush.msrb.mxu3 %v3033_v56 }
  0x4b   :  { %5154 = vst [vmem:[#allocation56_spill] sm:$0xff] %v3005_v58  ;;  %v3039_v58 = vld [vmem:[#allocation5 + $0x128] sm:$0xff]  ;;  %347 = vmatpush.msrb.mxu0 %v3035_v57 }
  0x4c   :  { %5155 = vst [vmem:[#allocation57_spill] sm:$0xff] %v3009_v59  ;;  %v3041_v59 = vld [vmem:[#allocation5 + $0x130] sm:$0xff]  ;;  %367 = vmatpush.msrb.mxu1 %v3039_v58 }
  0x4d   :  { %5156 = vst [vmem:[#allocation58_spill] sm:$0xff] %v3011_v60  ;;  %v3045_v60 = vld [vmem:[#allocation5 + $0x138] sm:$0xff]  ;;  %387 = vmatpush.msrb.mxu2 %v3041_v59 }
  0x4e   :  { %5157 = vst [vmem:[#allocation59_spill] sm:$0xff] %v3015_v61  ;;  %v3047_v61 = vld [vmem:[#allocation5 + $0x100] sm:$0xff]  ;;  %407 = vmatpush.msrb.mxu3 %v3045_v60 }
  0x4f   :  { %5158 = vst [vmem:[#allocation60_spill] sm:$0xff] %v3017_v62  ;;  %v3051_v62 = vld [vmem:[#allocation5 + $0x108] sm:$0xff]  ;;  %348 = vmatpush.msrb.mxu0 %v3047_v61 }
  0x50   :  { %5159 = vst [vmem:[#allocation61_spill] sm:$0xff] %v3021_v63  ;;  %v3053_v63 = vld [vmem:[#allocation5 + $0x110] sm:$0xff]  ;;  %368 = vmatpush.msrb.mxu1 %v3051_v62 }
  0x51   :  { %5160 = vst [vmem:[#allocation62_spill] sm:$0xff] %v3023_v0  ;;  %v3057_v0 = vld [vmem:[#allocation5 + $0x118] sm:$0xff]  ;;  %388 = vmatpush.msrb.mxu2 %v3053_v63 }
  0x52   :  { %5161 = vst [vmem:[#allocation63_spill] sm:$0xff] %v3027_v54  ;;  %v3059_v54 = vld [vmem:[#allocation5 + $0xe0] sm:$0xff]  ;;  %408 = vmatpush.msrb.mxu3 %v3057_v0 }
  0x53   :  { %5162 = vst [vmem:[#allocation64_spill] sm:$0xff] %v3029_v55  ;;  %v3063_v55 = vld [vmem:[#allocation5 + $0xe8] sm:$0xff]  ;;  %349 = vmatpush.msrb.mxu0 %v3059_v54 }
  0x54   :  { %5163 = vst [vmem:[#allocation65_spill] sm:$0xff] %v3033_v56  ;;  %v3065_v56 = vld [vmem:[#allocation5 + $0xf0] sm:$0xff]  ;;  %369 = vmatpush.msrb.mxu1 %v3063_v55 }
  0x55   :  { %5164 = vst [vmem:[#allocation66_spill] sm:$0xff] %v3035_v57  ;;  %v3069_v57 = vld [vmem:[#allocation5 + $0xf8] sm:$0xff]  ;;  %389 = vmatpush.msrb.mxu2 %v3065_v56 }
  0x56   :  { %5165 = vst [vmem:[#allocation67_spill] sm:$0xff] %v3039_v58  ;;  %v3071_v58 = vld [vmem:[#allocation5 + $0xc0] sm:$0xff]  ;;  %409 = vmatpush.msrb.mxu3 %v3069_v57 }
  0x57   :  { %5166 = vst [vmem:[#allocation68_spill] sm:$0xff] %v3041_v59  ;;  %v3075_v59 = vld [vmem:[#allocation5 + $0xc8] sm:$0xff]  ;;  %350 = vmatpush.msrb.mxu0 %v3071_v58 }
  0x58   :  { %5167 = vst [vmem:[#allocation69_spill] sm:$0xff] %v3045_v60  ;;  %v3077_v60 = vld [vmem:[#allocation5 + $0xd0] sm:$0xff]  ;;  %370 = vmatpush.msrb.mxu1 %v3075_v59 }
  0x59   :  { %5168 = vst [vmem:[#allocation70_spill] sm:$0xff] %v3047_v61  ;;  %v3081_v61 = vld [vmem:[#allocation5 + $0xd8] sm:$0xff]  ;;  %390 = vmatpush.msrb.mxu2 %v3077_v60 }
  0x5a   :  { %5169 = vst [vmem:[#allocation71_spill] sm:$0xff] %v3051_v62  ;;  %v3083_v62 = vld [vmem:[#allocation5 + $0xa0] sm:$0xff]  ;;  %410 = vmatpush.msrb.mxu3 %v3081_v61 }
  0x5b   :  { %5170 = vst [vmem:[#allocation72_spill] sm:$0xff] %v3053_v63  ;;  %v3087_v63 = vld [vmem:[#allocation5 + $0xa8] sm:$0xff]  ;;  %351 = vmatpush.msrb.mxu0 %v3083_v62 }
  0x5c   :  { %5171 = vst [vmem:[#allocation73_spill] sm:$0xff] %v3057_v0  ;;  %v3089_v0 = vld [vmem:[#allocation5 + $0xb0] sm:$0xff]  ;;  %371 = vmatpush.msrb.mxu1 %v3087_v63 }
  0x5d   :  { %5172 = vst [vmem:[#allocation74_spill] sm:$0xff] %v3059_v54  ;;  %v3093_v54 = vld [vmem:[#allocation5 + $0xb8] sm:$0xff]  ;;  %391 = vmatpush.msrb.mxu2 %v3089_v0 }
  0x5e   :  { %5173 = vst [vmem:[#allocation75_spill] sm:$0xff] %v3063_v55  ;;  %v3095_v55 = vld [vmem:[#allocation5 + $0x80] sm:$0xff]  ;;  %411 = vmatpush.msrb.mxu3 %v3093_v54 }
  0x5f   :  { %5174 = vst [vmem:[#allocation76_spill] sm:$0xff] %v3065_v56  ;;  %v3099_v56 = vld [vmem:[#allocation5 + $0x88] sm:$0xff]  ;;  %352 = vmatpush.msrb.mxu0 %v3095_v55 }
  0x60   :  { %5175 = vst [vmem:[#allocation77_spill] sm:$0xff] %v3069_v57  ;;  %v3101_v57 = vld [vmem:[#allocation5 + $0x90] sm:$0xff]  ;;  %372 = vmatpush.msrb.mxu1 %v3099_v56 }
  0x61   :  { %5176 = vst [vmem:[#allocation78_spill] sm:$0xff] %v3071_v58  ;;  %v3105_v58 = vld [vmem:[#allocation5 + $0x98] sm:$0xff]  ;;  %392 = vmatpush.msrb.mxu2 %v3101_v57 }
  0x62   :  { %5177 = vst [vmem:[#allocation79_spill] sm:$0xff] %v3075_v59  ;;  %412 = vmatpush.msrb.mxu3 %v3105_v58  ;;  %v3135_v59 = vld [vmem:[#allocation5 + $0x28] sm:$0xff] }
  0x63   :  { %5178 = vst [vmem:[#allocation80_spill] sm:$0xff] %v3077_v60  ;;  %v3114_v60 = vld [vmem:[#allocation5 + $0x68] sm:$0xff] }
  0x64   :  { %5179 = vst [vmem:[#allocation81_spill] sm:$0xff] %v3081_v61  ;;  %v3111_v61 = vld [vmem:[#allocation5 + $0x60] sm:$0xff]  ;;  %373 = vmatpush.msrb.mxu1 %v3114_v60 }
  0x65   :  { %5180 = vst [vmem:[#allocation82_spill] sm:$0xff] %v3083_v62  ;;  %v2721_v62 = vmov 0.0   ;;  %353 = vmatpush.msrb.mxu0 %v3111_v61 }
  0x66   :  { %5181 = vst [vmem:[#allocation83_spill] sm:$0xff] %v3087_v63  ;;  %277 = vmatmul.f32.vlgmr.msra.gmra.mxu0 %v2721_v62  ;;  %v3116_v63 = vld [vmem:[#allocation5 + $0x70] sm:$0xff]  ;;  %297 = vmatmul.f32.vlgmr.msra.gmra.mxu1 %v2721_v62 }
  0x67   :  { %5182 = vst [vmem:[#allocation84_spill] sm:$0xff] %v3089_v0  ;;  %317 = vmatmul.f32.vlgmr.msra.gmra.mxu2 %v2721_v62  ;;  %v3118_v0 = vld [vmem:[#allocation5 + $0x78] sm:$0xff]  ;;  %337 = vmatmul.f32.vlgmr.msra.gmra.mxu3 %v2721_v62  ;;  %v3137_v62 = vld [vmem:[#allocation5 + $0x30] sm:$0xff] }
  0x68   :  { %5183 = vst [vmem:[#allocation85_spill] sm:$0xff] %v3093_v54  ;;  %v3120_v54 = vld [vmem:[#allocation5 + $0x40] sm:$0xff]  ;;  %393 = vmatpush.msrb.mxu2 %v3116_v63  ;;  %413 = vmatpush.msrb.mxu3 %v3118_v0 }
  0x69   :  { %5184 = vst [vmem:[#allocation86_spill] sm:$0xff] %v3095_v55  ;;  %v3131_v55 = vld [vmem:[#allocation5 + $0x20] sm:$0xff]  ;;  %354 = vmatpush.msrb.mxu0 %v3120_v54 }
  0x6a   :  { %5185 = vst [vmem:[#allocation87_spill] sm:$0xff] %v3099_v56  ;;  %v3125_v56 = vld [vmem:[#allocation5 + $0x50] sm:$0xff] }
  0x6b   :  { %5186 = vst [vmem:[#allocation88_spill] sm:$0xff] %v3101_v57  ;;  %v3123_v57 = vld [vmem:[#allocation5 + $0x48] sm:$0xff]  ;;  %394 = vmatpush.msrb.mxu2 %v3125_v56  ;;  %355 = vmatpush.msrb.mxu0 %v3131_v55 }
  0x6c   :  { %5187 = vst [vmem:[#allocation89_spill] sm:$0xff] %v3105_v58  ;;  %v3129_v58 = vld [vmem:[#allocation5 + $0x58] sm:$0xff]  ;;  %374 = vmatpush.msrb.mxu1 %v3123_v57 }
  0x6d   :  { %5188 = vst [vmem:[#allocation90_spill] sm:$0xff] %v3111_v61  ;;  %v3141_v61 = vld [vmem:[#allocation5 + $0x38] sm:$0xff]  ;;  %414 = vmatpush.msrb.mxu3 %v3129_v58  ;;  %395 = vmatpush.msrb.mxu2 %v3137_v62 }
  0x6e   :  { %5189 = vst [vmem:[#allocation91_spill] sm:$0xff] %v3114_v60  ;;  %375 = vmatpush.msrb.mxu1 %v3135_v59 }
  0x6f   :  { %5190 = vst [vmem:[#allocation92_spill] sm:$0xff] %v3116_v63  ;;  %415 = vmatpush.msrb.mxu3 %v3141_v61  ;;  %v3152_v63 = vld [vmem:[#allocation5 + $0x10] sm:$0xff] }
  0x70   :  { %5191 = vst [vmem:[#allocation93_spill] sm:$0xff] %v3118_v0  ;;  %v3150_v0 = vld [vmem:[#allocation5 + $0x8] sm:$0xff]  ;;  %396 = vmatpush.msrb.mxu2 %v3152_v63 }
  0x71   :  { %5192 = vst [vmem:[#allocation94_spill] sm:$0xff] %v3120_v54  ;;  %v3148_v54 = vld [vmem:[#allocation5] sm:$0xff]  ;;  %376 = vmatpush.msrb.mxu1 %v3150_v0 }
  0x72   :  { %5193 = vst [vmem:[#allocation95_spill] sm:$0xff] %v3123_v57  ;;  %356 = vmatpush.msrb.mxu0 %v3148_v54  ;;  %524 = vmatpush.msra.mxu2 %v2781_v4 }
  0x73   :  { %5194 = vst [vmem:[#allocation96_spill] sm:$0xff] %v3125_v56  ;;  %v3156_v56 = vld [vmem:[#allocation5 + $0x18] sm:$0xff]  ;;  %504 = vmatpush.msra.mxu1 %v2777_v3 }
  0x74   :  { %5195 = vst [vmem:[#allocation97_spill] sm:$0xff] %v3129_v58  ;;  %416 = vmatpush.msrb.mxu3 %v3156_v56  ;;  %484 = vmatpush.msra.mxu0 %v2775_v2 }
  0x75   :  { %5196 = vst [vmem:[#allocation98_spill] sm:$0xff] %v3131_v55  ;;  %505 = vmatpush.msra.mxu1 %v2789_v7  ;;  %525 = vmatpush.msra.mxu2 %v2791_v8 }
  0x76   :  { %5197 = vst [vmem:[#allocation99_spill] sm:$0xff] %v3135_v59  ;;  %544 = vmatpush.msra.mxu3 %v2783_v5  ;;  %485 = vmatpush.msra.mxu0 %v2785_v6 }
  0x77   :  { %5198 = vst [vmem:[#allocation100_spill] sm:$0xff] %v3137_v62  ;;  %506 = vmatpush.msra.mxu1 %v2799_v11  ;;  %526 = vmatpush.msra.mxu2 %v2801_v12 }
  0x78   :  { %5199 = vst [vmem:[#allocation101_spill] sm:$0xff] %v3141_v61  ;;  %v2722_v61 = vmov 1   ;;  %545 = vmatpush.msra.mxu3 %v2793_v9  ;;  %486 = vmatpush.msra.mxu0 %v2797_v10 }
  0x79   :  { %5200 = vst [vmem:[#allocation102_spill] sm:$0xff] %v3148_v54  ;;  %2189 = vset.pattern.permute.xlu0 %v2722_v61  ;;  %507 = vmatpush.msra.mxu1 %v2811_v15  ;;  %v83_v61 = vlaneseq }
  0x7a   :  { %5201 = vst [vmem:[#allocation103_spill] sm:$0xff] %v3150_v0  ;;  %156 = vperm.xlu0 %2189, %v2773_v1   ;;  %546 = vmatpush.msra.mxu3 %v2805_v13 }
  0x7b   :  { %5202 = vst [vmem:[#allocation104_spill] sm:$0xff] %v3152_v63  ;;  %487 = vmatpush.msra.mxu0 %v2807_v14  ;;  %527 = vmatpush.msra.mxu2 %v2813_v16 }
  0x7c   :  { %5203 = vst [vmem:[#allocation105_spill] sm:$0xff] %v3156_v56  ;;  %547 = vmatpush.msra.mxu3 %v2817_v17  ;;  %508 = vmatpush.msra.mxu1 %v2823_v19 }
  0x7d   :  { %488 = vmatpush.msra.mxu0 %v2819_v18  ;;  %528 = vmatpush.msra.mxu2 %v2825_v20 }
  0x7e   :  { %548 = vmatpush.msra.mxu3 %v2829_v21  ;;  %509 = vmatpush.msra.mxu1 %v2835_v23 }
  0x7f   :  { %489 = vmatpush.msra.mxu0 %v2831_v22  ;;  %529 = vmatpush.msra.mxu2 %v2837_v24 }
  0x80   :  { %549 = vmatpush.msra.mxu3 %v2841_v25  ;;  %510 = vmatpush.msra.mxu1 %v2847_v27 }
  0x81   :  { %490 = vmatpush.msra.mxu0 %v2843_v26  ;;  %530 = vmatpush.msra.mxu2 %v2849_v28 }
  0x82   :  { %550 = vmatpush.msra.mxu3 %v2853_v29  ;;  %511 = vmatpush.msra.mxu1 %v2859_v31 }
  0x83   :  { %491 = vmatpush.msra.mxu0 %v2855_v30  ;;  %531 = vmatpush.msra.mxu2 %v2861_v32 }
  0x84   :  { %551 = vmatpush.msra.mxu3 %v2865_v33  ;;  %512 = vmatpush.msra.mxu1 %v2871_v35 }
  0x85   :  { %492 = vmatpush.msra.mxu0 %v2867_v34  ;;  %532 = vmatpush.msra.mxu2 %v2873_v36 }
  0x86   :  { %552 = vmatpush.msra.mxu3 %v2877_v37  ;;  %513 = vmatpush.msra.mxu1 %v2883_v39 }
  0x87   :  { %493 = vmatpush.msra.mxu0 %v2879_v38  ;;  %533 = vmatpush.msra.mxu2 %v2885_v40 }
  0x88   :  { %553 = vmatpush.msra.mxu3 %v2889_v41  ;;  %514 = vmatpush.msra.mxu1 %v2895_v43 }
  0x89   :  { %494 = vmatpush.msra.mxu0 %v2891_v42  ;;  %534 = vmatpush.msra.mxu2 %v2897_v44  ;;  %v3211_v42 = vand.u32 127, %v83_v61  ;;  %v5204_v44 = vld [vmem:[#allocation30_spill] sm:$0xff]  ;;  %v5210_v61 = vld [vmem:[#allocation36_spill] sm:$0xff] }
  0x8a   :  { %554 = vmatpush.msra.mxu3 %v2901_v45  ;;  %515 = vmatpush.msra.mxu1 %v2907_v47  ;;  %v5205_v45 = vld [vmem:[#allocation31_spill] sm:$0xff]  ;;  %v5207_v47 = vld [vmem:[#allocation33_spill] sm:$0xff] }
  0x8b   :  { %495 = vmatpush.msra.mxu0 %v2903_v46  ;;  %535 = vmatpush.msra.mxu2 %v2909_v48  ;;  %v5206_v46 = vld [vmem:[#allocation32_spill] sm:$0xff]  ;;  %v151_v48 = vpop.permute.xlu0 %150 }
  0x8c   :  { %555 = vmatpush.msra.mxu3 %v2913_v49  ;;  %516 = vmatpush.msra.mxu1 %v2919_v51  ;;  %v5208_v49 = vld [vmem:[#allocation34_spill] sm:$0xff]  ;;  %vm152_vm0 = vcmp.eq.s32.totalorder %v151_v48, %v3211_v42  ;;  %v5215_v48 = vld [vmem:[#allocation41_spill] sm:$0xff]  ;;  %v5221_v51 = vld [vmem:[#allocation47_spill] sm:$0xff] }
  0x8d   :  { %496 = vmatpush.msra.mxu0 %v2915_v50  ;;  %536 = vmatpush.msra.mxu2 %v2921_v52  ;;  %v5209_v50 = vld [vmem:[#allocation35_spill] sm:$0xff]  ;;  %v5211_v52 = vld [vmem:[#allocation37_spill] sm:$0xff] }
  0x8e   :  { %556 = vmatpush.msra.mxu3 %v2925_v53  ;;  %517 = vmatpush.msra.mxu1 %v5205_v45  ;;  %v4820_v53 = vmov 1.0   ;;  %v5219_v45 = vld [vmem:[#allocation45_spill] sm:$0xff] }
  0x8f   :  { %497 = vmatpush.msra.mxu0 %v5204_v44  ;;  %537 = vmatpush.msra.mxu2 %v5206_v46  ;;  %v5218_v46 = vld [vmem:[#allocation44_spill] sm:$0xff]  ;;  %v5220_v44 = vld [vmem:[#allocation46_spill] sm:$0xff] }
  0x90   :  { %557 = vmatpush.msra.mxu3 %v5207_v47  ;;  %518 = vmatpush.msra.mxu1 %v5209_v50  ;;  %v5212_v47 = vld [vmem:[#allocation38_spill] sm:$0xff]  ;;  %v5214_v50 = vld [vmem:[#allocation40_spill] sm:$0xff] }
  0x91   :  { %498 = vmatpush.msra.mxu0 %v5208_v49  ;;  %538 = vmatpush.msra.mxu2 %v5210_v61  ;;  %v5213_v49 = vld [vmem:[#allocation39_spill] sm:$0xff]  ;;  %v5216_v61 = vld [vmem:[#allocation42_spill] sm:$0xff] }
  0x92   :  { %558 = vmatpush.msra.mxu3 %v5211_v52  ;;  %2113 = vmatmul.msk.f32.vlgmr.msrb.gmra.mxu0 %vm152_vm0, %v4820_v53  ;;  %v5217_v52 = vld [vmem:[#allocation43_spill] sm:$0xff] }
  0x93   :  { %2114 = vmatmul.msk.f32.vlgmr.msrb.gmra.mxu1 %vm152_vm0, %v4820_v53  ;;  %2115 = vmatmul.msk.f32.vlgmr.msrb.gmra.mxu2 %vm152_vm0, %v4820_v53 }
  0x94   :  { %2116 = vmatmul.msk.f32.vlgmr.msrb.gmra.mxu3 %vm152_vm0, %v4820_v53  ;;  %499 = vmatpush.msra.mxu0 %v5212_v47  ;;  %v5222_v53 = vld [vmem:[#allocation48_spill] sm:$0xff]  ;;  %v5223_v47 = vld [vmem:[#allocation49_spill] sm:$0xff] }
  0x95   :  { %519 = vmatpush.msra.mxu1 %v5213_v49  ;;  %539 = vmatpush.msra.mxu2 %v5214_v50  ;;  %v5224_v49 = vld [vmem:[#allocation50_spill] sm:$0xff]  ;;  %v5225_v50 = vld [vmem:[#allocation51_spill] sm:$0xff] }
  0x96   :  { %559 = vmatpush.msra.mxu3 %v5215_v48  ;;  %564 = vmatpush.msrb.mxu0 %v5216_v61  ;;  %v5226_v48 = vld [vmem:[#allocation52_spill] sm:$0xff]  ;;  %v5227_v61 = vld [vmem:[#allocation53_spill] sm:$0xff] }
  0x97   :  { %584 = vmatpush.msrb.mxu1 %v5217_v52  ;;  %604 = vmatpush.msrb.mxu2 %v5218_v46  ;;  %v5228_v52 = vld [vmem:[#allocation54_spill] sm:$0xff]  ;;  %v5229_v46 = vld [vmem:[#allocation55_spill] sm:$0xff] }
  0x98   :  { %624 = vmatpush.msrb.mxu3 %v5219_v45  ;;  %565 = vmatpush.msrb.mxu0 %v5220_v44  ;;  %v5230_v45 = vld [vmem:[#allocation56_spill] sm:$0xff]  ;;  %v5231_v44 = vld [vmem:[#allocation57_spill] sm:$0xff] }
  0x99   :  { %585 = vmatpush.msrb.mxu1 %v5221_v51  ;;  %605 = vmatpush.msrb.mxu2 %v5222_v53  ;;  %v5232_v51 = vld [vmem:[#allocation58_spill] sm:$0xff]  ;;  %v5233_v53 = vld [vmem:[#allocation59_spill] sm:$0xff] }
  0x9a   :  { %625 = vmatpush.msrb.mxu3 %v5223_v47  ;;  %566 = vmatpush.msrb.mxu0 %v5224_v49  ;;  %v5234_v47 = vld [vmem:[#allocation60_spill] sm:$0xff]  ;;  %v5235_v49 = vld [vmem:[#allocation61_spill] sm:$0xff] }
  0x9b   :  { %586 = vmatpush.msrb.mxu1 %v5225_v50  ;;  %606 = vmatpush.msrb.mxu2 %v5226_v48  ;;  %v5236_v50 = vld [vmem:[#allocation62_spill] sm:$0xff]  ;;  %v5237_v48 = vld [vmem:[#allocation63_spill] sm:$0xff] }
  0x9c   :  { %626 = vmatpush.msrb.mxu3 %v5227_v61  ;;  %567 = vmatpush.msrb.mxu0 %v5228_v52  ;;  %v5238_v61 = vld [vmem:[#allocation64_spill] sm:$0xff]  ;;  %v5239_v52 = vld [vmem:[#allocation65_spill] sm:$0xff] }
  0x9d   :  { %587 = vmatpush.msrb.mxu1 %v5229_v46  ;;  %607 = vmatpush.msrb.mxu2 %v5230_v45  ;;  %v5240_v46 = vld [vmem:[#allocation66_spill] sm:$0xff]  ;;  %v5241_v45 = vld [vmem:[#allocation67_spill] sm:$0xff] }
  0x9e   :  { %627 = vmatpush.msrb.mxu3 %v5231_v44  ;;  %568 = vmatpush.msrb.mxu0 %v5232_v51  ;;  %v5242_v44 = vld [vmem:[#allocation68_spill] sm:$0xff]  ;;  %v5243_v51 = vld [vmem:[#allocation69_spill] sm:$0xff] }
  0x9f   :  { %588 = vmatpush.msrb.mxu1 %v5233_v53  ;;  %608 = vmatpush.msrb.mxu2 %v5234_v47  ;;  %v5244_v53 = vld [vmem:[#allocation70_spill] sm:$0xff]  ;;  %v5245_v47 = vld [vmem:[#allocation71_spill] sm:$0xff] }
  0xa0   :  { %628 = vmatpush.msrb.mxu3 %v5235_v49  ;;  %569 = vmatpush.msrb.mxu0 %v5236_v50  ;;  %v5246_v49 = vld [vmem:[#allocation72_spill] sm:$0xff]  ;;  %v5247_v50 = vld [vmem:[#allocation73_spill] sm:$0xff] }
  0xa1   :  { %589 = vmatpush.msrb.mxu1 %v5237_v48  ;;  %609 = vmatpush.msrb.mxu2 %v5238_v61  ;;  %v5248_v48 = vld [vmem:[#allocation74_spill] sm:$0xff]  ;;  %v5249_v61 = vld [vmem:[#allocation75_spill] sm:$0xff] }
  0xa2   :  { %629 = vmatpush.msrb.mxu3 %v5239_v52  ;;  %570 = vmatpush.msrb.mxu0 %v5240_v46  ;;  %v5250_v52 = vld [vmem:[#allocation76_spill] sm:$0xff]  ;;  %v5251_v46 = vld [vmem:[#allocation77_spill] sm:$0xff] }
  0xa3   :  { %590 = vmatpush.msrb.mxu1 %v5241_v45  ;;  %610 = vmatpush.msrb.mxu2 %v5242_v44  ;;  %v5252_v45 = vld [vmem:[#allocation78_spill] sm:$0xff]  ;;  %v5253_v44 = vld [vmem:[#allocation79_spill] sm:$0xff] }
  0xa4   :  { %630 = vmatpush.msrb.mxu3 %v5243_v51  ;;  %571 = vmatpush.msrb.mxu0 %v5244_v53  ;;  %v5254_v51 = vld [vmem:[#allocation80_spill] sm:$0xff]  ;;  %v5255_v53 = vld [vmem:[#allocation81_spill] sm:$0xff] }
  0xa5   :  { %591 = vmatpush.msrb.mxu1 %v5245_v47  ;;  %611 = vmatpush.msrb.mxu2 %v5246_v49  ;;  %v5256_v47 = vld [vmem:[#allocation82_spill] sm:$0xff]  ;;  %v5257_v49 = vld [vmem:[#allocation83_spill] sm:$0xff] }
  0xa6   :  { %631 = vmatpush.msrb.mxu3 %v5247_v50  ;;  %572 = vmatpush.msrb.mxu0 %v5248_v48  ;;  %v5258_v50 = vld [vmem:[#allocation84_spill] sm:$0xff]  ;;  %v5259_v48 = vld [vmem:[#allocation85_spill] sm:$0xff] }
  0xa7   :  { %592 = vmatpush.msrb.mxu1 %v5249_v61  ;;  %612 = vmatpush.msrb.mxu2 %v5250_v52  ;;  %v5260_v61 = vld [vmem:[#allocation86_spill] sm:$0xff]  ;;  %v5261_v52 = vld [vmem:[#allocation87_spill] sm:$0xff] }
  0xa8   :  { %632 = vmatpush.msrb.mxu3 %v5251_v46  ;;  %573 = vmatpush.msrb.mxu0 %v5252_v45  ;;  %v5262_v46 = vld [vmem:[#allocation88_spill] sm:$0xff]  ;;  %v5263_v45 = vld [vmem:[#allocation89_spill] sm:$0xff] }
  0xa9   :  { %593 = vmatpush.msrb.mxu1 %v5253_v44  ;;  %613 = vmatpush.msrb.mxu2 %v5254_v51  ;;  %v5264_v44 = vld [vmem:[#allocation90_spill] sm:$0xff] }
  0xaa   :  { %633 = vmatpush.msrb.mxu3 %v5255_v53  ;;  %574 = vmatpush.msrb.mxu0 %v5256_v47  ;;  %v5265_v53 = vld [vmem:[#allocation92_spill] sm:$0xff]  ;;  %v5266_v47 = vld [vmem:[#allocation93_spill] sm:$0xff] }
  0xab   :  { %594 = vmatpush.msrb.mxu1 %v5257_v49  ;;  %614 = vmatpush.msrb.mxu2 %v5258_v50  ;;  %v5267_v49 = vld [vmem:[#allocation94_spill] sm:$0xff] }
  0xac   :  { %634 = vmatpush.msrb.mxu3 %v5259_v48  ;;  %575 = vmatpush.msrb.mxu0 %v5260_v61  ;;  %v5268_v48 = vld [vmem:[#allocation96_spill] sm:$0xff] }
  0xad   :  { %595 = vmatpush.msrb.mxu1 %v5261_v52  ;;  %615 = vmatpush.msrb.mxu2 %v5262_v46 }
  0xae   :  { %635 = vmatpush.msrb.mxu3 %v5263_v45  ;;  %576 = vmatpush.msrb.mxu0 %v5264_v44  ;;  %v5269_v44 = vld [vmem:[#allocation101_spill] sm:$0xff] }
  0xaf   :  { %596 = vmatpush.msrb.mxu1 %v3114_v60  ;;  %616 = vmatpush.msrb.mxu2 %v5265_v53 }
  0xb0   :  { %636 = vmatpush.msrb.mxu3 %v5266_v47  ;;  %577 = vmatpush.msrb.mxu0 %v5267_v49 }
  0xb1   :  { %597 = vmatpush.msrb.mxu1 %v3123_v57  ;;  %617 = vmatpush.msrb.mxu2 %v5268_v48 }
  0xb2   :  { %637 = vmatpush.msrb.mxu3 %v3129_v58  ;;  %578 = vmatpush.msrb.mxu0 %v3131_v55 }
  0xb3   :  { %598 = vmatpush.msrb.mxu1 %v3135_v59  ;;  %618 = vmatpush.msrb.mxu2 %v3137_v62 }
  0xb4   :  { %638 = vmatpush.msrb.mxu3 %v5269_v44  ;;  %579 = vmatpush.msrb.mxu0 %v3148_v54 }
  0xb5   :  { %599 = vmatpush.msrb.mxu1 %v3150_v0  ;;  %619 = vmatpush.msrb.mxu2 %v3152_v63 }
  0xb6   :  { %639 = vmatpush.msrb.mxu3 %v3156_v56 }
  0xe3   :  { %v278_v57 = vpop.f32.mrf.mxu0  ;;  %v298_v48 = vpop.f32.mrf.mxu1 }
  0xea   :  { %v338_v49 = vpop.f32.mrf.mxu3  ;;  %v318_v44 = vpop.f32.mrf.mxu2 }
 0x10f   :  { %v358_v58 = vpop.f32.mrf.mxu0 }
 0x110   :  { %v378_v47 = vpop.f32.mrf.mxu1  ;;  %v359_v55 = vadd.f32 %v358_v58, %v278_v57 }
 0x111   :  { %v379_v53 = vadd.f32 %v378_v47, %v298_v48 }
 0x112   :  { %v2117_v59 = vmul.f32 -1.442695, %v359_v55 }
 0x113   :  { %v2118_v60 = vmul.f32 -1.442695, %v379_v53 }
 0x114   :  { %2198 = vpow2.f32 %v2117_v59 }
 0x115   :  { %2200 = vpow2.f32 %v2118_v60 }
 0x116   :  { %v398_v52 = vpop.f32.mrf.mxu2 }
 0x117   :  { %v418_v62 = vpop.f32.mrf.mxu3  ;;  %v399_v47 = vadd.f32 %v398_v52, %v318_v44 }
 0x118   :  { %v419_v54 = vadd.f32 %v418_v62, %v338_v49 }
 0x11a   :  { %v2119_v45 = vmul.f32 -1.442695, %v419_v54  ;;  %v2199_v0 = vpop.eup %2198  ;;  %v2724_v54 = vmov 2  }
 0x11b   :  { %v2201_v46 = vpop.eup %2200  ;;  %v424_v63 = vadd.f32 1.0, %v2199_v0  ;;  %2190 = vset.pattern.permute.xlu1 %v2724_v54 }
 0x11c   :  { %2202 = vpow2.f32 %v2119_v45  ;;  %v443_v56 = vadd.f32 1.0, %v2201_v46  ;;  %162 = vperm.xlu1 %2190, %v2773_v1  }
 0x11d   :  { %2204 = vrcp.f32 %v424_v63  ;;  %v436_v49 = vand.u32 2147483648, %v424_v63  ;;  %v434_v46 = vand.u32 2147483647, %v424_v63  ;;  %vm430_vm3 = vweird.f32 %v424_v63 }
 0x11e   :  { %2206 = vrcp.f32 %v443_v56  ;;  %v455_v0 = vand.u32 2147483648, %v443_v56  ;;  %vm449_vm4 = vweird.f32 %v443_v56 }
 0x11f   :  { %v437_v48 = vor.u32 1.1754944e-38, %v436_v49  ;;  %vm435_vm6 = vcmp.eq.f32.partialorder %v434_v46, 8.507059e+37 }
 0x122   :  { %v2203_v61 = vpop.eup %2202 }
 0x123   :  { %v463_v50 = vadd.f32 1.0, %v2203_v61  ;;  %v2205_v57 = vpop.eup %2204  ;;  %v453_v61 = vand.u32 2147483647, %v443_v56 }
 0x124   :  { %v2207_v55 = vpop.eup %2206  ;;  %v426_v53 = vmul.f32 %v2205_v57, %v424_v63  ;;  %vm431_vm1 = vweird.f32 %v2205_v57 }
 0x125   :  { %2208 = vrcp.f32 %v463_v50  ;;  %v445_v58 = vmul.f32 %v2207_v55, %v443_v56  ;;  %vm450_vm2 = vweird.f32 %v2207_v55  ;;  %vm432_vm5 = vmor %vm430_vm3, %vm431_vm1  ;;  %vm454_vm8 = vcmp.eq.f32.partialorder %v453_v61, 8.507059e+37  ;;  %v5312_v61 = vld [vmem:[#allocation56_spill] sm:$0xff] }
 0x126   :  { %v427_v59 = vsub.f32 1.0, %v426_v53  ;;  %2210 = vtanh.f32 %v399_v47  ;;  %v456_v47 = vor.u32 1.1754944e-38, %v455_v0  ;;  %vm451_vm7 = vmor %vm449_vm4, %vm450_vm2  ;;  %v475_v63 = vand.u32 2147483648, %v463_v50 }
 0x127   :  { %v446_v60 = vsub.f32 1.0, %v445_v58  ;;  %vm469_vm10 = vweird.f32 %v463_v50 }
 0x128   :  { %v428_v45 = vmul.f32 %v2205_v57, %v427_v59  ;;  %v476_v0 = vor.u32 1.1754944e-38, %v475_v63  ;;  %v5324_v63 = vld [vmem:[#allocation68_spill] sm:$0xff] }
 0x129   :  { %v447_v62 = vmul.f32 %v2207_v55, %v446_v60 }
 0x12a   :  { %v429_v52 = vadd.f32 %v2205_v57, %v428_v45 }
 0x12b   :  { %v2209_v44 = vpop.eup %2208  ;;  %v448_v53 = vadd.f32 %v2207_v55, %v447_v62  ;;  %v5311_v62 = vld [vmem:[#allocation55_spill] sm:$0xff] }
 0x12c   :  { %v465_v58 = vmul.f32 %v2209_v44, %v463_v50  ;;  %v433_v51 = vsel %vm432_vm5, %v2205_v57, %v429_v52  ;;  %v2211_v59 = vpop.eup %2210  ;;  %vm470_vm9 = vweird.f32 %v2209_v44  ;;  %v473_v57 = vand.u32 2147483647, %v463_v50  ;;  %v5310_v50 = vld [vmem:[#allocation54_spill] sm:$0xff] }
 0x12d   :  { %v438_v54 = vsel %vm435_vm6, %v437_v48, %v433_v51  ;;  %v452_v43 = vsel %vm451_vm7, %v2207_v55, %v448_v53  ;;  %vm471_vm11 = vmor %vm469_vm10, %vm470_vm9  ;;  %v5314_v52 = vld [vmem:[#allocation58_spill] sm:$0xff]  ;;  %v5315_v48 = vld [vmem:[#allocation59_spill] sm:$0xff] }
 0x12e   :  { %v466_v1 = vsub.f32 1.0, %v465_v58  ;;  %v457_v60 = vsel %vm454_vm8, %v456_v47, %v452_v43  ;;  %v480_v41 = vmul.f32 %v2211_v59, %v438_v54  ;;  %vm474_vm12 = vcmp.eq.f32.partialorder %v473_v57, 8.507059e+37  ;;  %v5309_v43 = vld [vmem:[#allocation53_spill] sm:$0xff]  ;;  %v5316_v53 = vld [vmem:[#allocation60_spill] sm:$0xff]  ;;  %v5318_v47 = vld [vmem:[#allocation62_spill] sm:$0xff] }
 0x12f   :  { %v479_v40 = vmul.f32 0.0, %v457_v60  ;;  %v5317_v58 = vld [vmem:[#allocation61_spill] sm:$0xff]  ;;  %v5319_v59 = vld [vmem:[#allocation63_spill] sm:$0xff]  ;;  %v5320_v54 = vld [vmem:[#allocation64_spill] sm:$0xff] }
 0x130   :  { %v467_v39 = vmul.f32 %v2209_v44, %v466_v1  ;;  %v5321_v1 = vld [vmem:[#allocation65_spill] sm:$0xff]  ;;  %v5322_v60 = vld [vmem:[#allocation66_spill] sm:$0xff] }
 0x131   :  { %v3297_v45 = vadd.f32 %v480_v41, %v479_v40  ;;  %v157_v40 = vpop.permute.xlu0 %156  ;;  %v5308_v41 = vld [vmem:[#allocation52_spill] sm:$0xff]  ;;  %v5325_v57 = vld [vmem:[#allocation69_spill] sm:$0xff] }
 0x132   :  { %v468_v56 = vadd.f32 %v2209_v44, %v467_v39  ;;  %vm158_vm13 = vcmp.eq.s32.totalorder %v157_v40, %v3211_v42  ;;  %v5307_v39 = vld [vmem:[#allocation51_spill] sm:$0xff] }
 0x133   :  { %2212 = vtanh.f32 %v3297_v45  ;;  %v5331_v40 = vld [vmem:[#allocation75_spill] sm:$0xff] }
 0x134   :  { %v472_v49 = vsel %vm471_vm11, %v2209_v44, %v468_v56  ;;  %v5313_v44 = vld [vmem:[#allocation57_spill] sm:$0xff]  ;;  %v5323_v56 = vld [vmem:[#allocation67_spill] sm:$0xff] }
 0x135   :  { %v477_v55 = vsel %vm474_vm12, %v476_v0, %v472_v49  ;;  %v5326_v49 = vld [vmem:[#allocation70_spill] sm:$0xff]  ;;  %v5327_v0 = vld [vmem:[#allocation71_spill] sm:$0xff] }
 0x139   :  { %v2213_v51 = vpop.eup %2212 }
 0x13a   :  { %v483_v46 = vmul.f32 %v2213_v51, %v477_v55  ;;  %v5328_v51 = vld [vmem:[#allocation72_spill] sm:$0xff]  ;;  %v5329_v55 = vld [vmem:[#allocation73_spill] sm:$0xff] }
 0x13c   :  { %500 = vmatmul.f32.vlgmr.msra.gmra.mxu0 %v483_v46  ;;  %520 = vmatmul.f32.vlgmr.msra.gmra.mxu1 %v483_v46 }
 0x13d   :  { %540 = vmatmul.f32.vlgmr.msra.gmra.mxu2 %v483_v46  ;;  %560 = vmatmul.f32.vlgmr.msra.gmra.mxu3 %v483_v46  ;;  %v5330_v46 = vld [vmem:[#allocation74_spill] sm:$0xff] }
 0x13e   :  { %707 = vmatpush.msra.mxu0 %v2775_v2  ;;  %727 = vmatpush.msra.mxu1 %v2777_v3  ;;  %v5270_v2 = vmov 1.0   ;;  %v5271_v3 = vld [vmem:[#allocation15_spill] sm:$0xff] }
 0x13f   :  { %747 = vmatpush.msra.mxu2 %v2781_v4  ;;  %767 = vmatpush.msra.mxu3 %v2783_v5  ;;  %v5272_v4 = vld [vmem:[#allocation16_spill] sm:$0xff]  ;;  %v5273_v5 = vld [vmem:[#allocation17_spill] sm:$0xff] }
 0x140   :  { %708 = vmatpush.msra.mxu0 %v2785_v6  ;;  %728 = vmatpush.msra.mxu1 %v2789_v7  ;;  %v5274_v6 = vld [vmem:[#allocation18_spill] sm:$0xff]  ;;  %v5275_v7 = vld [vmem:[#allocation19_spill] sm:$0xff] }
 0x141   :  { %748 = vmatpush.msra.mxu2 %v2791_v8  ;;  %768 = vmatpush.msra.mxu3 %v2793_v9  ;;  %v5276_v8 = vld [vmem:[#allocation20_spill] sm:$0xff]  ;;  %v5277_v9 = vld [vmem:[#allocation21_spill] sm:$0xff] }
 0x142   :  { %709 = vmatpush.msra.mxu0 %v2797_v10  ;;  %729 = vmatpush.msra.mxu1 %v2799_v11  ;;  %v5278_v10 = vld [vmem:[#allocation22_spill] sm:$0xff]  ;;  %v5279_v11 = vld [vmem:[#allocation23_spill] sm:$0xff] }
 0x143   :  { %749 = vmatpush.msra.mxu2 %v2801_v12  ;;  %769 = vmatpush.msra.mxu3 %v2805_v13  ;;  %v5280_v12 = vld [vmem:[#allocation24_spill] sm:$0xff]  ;;  %v5281_v13 = vld [vmem:[#allocation25_spill] sm:$0xff] }
 0x144   :  { %2120 = vmatmul.msk.f32.vlgmr.msrb.gmra.mxu0 %vm158_vm13, %v5270_v2  ;;  %2121 = vmatmul.msk.f32.vlgmr.msrb.gmra.mxu1 %vm158_vm13, %v5270_v2 }
 0x145   :  { %2122 = vmatmul.msk.f32.vlgmr.msrb.gmra.mxu2 %vm158_vm13, %v5270_v2  ;;  %2123 = vmatmul.msk.f32.vlgmr.msrb.gmra.mxu3 %vm158_vm13, %v5270_v2 }
 0x146   :  { %710 = vmatpush.msra.mxu0 %v2807_v14  ;;  %730 = vmatpush.msra.mxu1 %v2811_v15  ;;  %v5282_v14 = vld [vmem:[#allocation26_spill] sm:$0xff]  ;;  %v5283_v15 = vld [vmem:[#allocation27_spill] sm:$0xff] }
 0x147   :  { %750 = vmatpush.msra.mxu2 %v2813_v16  ;;  %770 = vmatpush.msra.mxu3 %v2817_v17  ;;  %v5284_v16 = vld [vmem:[#allocation28_spill] sm:$0xff]  ;;  %v5285_v17 = vld [vmem:[#allocation29_spill] sm:$0xff] }
 0x148   :  { %711 = vmatpush.msra.mxu0 %v2819_v18  ;;  %731 = vmatpush.msra.mxu1 %v2823_v19  ;;  %v5286_v18 = vld [vmem:[#allocation30_spill] sm:$0xff]  ;;  %v5287_v19 = vld [vmem:[#allocation31_spill] sm:$0xff] }
 0x149   :  { %751 = vmatpush.msra.mxu2 %v2825_v20  ;;  %771 = vmatpush.msra.mxu3 %v2829_v21  ;;  %v5288_v20 = vld [vmem:[#allocation32_spill] sm:$0xff]  ;;  %v5289_v21 = vld [vmem:[#allocation33_spill] sm:$0xff] }
 0x14a   :  { %712 = vmatpush.msra.mxu0 %v2831_v22  ;;  %732 = vmatpush.msra.mxu1 %v2835_v23  ;;  %v5290_v22 = vld [vmem:[#allocation34_spill] sm:$0xff]  ;;  %v5291_v23 = vld [vmem:[#allocation35_spill] sm:$0xff] }
 0x14b   :  { %752 = vmatpush.msra.mxu2 %v2837_v24  ;;  %772 = vmatpush.msra.mxu3 %v2841_v25  ;;  %v5292_v24 = vld [vmem:[#allocation36_spill] sm:$0xff]  ;;  %v5293_v25 = vld [vmem:[#allocation37_spill] sm:$0xff] }
 0x14c   :  { %713 = vmatpush.msra.mxu0 %v2843_v26  ;;  %733 = vmatpush.msra.mxu1 %v2847_v27  ;;  %v5294_v26 = vld [vmem:[#allocation38_spill] sm:$0xff]  ;;  %v5295_v27 = vld [vmem:[#allocation39_spill] sm:$0xff] }
 0x14d   :  { %753 = vmatpush.msra.mxu2 %v2849_v28  ;;  %773 = vmatpush.msra.mxu3 %v2853_v29  ;;  %v5296_v28 = vld [vmem:[#allocation40_spill] sm:$0xff]  ;;  %v5297_v29 = vld [vmem:[#allocation41_spill] sm:$0xff] }
 0x14e   :  { %714 = vmatpush.msra.mxu0 %v2855_v30  ;;  %734 = vmatpush.msra.mxu1 %v2859_v31  ;;  %v5298_v30 = vld [vmem:[#allocation42_spill] sm:$0xff]  ;;  %v5299_v31 = vld [vmem:[#allocation43_spill] sm:$0xff] }
 0x14f   :  { %754 = vmatpush.msra.mxu2 %v2861_v32  ;;  %774 = vmatpush.msra.mxu3 %v2865_v33  ;;  %v5300_v32 = vld [vmem:[#allocation44_spill] sm:$0xff]  ;;  %v5301_v33 = vld [vmem:[#allocation45_spill] sm:$0xff] }
 0x150   :  { %715 = vmatpush.msra.mxu0 %v2867_v34  ;;  %735 = vmatpush.msra.mxu1 %v2871_v35  ;;  %v5302_v34 = vld [vmem:[#allocation46_spill] sm:$0xff]  ;;  %v5303_v35 = vld [vmem:[#allocation47_spill] sm:$0xff] }
 0x151   :  { %755 = vmatpush.msra.mxu2 %v2873_v36  ;;  %775 = vmatpush.msra.mxu3 %v2877_v37  ;;  %v5304_v36 = vld [vmem:[#allocation48_spill] sm:$0xff]  ;;  %v5305_v37 = vld [vmem:[#allocation49_spill] sm:$0xff] }
 0x152   :  { %716 = vmatpush.msra.mxu0 %v2879_v38  ;;  %736 = vmatpush.msra.mxu1 %v5271_v3  ;;  %v5306_v38 = vld [vmem:[#allocation50_spill] sm:$0xff]  ;;  %v5332_v3 = vld [vmem:[#allocation76_spill] sm:$0xff] }
 0x153   :  { %756 = vmatpush.msra.mxu2 %v5272_v4  ;;  %776 = vmatpush.msra.mxu3 %v5273_v5  ;;  %v5333_v4 = vld [vmem:[#allocation77_spill] sm:$0xff]  ;;  %v5334_v5 = vld [vmem:[#allocation78_spill] sm:$0xff] }
 0x154   :  { %717 = vmatpush.msra.mxu0 %v5274_v6  ;;  %737 = vmatpush.msra.mxu1 %v5275_v7  ;;  %v5335_v6 = vld [vmem:[#allocation79_spill] sm:$0xff]  ;;  %v5336_v7 = vld [vmem:[#allocation80_spill] sm:$0xff] }
 0x155   :  { %757 = vmatpush.msra.mxu2 %v5276_v8  ;;  %777 = vmatpush.msra.mxu3 %v5277_v9  ;;  %v5337_v8 = vld [vmem:[#allocation81_spill] sm:$0xff]  ;;  %v5338_v9 = vld [vmem:[#allocation82_spill] sm:$0xff] }
 0x156   :  { %718 = vmatpush.msra.mxu0 %v5278_v10  ;;  %738 = vmatpush.msra.mxu1 %v5279_v11  ;;  %v5339_v10 = vld [vmem:[#allocation83_spill] sm:$0xff]  ;;  %v5340_v11 = vld [vmem:[#allocation84_spill] sm:$0xff] }
 0x157   :  { %758 = vmatpush.msra.mxu2 %v5280_v12  ;;  %778 = vmatpush.msra.mxu3 %v5281_v13  ;;  %v5341_v12 = vld [vmem:[#allocation85_spill] sm:$0xff]  ;;  %v5342_v13 = vld [vmem:[#allocation86_spill] sm:$0xff] }
 0x158   :  { %719 = vmatpush.msra.mxu0 %v5282_v14  ;;  %739 = vmatpush.msra.mxu1 %v5283_v15  ;;  %v5343_v14 = vld [vmem:[#allocation87_spill] sm:$0xff]  ;;  %v5344_v15 = vld [vmem:[#allocation88_spill] sm:$0xff] }
 0x159   :  { %759 = vmatpush.msra.mxu2 %v5284_v16  ;;  %779 = vmatpush.msra.mxu3 %v5285_v17  ;;  %v5345_v16 = vld [vmem:[#allocation89_spill] sm:$0xff]  ;;  %v5346_v17 = vld [vmem:[#allocation90_spill] sm:$0xff] }
 0x15a   :  { %720 = vmatpush.msra.mxu0 %v5286_v18  ;;  %740 = vmatpush.msra.mxu1 %v5287_v19  ;;  %v5347_v18 = vld [vmem:[#allocation91_spill] sm:$0xff]  ;;  %v5348_v19 = vld [vmem:[#allocation92_spill] sm:$0xff] }
 0x15b   :  { %760 = vmatpush.msra.mxu2 %v5288_v20  ;;  %780 = vmatpush.msra.mxu3 %v5289_v21  ;;  %v5349_v20 = vld [vmem:[#allocation93_spill] sm:$0xff]  ;;  %v5350_v21 = vld [vmem:[#allocation94_spill] sm:$0xff] }
 0x15c   :  { %721 = vmatpush.msra.mxu0 %v5290_v22  ;;  %741 = vmatpush.msra.mxu1 %v5291_v23  ;;  %v5351_v22 = vld [vmem:[#allocation95_spill] sm:$0xff]  ;;  %v5352_v23 = vld [vmem:[#allocation96_spill] sm:$0xff] }
 0x15d   :  { %761 = vmatpush.msra.mxu2 %v5292_v24  ;;  %781 = vmatpush.msra.mxu3 %v5293_v25  ;;  %v5353_v24 = vld [vmem:[#allocation97_spill] sm:$0xff]  ;;  %v5354_v25 = vld [vmem:[#allocation98_spill] sm:$0xff] }
 0x15e   :  { %722 = vmatpush.msra.mxu0 %v5294_v26  ;;  %742 = vmatpush.msra.mxu1 %v5295_v27  ;;  %v5355_v26 = vld [vmem:[#allocation99_spill] sm:$0xff]  ;;  %v5356_v27 = vld [vmem:[#allocation100_spill] sm:$0xff] }
 0x15f   :  { %762 = vmatpush.msra.mxu2 %v5296_v28  ;;  %782 = vmatpush.msra.mxu3 %v5297_v29  ;;  %v5357_v28 = vld [vmem:[#allocation101_spill] sm:$0xff]  ;;  %v5358_v29 = vld [vmem:[#allocation102_spill] sm:$0xff] }
 0x160   :  { %787 = vmatpush.msrb.mxu0 %v5298_v30  ;;  %807 = vmatpush.msrb.mxu1 %v5299_v31  ;;  %v5359_v30 = vld [vmem:[#allocation103_spill] sm:$0xff]  ;;  %v5360_v31 = vld [vmem:[#allocation104_spill] sm:$0xff] }
 0x161   :  { %827 = vmatpush.msrb.mxu2 %v5300_v32  ;;  %847 = vmatpush.msrb.mxu3 %v5301_v33  ;;  %v5361_v32 = vld [vmem:[#allocation105_spill] sm:$0xff] }
 0x162   :  { %788 = vmatpush.msrb.mxu0 %v5302_v34  ;;  %808 = vmatpush.msrb.mxu1 %v5303_v35 }
 0x163   :  { %828 = vmatpush.msrb.mxu2 %v5304_v36  ;;  %848 = vmatpush.msrb.mxu3 %v5305_v37 }
 0x164   :  { %789 = vmatpush.msrb.mxu0 %v5306_v38  ;;  %809 = vmatpush.msrb.mxu1 %v5307_v39 }
 0x165   :  { %829 = vmatpush.msrb.mxu2 %v5308_v41  ;;  %849 = vmatpush.msrb.mxu3 %v5309_v43 }
 0x166   :  { %790 = vmatpush.msrb.mxu0 %v5310_v50  ;;  %810 = vmatpush.msrb.mxu1 %v5311_v62 }
 0x167   :  { %830 = vmatpush.msrb.mxu2 %v5312_v61  ;;  %850 = vmatpush.msrb.mxu3 %v5313_v44 }
 0x168   :  { %791 = vmatpush.msrb.mxu0 %v5314_v52  ;;  %811 = vmatpush.msrb.mxu1 %v5315_v48 }
 0x169   :  { %831 = vmatpush.msrb.mxu2 %v5316_v53  ;;  %851 = vmatpush.msrb.mxu3 %v5317_v58 }
 0x16a   :  { %792 = vmatpush.msrb.mxu0 %v5318_v47  ;;  %812 = vmatpush.msrb.mxu1 %v5319_v59 }
 0x16b   :  { %832 = vmatpush.msrb.mxu2 %v5320_v54  ;;  %852 = vmatpush.msrb.mxu3 %v5321_v1 }
 0x16c   :  { %793 = vmatpush.msrb.mxu0 %v5322_v60  ;;  %813 = vmatpush.msrb.mxu1 %v5323_v56 }
 0x16d   :  { %833 = vmatpush.msrb.mxu2 %v5324_v63  ;;  %853 = vmatpush.msrb.mxu3 %v5325_v57 }
 0x16e   :  { %794 = vmatpush.msrb.mxu0 %v5326_v49  ;;  %814 = vmatpush.msrb.mxu1 %v5327_v0 }
 0x16f   :  { %834 = vmatpush.msrb.mxu2 %v5328_v51  ;;  %854 = vmatpush.msrb.mxu3 %v5329_v55  ;;  %v2725_v55 = vmov 3  }
 0x170   :  { %795 = vmatpush.msrb.mxu0 %v5330_v46  ;;  %815 = vmatpush.msrb.mxu1 %v5331_v40 }
 0x171   :  { %835 = vmatpush.msrb.mxu2 %v5332_v3  ;;  %855 = vmatpush.msrb.mxu3 %v5333_v4  ;;  %v3433_v4 = vld [vmem:[#allocation2] sm:$0x3] }
 0x172   :  { %796 = vmatpush.msrb.mxu0 %v5334_v5  ;;  %816 = vmatpush.msrb.mxu1 %v5335_v6  ;;  %5362 = vst [vmem:[#allocation15_spill] sm:$0xff] %v3433_v4 }
 0x173   :  { %836 = vmatpush.msrb.mxu2 %v5336_v7  ;;  %856 = vmatpush.msrb.mxu3 %v5337_v8 }
 0x174   :  { %797 = vmatpush.msrb.mxu0 %v5338_v9  ;;  %817 = vmatpush.msrb.mxu1 %v5339_v10 }
 0x175   :  { %837 = vmatpush.msrb.mxu2 %v5340_v11  ;;  %857 = vmatpush.msrb.mxu3 %v5341_v12 }
 0x176   :  { %798 = vmatpush.msrb.mxu0 %v5342_v13  ;;  %818 = vmatpush.msrb.mxu1 %v5343_v14 }
 0x177   :  { %838 = vmatpush.msrb.mxu2 %v5344_v15  ;;  %858 = vmatpush.msrb.mxu3 %v5345_v16 }
 0x178   :  { %799 = vmatpush.msrb.mxu0 %v5346_v17  ;;  %819 = vmatpush.msrb.mxu1 %v5347_v18 }
 0x179   :  { %839 = vmatpush.msrb.mxu2 %v5348_v19  ;;  %859 = vmatpush.msrb.mxu3 %v5349_v20 }
 0x17a   :  { %800 = vmatpush.msrb.mxu0 %v5350_v21  ;;  %820 = vmatpush.msrb.mxu1 %v5351_v22 }
 0x17b   :  { %840 = vmatpush.msrb.mxu2 %v5352_v23  ;;  %860 = vmatpush.msrb.mxu3 %v5353_v24 }
 0x17c   :  { %801 = vmatpush.msrb.mxu0 %v5354_v25  ;;  %821 = vmatpush.msrb.mxu1 %v5355_v26 }
 0x17d   :  { %841 = vmatpush.msrb.mxu2 %v5356_v27  ;;  %861 = vmatpush.msrb.mxu3 %v5357_v28 }
 0x17e   :  { %802 = vmatpush.msrb.mxu0 %v5358_v29  ;;  %822 = vmatpush.msrb.mxu1 %v5359_v30 }
 0x17f   :  { %842 = vmatpush.msrb.mxu2 %v5360_v31  ;;  %862 = vmatpush.msrb.mxu3 %v5361_v32  ;;  %v3440_v31 = vld [vmem:[#allocation7 + $0x1e0] sm:$0xff]  ;;  %v3443_v32 = vld [vmem:[#allocation7 + $0x1e8] sm:$0xff] }
 0x180   :  { %2191 = vset.pattern.permute.xlu1 %v2725_v55  ;;  %v3543_v55 = vld [vmem:[#allocation7 + $0x110] sm:$0xff] }
 0x181   :  { %168 = vperm.xlu1 %2191, %v3433_v4  }
 0x1b9   :  { %v501_v33 = vpop.f32.mrf.mxu0  ;;  %v521_v34 = vpop.f32.mrf.mxu1 }
 0x1c0   :  { %v561_v35 = vpop.f32.mrf.mxu3  ;;  %v541_v50 = vpop.f32.mrf.mxu2 }
 0x1c1   :  { %v581_v36 = vpop.f32.mrf.mxu0  ;;  %v601_v37 = vpop.f32.mrf.mxu1 }
 0x1c2   :  { %v582_v38 = vadd.f32 %v581_v36, %v501_v33  ;;  %v602_v39 = vadd.f32 %v601_v37, %v521_v34  ;;  %v3446_v33 = vld [vmem:[#allocation7 + $0x1f0] sm:$0xff]  ;;  %v3449_v34 = vld [vmem:[#allocation7 + $0x1f8] sm:$0xff]  ;;  %v3455_v36 = vld [vmem:[#allocation7 + $0x1c8] sm:$0xff] }
 0x1c3   :  { %v3459_v37 = vld [vmem:[#allocation7 + $0x1d0] sm:$0xff] }
 0x1c4   :  { %v2124_v41 = vmul.f32 -1.442695, %v582_v38  ;;  %v2125_v43 = vmul.f32 -1.442695, %v602_v39  ;;  %v3462_v38 = vld [vmem:[#allocation7 + $0x1d8] sm:$0xff]  ;;  %v3465_v39 = vld [vmem:[#allocation7 + $0x1a0] sm:$0xff] }
 0x1c6   :  { %2214 = vpow2.f32 %v2124_v41  ;;  %v3468_v41 = vld [vmem:[#allocation7 + $0x1a8] sm:$0xff] }
 0x1c7   :  { %2216 = vpow2.f32 %v2125_v43  ;;  %v3471_v43 = vld [vmem:[#allocation7 + $0x1b0] sm:$0xff] }
 0x1c8   :  { %v641_v62 = vpop.f32.mrf.mxu3  ;;  %v621_v47 = vpop.f32.mrf.mxu2 }
 0x1c9   :  { %v642_v61 = vadd.f32 %v641_v62, %v561_v35  ;;  %v622_v60 = vadd.f32 %v621_v47, %v541_v50  ;;  %v3452_v35 = vld [vmem:[#allocation7 + $0x1c0] sm:$0xff]  ;;  %v3474_v50 = vld [vmem:[#allocation7 + $0x1b8] sm:$0xff] }
 0x1ca   :  { %v3489_v62 = vld [vmem:[#allocation7 + $0x180] sm:$0xff]  ;;  %v3510_v47 = vld [vmem:[#allocation7 + $0x178] sm:$0xff] }
 0x1cb   :  { %v2126_v44 = vmul.f32 -1.442695, %v642_v61  ;;  %v3492_v61 = vld [vmem:[#allocation7 + $0x188] sm:$0xff] }
 0x1cc   :  { %v2215_v52 = vpop.eup %2214 }
 0x1cd   :  { %v2217_v48 = vpop.eup %2216  ;;  %v647_v53 = vadd.f32 1.0, %v2215_v52  ;;  %2218 = vpow2.f32 %v2126_v44  ;;  %v3495_v44 = vld [vmem:[#allocation7 + $0x190] sm:$0xff]  ;;  %v3498_v52 = vld [vmem:[#allocation7 + $0x198] sm:$0xff] }
 0x1ce   :  { %v666_v58 = vadd.f32 1.0, %v2217_v48  ;;  %v3501_v48 = vld [vmem:[#allocation7 + $0x160] sm:$0xff] }
 0x1cf   :  { %2220 = vrcp.f32 %v647_v53  ;;  %v659_v51 = vand.u32 2147483648, %v647_v53  ;;  %v657_v3 = vand.u32 2147483647, %v647_v53  ;;  %vm653_vm0 = vweird.f32 %v647_v53 }
 0x1d0   :  { %2222 = vrcp.f32 %v666_v58  ;;  %v678_v46 = vand.u32 2147483648, %v666_v58  ;;  %v676_v6 = vand.u32 2147483647, %v666_v58  ;;  %vm672_vm1 = vweird.f32 %v666_v58 }
 0x1d1   :  { %v660_v9 = vor.u32 1.1754944e-38, %v659_v51  ;;  %vm658_vm4 = vcmp.eq.f32.partialorder %v657_v3, 8.507059e+37  ;;  %v3540_v51 = vld [vmem:[#allocation7 + $0x108] sm:$0xff] }
 0x1d2   :  { %v679_v12 = vor.u32 1.1754944e-38, %v678_v46  ;;  %vm677_vm5 = vcmp.eq.f32.partialorder %v676_v6, 8.507059e+37  ;;  %v3546_v46 = vld [vmem:[#allocation7 + $0x118] sm:$0xff]  ;;  %v3552_v3 = vld [vmem:[#allocation7 + $0xe8] sm:$0xff] }
 0x1d3   :  { %v2219_v59 = vpop.eup %2218  ;;  %v3558_v6 = vld [vmem:[#allocation7 + $0xf8] sm:$0xff] }
 0x1d4   :  { %v686_v54 = vadd.f32 1.0, %v2219_v59  ;;  %v3513_v59 = vld [vmem:[#allocation7 + $0x140] sm:$0xff] }
 0x1d5   :  { %v2221_v1 = vpop.eup %2220 }
 0x1d6   :  { %v2223_v56 = vpop.eup %2222  ;;  %v649_v63 = vmul.f32 %v2221_v1, %v647_v53  ;;  %2224 = vrcp.f32 %v686_v54  ;;  %vm654_vm14 = vweird.f32 %v2221_v1  ;;  %v698_v24 = vand.u32 2147483648, %v686_v54  ;;  %v3504_v53 = vld [vmem:[#allocation7 + $0x168] sm:$0xff] }
 0x1d7   :  { %v668_v57 = vmul.f32 %v2223_v56, %v666_v58  ;;  %2226 = vtanh.f32 %v622_v60  ;;  %vm673_vm15 = vweird.f32 %v2223_v56  ;;  %vm655_vm2 = vmor %vm653_vm0, %vm654_vm14  ;;  %vm692_vm7 = vweird.f32 %v686_v54  ;;  %v3507_v58 = vld [vmem:[#allocation7 + $0x170] sm:$0xff]  ;;  %v3522_v60 = vld [vmem:[#allocation7 + $0x158] sm:$0xff] }
 0x1d8   :  { %v650_v49 = vsub.f32 1.0, %v649_v63  ;;  %vm674_vm3 = vmor %vm672_vm1, %vm673_vm15  ;;  %v696_v25 = vand.u32 2147483647, %v686_v54  ;;  %v699_v27 = vor.u32 1.1754944e-38, %v698_v24  ;;  %v3528_v63 = vld [vmem:[#allocation7 + $0x128] sm:$0xff]  ;;  %v3609_v24 = vld [vmem:[#allocation7 + $0x40] sm:$0xff] }
 0x1d9   :  { %v669_v0 = vsub.f32 1.0, %v668_v57  ;;  %v3531_v57 = vld [vmem:[#allocation7 + $0x130] sm:$0xff]  ;;  %5379 = vst [vmem:[#allocation32_spill] sm:$0xff] %v3609_v24 }
 0x1da   :  { %v651_v40 = vmul.f32 %v2221_v1, %v650_v49  ;;  %vm697_vm9 = vcmp.eq.f32.partialorder %v696_v25, 8.507059e+37  ;;  %v3534_v49 = vld [vmem:[#allocation7 + $0x138] sm:$0xff]  ;;  %v3612_v25 = vld [vmem:[#allocation7 + $0x48] sm:$0xff] }
 0x1db   :  { %v670_v5 = vmul.f32 %v2223_v56, %v669_v0  ;;  %v3537_v0 = vld [vmem:[#allocation7 + $0x100] sm:$0xff]  ;;  %5380 = vst [vmem:[#allocation33_spill] sm:$0xff] %v3612_v25 }
 0x1dc   :  { %v2225_v7 = vpop.eup %2224  ;;  %v652_v8 = vadd.f32 %v2221_v1, %v651_v40  ;;  %v3549_v40 = vld [vmem:[#allocation7 + $0xe0] sm:$0xff] }
 0x1dd   :  { %v671_v10 = vadd.f32 %v2223_v56, %v670_v5  ;;  %v688_v11 = vmul.f32 %v2225_v7, %v686_v54  ;;  %v2227_v14 = vpop.eup %2226  ;;  %vm693_vm6 = vweird.f32 %v2225_v7  ;;  %v3516_v54 = vld [vmem:[#allocation7 + $0x148] sm:$0xff]  ;;  %v3555_v5 = vld [vmem:[#allocation7 + $0xf0] sm:$0xff] }
 0x1de   :  { %v656_v13 = vsel %vm655_vm2, %v2221_v1, %v652_v8  ;;  %vm694_vm8 = vmor %vm692_vm7, %vm693_vm6  ;;  %v3519_v1 = vld [vmem:[#allocation7 + $0x150] sm:$0xff]  ;;  %v3564_v8 = vld [vmem:[#allocation7 + $0xc8] sm:$0xff] }
 0x1df   :  { %v661_v15 = vsel %vm658_vm4, %v660_v9, %v656_v13  ;;  %v675_v16 = vsel %vm674_vm3, %v2223_v56, %v671_v10  ;;  %v689_v17 = vsub.f32 1.0, %v688_v11  ;;  %v3525_v56 = vld [vmem:[#allocation7 + $0x120] sm:$0xff]  ;;  %5364 = vst [vmem:[#allocation17_spill] sm:$0xff] %v3564_v8  ;;  %v3567_v9 = vld [vmem:[#allocation7 + $0xd0] sm:$0xff]  ;;  %v3570_v10 = vld [vmem:[#allocation7 + $0xd8] sm:$0xff] }
 0x1e0   :  { %v680_v18 = vsel %vm677_vm5, %v679_v12, %v675_v16  ;;  %v703_v19 = vmul.f32 %v2227_v14, %v661_v15  ;;  %5365 = vst [vmem:[#allocation18_spill] sm:$0xff] %v3567_v9  ;;  %v3573_v11 = vld [vmem:[#allocation7 + $0xa0] sm:$0xff]  ;;  %v3576_v12 = vld [vmem:[#allocation7 + $0xa8] sm:$0xff]  ;;  %v3579_v13 = vld [vmem:[#allocation7 + $0xb0] sm:$0xff] }
 0x1e1   :  { %v702_v20 = vmul.f32 %v680_v18, %v3297_v45  ;;  %v690_v21 = vmul.f32 %v2225_v7, %v689_v17  ;;  %v163_v45 = vpop.permute.xlu1 %162  ;;  %5366 = vst [vmem:[#allocation19_spill] sm:$0xff] %v3570_v10  ;;  %v3582_v14 = vld [vmem:[#allocation7 + $0xb8] sm:$0xff]  ;;  %v3585_v15 = vld [vmem:[#allocation7 + $0x80] sm:$0xff]  ;;  %v3588_v16 = vld [vmem:[#allocation7 + $0x88] sm:$0xff] }
 0x1e2   :  { %vm164_vm10 = vcmp.eq.s32.totalorder %v163_v45, %v3211_v42  ;;  %5367 = vst [vmem:[#allocation20_spill] sm:$0xff] %v3573_v11  ;;  %v3591_v17 = vld [vmem:[#allocation7 + $0x90] sm:$0xff]  ;;  %v3594_v18 = vld [vmem:[#allocation7 + $0x98] sm:$0xff] }
 0x1e3   :  { %v3437_v22 = vadd.f32 %v703_v19, %v702_v20  ;;  %v691_v23 = vadd.f32 %v2225_v7, %v690_v21  ;;  %5368 = vst [vmem:[#allocation21_spill] sm:$0xff] %v3576_v12  ;;  %v3597_v19 = vld [vmem:[#allocation7 + $0x60] sm:$0xff]  ;;  %v3600_v20 = vld [vmem:[#allocation7 + $0x68] sm:$0xff]  ;;  %v3603_v21 = vld [vmem:[#allocation7 + $0x70] sm:$0xff] }
 0x1e4   :  { %5369 = vst [vmem:[#allocation22_spill] sm:$0xff] %v3579_v13  ;;  %v3630_v45 = vld [vmem:[#allocation7 + $0x38] sm:$0xff] }
 0x1e5   :  { %2228 = vtanh.f32 %v3437_v22  ;;  %v695_v26 = vsel %vm694_vm8, %v2225_v7, %v691_v23  ;;  %v3561_v7 = vld [vmem:[#allocation7 + $0xc0] sm:$0xff]  ;;  %5370 = vst [vmem:[#allocation23_spill] sm:$0xff] %v3582_v14  ;;  %v3606_v23 = vld [vmem:[#allocation7 + $0x78] sm:$0xff] }
 0x1e6   :  { %v700_v29 = vsel %vm697_vm9, %v699_v27, %v695_v26  ;;  %5363 = vst [vmem:[#allocation16_spill] sm:$0xff] %v3561_v7  ;;  %v3615_v26 = vld [vmem:[#allocation7 + $0x50] sm:$0xff]  ;;  %v3618_v27 = vld [vmem:[#allocation7 + $0x58] sm:$0xff] }
 0x1e7   :  { %5371 = vst [vmem:[#allocation24_spill] sm:$0xff] %v3585_v15 }
 0x1e8   :  { %5372 = vst [vmem:[#allocation25_spill] sm:$0xff] %v3588_v16 }
 0x1e9   :  { %5373 = vst [vmem:[#allocation26_spill] sm:$0xff] %v3591_v17 }
 0x1ea   :  { %5374 = vst [vmem:[#allocation27_spill] sm:$0xff] %v3594_v18 }
 0x1eb   :  { %v2229_v28 = vpop.eup %2228  ;;  %5375 = vst [vmem:[#allocation28_spill] sm:$0xff] %v3597_v19 }
 0x1ec   :  { %v706_v30 = vmul.f32 %v2229_v28, %v700_v29  ;;  %5376 = vst [vmem:[#allocation29_spill] sm:$0xff] %v3600_v20  ;;  %v3621_v28 = vld [vmem:[#allocation7 + $0x20] sm:$0xff]  ;;  %v3624_v29 = vld [vmem:[#allocation7 + $0x28] sm:$0xff] }
 0x1ed   :  { %5377 = vst [vmem:[#allocation30_spill] sm:$0xff] %v3603_v21 }
 0x1ee   :  { %723 = vmatmul.f32.vlgmr.msra.gmra.mxu0 %v706_v30  ;;  %743 = vmatmul.f32.vlgmr.msra.gmra.mxu1 %v706_v30  ;;  %5378 = vst [vmem:[#allocation31_spill] sm:$0xff] %v3606_v23 }
 0x1ef   :  { %763 = vmatmul.f32.vlgmr.msra.gmra.mxu2 %v706_v30  ;;  %783 = vmatmul.f32.vlgmr.msra.gmra.mxu3 %v706_v30  ;;  %5381 = vst [vmem:[#allocation34_spill] sm:$0xff] %v3615_v26  ;;  %v3627_v30 = vld [vmem:[#allocation7 + $0x30] sm:$0xff] }
 0x1f0   :  { %930 = vmatpush.msra.mxu0 %v3440_v31  ;;  %950 = vmatpush.msra.mxu1 %v3443_v32  ;;  %5382 = vst [vmem:[#allocation35_spill] sm:$0xff] %v3618_v27 }
 0x1f1   :  { %970 = vmatpush.msra.mxu2 %v3446_v33  ;;  %990 = vmatpush.msra.mxu3 %v3449_v34  ;;  %5383 = vst [vmem:[#allocation36_spill] sm:$0xff] %v3621_v28 }
 0x1f2   :  { %931 = vmatpush.msra.mxu0 %v3452_v35  ;;  %951 = vmatpush.msra.mxu1 %v3455_v36  ;;  %5384 = vst [vmem:[#allocation37_spill] sm:$0xff] %v3624_v29 }
 0x1f3   :  { %971 = vmatpush.msra.mxu2 %v3459_v37  ;;  %991 = vmatpush.msra.mxu3 %v3462_v38  ;;  %5385 = vst [vmem:[#allocation38_spill] sm:$0xff] %v3627_v30 }
 0x1f4   :  { %932 = vmatpush.msra.mxu0 %v3465_v39  ;;  %952 = vmatpush.msra.mxu1 %v3468_v41  ;;  %5386 = vst [vmem:[#allocation39_spill] sm:$0xff] %v3630_v45 }
 0x1f5   :  { %972 = vmatpush.msra.mxu2 %v3471_v43  ;;  %992 = vmatpush.msra.mxu3 %v3474_v50 }
 0x1f6   :  { %2127 = vmatmul.msk.f32.vlgmr.msrb.gmra.mxu0 %vm164_vm10, %v5270_v2  ;;  %2128 = vmatmul.msk.f32.vlgmr.msrb.gmra.mxu1 %vm164_vm10, %v5270_v2 }
 0x1f7   :  { %2129 = vmatmul.msk.f32.vlgmr.msrb.gmra.mxu2 %vm164_vm10, %v5270_v2  ;;  %2130 = vmatmul.msk.f32.vlgmr.msrb.gmra.mxu3 %vm164_vm10, %v5270_v2 }
 0x1f8   :  { %933 = vmatpush.msra.mxu0 %v3489_v62  ;;  %953 = vmatpush.msra.mxu1 %v3492_v61 }
 0x1f9   :  { %973 = vmatpush.msra.mxu2 %v3495_v44  ;;  %993 = vmatpush.msra.mxu3 %v3498_v52 }
 0x1fa   :  { %934 = vmatpush.msra.mxu0 %v3501_v48  ;;  %954 = vmatpush.msra.mxu1 %v3504_v53 }
 0x1fb   :  { %974 = vmatpush.msra.mxu2 %v3507_v58  ;;  %994 = vmatpush.msra.mxu3 %v3510_v47 }
 0x1fc   :  { %935 = vmatpush.msra.mxu0 %v3513_v59  ;;  %955 = vmatpush.msra.mxu1 %v3516_v54 }
 0x1fd   :  { %975 = vmatpush.msra.mxu2 %v3519_v1  ;;  %995 = vmatpush.msra.mxu3 %v3522_v60 }
 0x1fe   :  { %936 = vmatpush.msra.mxu0 %v3525_v56  ;;  %956 = vmatpush.msra.mxu1 %v3528_v63 }
 0x1ff   :  { %976 = vmatpush.msra.mxu2 %v3531_v57  ;;  %996 = vmatpush.msra.mxu3 %v3534_v49 }
 0x200   :  { %937 = vmatpush.msra.mxu0 %v3537_v0  ;;  %957 = vmatpush.msra.mxu1 %v3540_v51 }
 0x201   :  { %977 = vmatpush.msra.mxu2 %v3543_v55  ;;  %997 = vmatpush.msra.mxu3 %v3546_v46 }
 0x202   :  { %938 = vmatpush.msra.mxu0 %v3549_v40  ;;  %958 = vmatpush.msra.mxu1 %v3552_v3 }
 0x203   :  { %978 = vmatpush.msra.mxu2 %v3555_v5  ;;  %998 = vmatpush.msra.mxu3 %v3558_v6 }
 0x204   :  { %939 = vmatpush.msra.mxu0 %v3561_v7  ;;  %959 = vmatpush.msra.mxu1 %v3564_v8 }
 0x205   :  { %979 = vmatpush.msra.mxu2 %v3567_v9  ;;  %999 = vmatpush.msra.mxu3 %v3570_v10 }
 0x206   :  { %940 = vmatpush.msra.mxu0 %v3573_v11  ;;  %960 = vmatpush.msra.mxu1 %v3576_v12 }
 0x207   :  { %980 = vmatpush.msra.mxu2 %v3579_v13  ;;  %1000 = vmatpush.msra.mxu3 %v3582_v14 }
 0x208   :  { %941 = vmatpush.msra.mxu0 %v3585_v15  ;;  %961 = vmatpush.msra.mxu1 %v3588_v16 }
 0x209   :  { %981 = vmatpush.msra.mxu2 %v3591_v17  ;;  %1001 = vmatpush.msra.mxu3 %v3594_v18 }
 0x20a   :  { %942 = vmatpush.msra.mxu0 %v3597_v19  ;;  %962 = vmatpush.msra.mxu1 %v3600_v20 }
 0x20b   :  { %982 = vmatpush.msra.mxu2 %v3603_v21  ;;  %1002 = vmatpush.msra.mxu3 %v3606_v23 }
 0x20c   :  { %943 = vmatpush.msra.mxu0 %v3609_v24  ;;  %963 = vmatpush.msra.mxu1 %v3612_v25 }
 0x20d   :  { %983 = vmatpush.msra.mxu2 %v3615_v26  ;;  %1003 = vmatpush.msra.mxu3 %v3618_v27  ;;  %v3633_v26 = vld [vmem:[#allocation7] sm:$0xff]  ;;  %v3636_v27 = vld [vmem:[#allocation7 + $0x8] sm:$0xff] }
 0x20e   :  { %944 = vmatpush.msra.mxu0 %v3621_v28  ;;  %964 = vmatpush.msra.mxu1 %v3624_v29  ;;  %5387 = vst [vmem:[#allocation40_spill] sm:$0xff] %v3633_v26  ;;  %v3639_v28 = vld [vmem:[#allocation7 + $0x10] sm:$0xff]  ;;  %v3642_v29 = vld [vmem:[#allocation7 + $0x18] sm:$0xff] }
 0x20f   :  { %984 = vmatpush.msra.mxu2 %v3627_v30  ;;  %1004 = vmatpush.msra.mxu3 %v3630_v45  ;;  %5388 = vst [vmem:[#allocation41_spill] sm:$0xff] %v3636_v27  ;;  %v3645_v30 = vld [vmem:[#allocation5 + $0x1e0] sm:$0xff]  ;;  %v3648_v45 = vld [vmem:[#allocation5 + $0x1e8] sm:$0xff] }
 0x210   :  { %945 = vmatpush.msra.mxu0 %v3633_v26  ;;  %965 = vmatpush.msra.mxu1 %v3636_v27  ;;  %5389 = vst [vmem:[#allocation42_spill] sm:$0xff] %v3639_v28  ;;  %v3651_v26 = vld [vmem:[#allocation5 + $0x1f0] sm:$0xff]  ;;  %v3654_v27 = vld [vmem:[#allocation5 + $0x1f8] sm:$0xff] }
 0x211   :  { %985 = vmatpush.msra.mxu2 %v3639_v28  ;;  %5390 = vst [vmem:[#allocation43_spill] sm:$0xff] %v3642_v29  ;;  %1005 = vmatpush.msra.mxu3 %v3642_v29  ;;  %v3657_v28 = vld [vmem:[#allocation5 + $0x1c0] sm:$0xff]  ;;  %v3660_v29 = vld [vmem:[#allocation5 + $0x1c8] sm:$0xff] }
 0x212   :  { %5391 = vst [vmem:[#allocation44_spill] sm:$0xff] %v3645_v30  ;;  %1010 = vmatpush.msrb.mxu0 %v3645_v30  ;;  %1030 = vmatpush.msrb.mxu1 %v3648_v45  ;;  %v3663_v30 = vld [vmem:[#allocation5 + $0x1d0] sm:$0xff] }
 0x213   :  { %5392 = vst [vmem:[#allocation45_spill] sm:$0xff] %v3648_v45  ;;  %1050 = vmatpush.msrb.mxu2 %v3651_v26  ;;  %1070 = vmatpush.msrb.mxu3 %v3654_v27  ;;  %v3666_v45 = vld [vmem:[#allocation5 + $0x1d8] sm:$0xff] }
 0x214   :  { %5393 = vst [vmem:[#allocation46_spill] sm:$0xff] %v3651_v26  ;;  %1011 = vmatpush.msrb.mxu0 %v3657_v28  ;;  %1031 = vmatpush.msrb.mxu1 %v3660_v29  ;;  %v3669_v26 = vld [vmem:[#allocation5 + $0x1a0] sm:$0xff] }
 0x215   :  { %5394 = vst [vmem:[#allocation47_spill] sm:$0xff] %v3654_v27  ;;  %1051 = vmatpush.msrb.mxu2 %v3663_v30  ;;  %1071 = vmatpush.msrb.mxu3 %v3666_v45  ;;  %v3672_v27 = vld [vmem:[#allocation5 + $0x1a8] sm:$0xff] }
 0x216   :  { %5395 = vst [vmem:[#allocation48_spill] sm:$0xff] %v3657_v28  ;;  %1012 = vmatpush.msrb.mxu0 %v3669_v26  ;;  %1032 = vmatpush.msrb.mxu1 %v3672_v27  ;;  %v3675_v28 = vld [vmem:[#allocation5 + $0x1b0] sm:$0xff] }
 0x217   :  { %5396 = vst [vmem:[#allocation49_spill] sm:$0xff] %v3660_v29  ;;  %1052 = vmatpush.msrb.mxu2 %v3675_v28  ;;  %v3678_v29 = vld [vmem:[#allocation5 + $0x1b8] sm:$0xff] }
 0x218   :  { %5397 = vst [vmem:[#allocation50_spill] sm:$0xff] %v3663_v30  ;;  %1072 = vmatpush.msrb.mxu3 %v3678_v29  ;;  %v3681_v30 = vld [vmem:[#allocation5 + $0x180] sm:$0xff] }
 0x219   :  { %5398 = vst [vmem:[#allocation51_spill] sm:$0xff] %v3666_v45  ;;  %1013 = vmatpush.msrb.mxu0 %v3681_v30  ;;  %v3684_v45 = vld [vmem:[#allocation5 + $0x188] sm:$0xff] }
 0x21a   :  { %5399 = vst [vmem:[#allocation52_spill] sm:$0xff] %v3669_v26  ;;  %1033 = vmatpush.msrb.mxu1 %v3684_v45  ;;  %v3687_v26 = vld [vmem:[#allocation5 + $0x190] sm:$0xff] }
 0x21b   :  { %5400 = vst [vmem:[#allocation53_spill] sm:$0xff] %v3672_v27  ;;  %1053 = vmatpush.msrb.mxu2 %v3687_v26  ;;  %v3690_v27 = vld [vmem:[#allocation5 + $0x198] sm:$0xff] }
 0x21c   :  { %5401 = vst [vmem:[#allocation54_spill] sm:$0xff] %v3675_v28  ;;  %1073 = vmatpush.msrb.mxu3 %v3690_v27  ;;  %v3693_v28 = vld [vmem:[#allocation5 + $0x160] sm:$0xff] }
 0x21d   :  { %5402 = vst [vmem:[#allocation55_spill] sm:$0xff] %v3678_v29  ;;  %1014 = vmatpush.msrb.mxu0 %v3693_v28  ;;  %v3696_v29 = vld [vmem:[#allocation5 + $0x168] sm:$0xff] }
 0x21e   :  { %5403 = vst [vmem:[#allocation56_spill] sm:$0xff] %v3681_v30  ;;  %1034 = vmatpush.msrb.mxu1 %v3696_v29  ;;  %v3699_v30 = vld [vmem:[#allocation5 + $0x170] sm:$0xff] }
 0x21f   :  { %5404 = vst [vmem:[#allocation57_spill] sm:$0xff] %v3684_v45  ;;  %1054 = vmatpush.msrb.mxu2 %v3699_v30  ;;  %v3702_v45 = vld [vmem:[#allocation5 + $0x178] sm:$0xff] }
 0x220   :  { %5405 = vst [vmem:[#allocation58_spill] sm:$0xff] %v3687_v26  ;;  %1074 = vmatpush.msrb.mxu3 %v3702_v45  ;;  %v3705_v26 = vld [vmem:[#allocation5 + $0x140] sm:$0xff] }
 0x221   :  { %5406 = vst [vmem:[#allocation59_spill] sm:$0xff] %v3690_v27  ;;  %1015 = vmatpush.msrb.mxu0 %v3705_v26  ;;  %v3708_v27 = vld [vmem:[#allocation5 + $0x148] sm:$0xff] }
 0x222   :  { %5407 = vst [vmem:[#allocation60_spill] sm:$0xff] %v3693_v28  ;;  %1035 = vmatpush.msrb.mxu1 %v3708_v27  ;;  %v3711_v28 = vld [vmem:[#allocation5 + $0x150] sm:$0xff] }
 0x223   :  { %5408 = vst [vmem:[#allocation61_spill] sm:$0xff] %v3696_v29  ;;  %1055 = vmatpush.msrb.mxu2 %v3711_v28  ;;  %v3714_v29 = vld [vmem:[#allocation5 + $0x158] sm:$0xff] }
 0x224   :  { %5409 = vst [vmem:[#allocation62_spill] sm:$0xff] %v3699_v30  ;;  %1075 = vmatpush.msrb.mxu3 %v3714_v29  ;;  %v3717_v30 = vld [vmem:[#allocation5 + $0x120] sm:$0xff] }
 0x225   :  { %5410 = vst [vmem:[#allocation63_spill] sm:$0xff] %v3702_v45  ;;  %1016 = vmatpush.msrb.mxu0 %v3717_v30  ;;  %v3720_v45 = vld [vmem:[#allocation5 + $0x128] sm:$0xff] }
 0x226   :  { %5411 = vst [vmem:[#allocation64_spill] sm:$0xff] %v3705_v26  ;;  %1036 = vmatpush.msrb.mxu1 %v3720_v45  ;;  %v3723_v26 = vld [vmem:[#allocation5 + $0x130] sm:$0xff] }
 0x227   :  { %5412 = vst [vmem:[#allocation65_spill] sm:$0xff] %v3708_v27  ;;  %1056 = vmatpush.msrb.mxu2 %v3723_v26  ;;  %v3726_v27 = vld [vmem:[#allocation5 + $0x138] sm:$0xff] }
 0x228   :  { %5413 = vst [vmem:[#allocation66_spill] sm:$0xff] %v3711_v28  ;;  %1076 = vmatpush.msrb.mxu3 %v3726_v27  ;;  %v3729_v28 = vld [vmem:[#allocation5 + $0x100] sm:$0xff] }
 0x229   :  { %5414 = vst [vmem:[#allocation67_spill] sm:$0xff] %v3714_v29  ;;  %1017 = vmatpush.msrb.mxu0 %v3729_v28  ;;  %v3732_v29 = vld [vmem:[#allocation5 + $0x108] sm:$0xff] }
 0x22a   :  { %5415 = vst [vmem:[#allocation68_spill] sm:$0xff] %v3717_v30  ;;  %1037 = vmatpush.msrb.mxu1 %v3732_v29  ;;  %v3735_v30 = vld [vmem:[#allocation5 + $0x110] sm:$0xff] }
 0x22b   :  { %5416 = vst [vmem:[#allocation69_spill] sm:$0xff] %v3720_v45  ;;  %1057 = vmatpush.msrb.mxu2 %v3735_v30  ;;  %v3738_v45 = vld [vmem:[#allocation5 + $0x118] sm:$0xff] }
 0x22c   :  { %5417 = vst [vmem:[#allocation70_spill] sm:$0xff] %v3723_v26  ;;  %1077 = vmatpush.msrb.mxu3 %v3738_v45  ;;  %v3741_v26 = vld [vmem:[#allocation5 + $0xe0] sm:$0xff] }
 0x22d   :  { %5418 = vst [vmem:[#allocation71_spill] sm:$0xff] %v3726_v27  ;;  %1018 = vmatpush.msrb.mxu0 %v3741_v26  ;;  %v3744_v27 = vld [vmem:[#allocation5 + $0xe8] sm:$0xff] }
 0x22e   :  { %5419 = vst [vmem:[#allocation72_spill] sm:$0xff] %v3729_v28  ;;  %1038 = vmatpush.msrb.mxu1 %v3744_v27  ;;  %v3747_v28 = vld [vmem:[#allocation5 + $0xf0] sm:$0xff] }
 0x22f   :  { %5420 = vst [vmem:[#allocation73_spill] sm:$0xff] %v3732_v29  ;;  %1058 = vmatpush.msrb.mxu2 %v3747_v28  ;;  %v3750_v29 = vld [vmem:[#allocation5 + $0xf8] sm:$0xff] }
 0x230   :  { %5421 = vst [vmem:[#allocation74_spill] sm:$0xff] %v3735_v30  ;;  %1078 = vmatpush.msrb.mxu3 %v3750_v29  ;;  %v3753_v30 = vld [vmem:[#allocation5 + $0xc0] sm:$0xff] }
 0x231   :  { %5422 = vst [vmem:[#allocation75_spill] sm:$0xff] %v3738_v45  ;;  %1019 = vmatpush.msrb.mxu0 %v3753_v30  ;;  %v3756_v45 = vld [vmem:[#allocation5 + $0xc8] sm:$0xff] }
 0x232   :  { %5423 = vst [vmem:[#allocation76_spill] sm:$0xff] %v3741_v26  ;;  %1039 = vmatpush.msrb.mxu1 %v3756_v45  ;;  %v3759_v26 = vld [vmem:[#allocation5 + $0xd0] sm:$0xff] }
 0x233   :  { %5424 = vst [vmem:[#allocation77_spill] sm:$0xff] %v3744_v27  ;;  %1059 = vmatpush.msrb.mxu2 %v3759_v26  ;;  %v3762_v27 = vld [vmem:[#allocation5 + $0xd8] sm:$0xff] }
 0x234   :  { %5425 = vst [vmem:[#allocation78_spill] sm:$0xff] %v3747_v28  ;;  %1079 = vmatpush.msrb.mxu3 %v3762_v27  ;;  %v3765_v28 = vld [vmem:[#allocation5 + $0xa0] sm:$0xff] }
 0x235   :  { %5426 = vst [vmem:[#allocation79_spill] sm:$0xff] %v3750_v29  ;;  %1020 = vmatpush.msrb.mxu0 %v3765_v28  ;;  %v3768_v29 = vld [vmem:[#allocation5 + $0xa8] sm:$0xff] }
 0x236   :  { %5427 = vst [vmem:[#allocation80_spill] sm:$0xff] %v3753_v30  ;;  %1040 = vmatpush.msrb.mxu1 %v3768_v29  ;;  %v3771_v30 = vld [vmem:[#allocation5 + $0xb0] sm:$0xff] }
 0x237   :  { %5428 = vst [vmem:[#allocation81_spill] sm:$0xff] %v3756_v45  ;;  %1060 = vmatpush.msrb.mxu2 %v3771_v30  ;;  %v3774_v45 = vld [vmem:[#allocation5 + $0xb8] sm:$0xff] }
 0x238   :  { %5429 = vst [vmem:[#allocation82_spill] sm:$0xff] %v3759_v26  ;;  %1080 = vmatpush.msrb.mxu3 %v3774_v45  ;;  %v3777_v26 = vld [vmem:[#allocation5 + $0x80] sm:$0xff] }
 0x239   :  { %5430 = vst [vmem:[#allocation83_spill] sm:$0xff] %v3762_v27  ;;  %1021 = vmatpush.msrb.mxu0 %v3777_v26  ;;  %v3780_v27 = vld [vmem:[#allocation5 + $0x88] sm:$0xff] }
 0x23a   :  { %5431 = vst [vmem:[#allocation84_spill] sm:$0xff] %v3765_v28  ;;  %1041 = vmatpush.msrb.mxu1 %v3780_v27  ;;  %v3783_v28 = vld [vmem:[#allocation5 + $0x90] sm:$0xff] }
 0x23b   :  { %5432 = vst [vmem:[#allocation85_spill] sm:$0xff] %v3768_v29  ;;  %1061 = vmatpush.msrb.mxu2 %v3783_v28  ;;  %v3786_v29 = vld [vmem:[#allocation5 + $0x98] sm:$0xff] }
 0x23c   :  { %5433 = vst [vmem:[#allocation86_spill] sm:$0xff] %v3771_v30  ;;  %1081 = vmatpush.msrb.mxu3 %v3786_v29  ;;  %v3789_v30 = vld [vmem:[#allocation5 + $0x60] sm:$0xff] }
 0x23d   :  { %5434 = vst [vmem:[#allocation87_spill] sm:$0xff] %v3774_v45  ;;  %1022 = vmatpush.msrb.mxu0 %v3789_v30  ;;  %v3792_v45 = vld [vmem:[#allocation5 + $0x68] sm:$0xff] }
 0x23e   :  { %5435 = vst [vmem:[#allocation88_spill] sm:$0xff] %v3777_v26  ;;  %1042 = vmatpush.msrb.mxu1 %v3792_v45  ;;  %v3795_v26 = vld [vmem:[#allocation5 + $0x70] sm:$0xff] }
 0x23f   :  { %5436 = vst [vmem:[#allocation89_spill] sm:$0xff] %v3780_v27  ;;  %1062 = vmatpush.msrb.mxu2 %v3795_v26  ;;  %v3798_v27 = vld [vmem:[#allocation5 + $0x78] sm:$0xff] }
 0x240   :  { %5437 = vst [vmem:[#allocation90_spill] sm:$0xff] %v3783_v28  ;;  %1082 = vmatpush.msrb.mxu3 %v3798_v27  ;;  %v3801_v28 = vld [vmem:[#allocation5 + $0x40] sm:$0xff] }
 0x241   :  { %5438 = vst [vmem:[#allocation91_spill] sm:$0xff] %v3786_v29  ;;  %1023 = vmatpush.msrb.mxu0 %v3801_v28  ;;  %v3804_v29 = vld [vmem:[#allocation5 + $0x48] sm:$0xff] }
 0x242   :  { %5439 = vst [vmem:[#allocation92_spill] sm:$0xff] %v3789_v30  ;;  %1043 = vmatpush.msrb.mxu1 %v3804_v29  ;;  %v3807_v30 = vld [vmem:[#allocation5 + $0x50] sm:$0xff] }
 0x243   :  { %5440 = vst [vmem:[#allocation93_spill] sm:$0xff] %v3792_v45  ;;  %1063 = vmatpush.msrb.mxu2 %v3807_v30  ;;  %v3810_v45 = vld [vmem:[#allocation5 + $0x58] sm:$0xff] }
 0x244   :  { %5441 = vst [vmem:[#allocation94_spill] sm:$0xff] %v3795_v26  ;;  %1083 = vmatpush.msrb.mxu3 %v3810_v45  ;;  %v3813_v26 = vld [vmem:[#allocation5 + $0x20] sm:$0xff] }
 0x245   :  { %5442 = vst [vmem:[#allocation95_spill] sm:$0xff] %v3798_v27  ;;  %1024 = vmatpush.msrb.mxu0 %v3813_v26  ;;  %v3816_v27 = vld [vmem:[#allocation5 + $0x28] sm:$0xff] }
 0x246   :  { %5443 = vst [vmem:[#allocation96_spill] sm:$0xff] %v3801_v28  ;;  %1044 = vmatpush.msrb.mxu1 %v3816_v27  ;;  %v3819_v28 = vld [vmem:[#allocation5 + $0x30] sm:$0xff] }
 0x247   :  { %5444 = vst [vmem:[#allocation97_spill] sm:$0xff] %v3804_v29  ;;  %1064 = vmatpush.msrb.mxu2 %v3819_v28  ;;  %v3822_v29 = vld [vmem:[#allocation5 + $0x38] sm:$0xff] }
 0x248   :  { %5445 = vst [vmem:[#allocation98_spill] sm:$0xff] %v3807_v30  ;;  %1084 = vmatpush.msrb.mxu3 %v3822_v29  ;;  %v3825_v30 = vld [vmem:[#allocation5] sm:$0xff] }
 0x249   :  { %5446 = vst [vmem:[#allocation99_spill] sm:$0xff] %v3810_v45  ;;  %1025 = vmatpush.msrb.mxu0 %v3825_v30  ;;  %v3828_v45 = vld [vmem:[#allocation5 + $0x8] sm:$0xff] }
 0x24a   :  { %5447 = vst [vmem:[#allocation100_spill] sm:$0xff] %v3813_v26  ;;  %1045 = vmatpush.msrb.mxu1 %v3828_v45  ;;  %v3831_v26 = vld [vmem:[#allocation5 + $0x10] sm:$0xff] }
 0x24b   :  { %5448 = vst [vmem:[#allocation101_spill] sm:$0xff] %v3816_v27  ;;  %1065 = vmatpush.msrb.mxu2 %v3831_v26  ;;  %v3834_v27 = vld [vmem:[#allocation5 + $0x18] sm:$0xff] }
 0x24c   :  { %5449 = vst [vmem:[#allocation102_spill] sm:$0xff] %v3819_v28  ;;  %1085 = vmatpush.msrb.mxu3 %v3834_v27 }
 0x24d   :  { %5450 = vst [vmem:[#allocation103_spill] sm:$0xff] %v3822_v29 }
 0x24e   :  { %5451 = vst [vmem:[#allocation104_spill] sm:$0xff] %v3825_v30 }
 0x24f   :  { %5452 = vst [vmem:[#allocation105_spill] sm:$0xff] %v3828_v45 }
 0x250   :  { %5453 = vst [vmem:[#allocation106_spill] sm:$0xff] %v3831_v26 }
 0x251   :  { %5454 = vst [vmem:[#allocation107_spill] sm:$0xff] %v3834_v27 }
 0x26b   :  { %v724_v28 = vpop.f32.mrf.mxu0  ;;  %v744_v25 = vpop.f32.mrf.mxu1 }
 0x272   :  { %v784_v24 = vpop.f32.mrf.mxu3  ;;  %v764_v45 = vpop.f32.mrf.mxu2 }
 0x273   :  { %v804_v29 = vpop.f32.mrf.mxu0  ;;  %v824_v23 = vpop.f32.mrf.mxu1 }
 0x274   :  { %v805_v21 = vadd.f32 %v804_v29, %v724_v28  ;;  %v825_v20 = vadd.f32 %v824_v23, %v744_v25 }
 0x276   :  { %v2131_v30 = vmul.f32 -1.442695, %v805_v21  ;;  %v2132_v19 = vmul.f32 -1.442695, %v825_v20 }
 0x278   :  { %2230 = vpow2.f32 %v2131_v30 }
 0x279   :  { %2232 = vpow2.f32 %v2132_v19 }
 0x27a   :  { %v864_v18 = vpop.f32.mrf.mxu3  ;;  %v844_v13 = vpop.f32.mrf.mxu2 }
 0x27b   :  { %v865_v17 = vadd.f32 %v864_v18, %v784_v24  ;;  %v845_v23 = vadd.f32 %v844_v13, %v764_v45 }
 0x27d   :  { %v2133_v16 = vmul.f32 -1.442695, %v865_v17  ;;  %v2726_v17 = vmov 4  }
 0x27e   :  { %v2231_v26 = vpop.eup %2230  ;;  %2192 = vset.pattern.permute.xlu2 %v2726_v17 }
 0x27f   :  { %v2233_v15 = vpop.eup %2232  ;;  %v870_v14 = vadd.f32 1.0, %v2231_v26  ;;  %2234 = vpow2.f32 %v2133_v16  ;;  %174 = vperm.xlu2 %2192, %v3433_v4  }
 0x280   :  { %v889_v27 = vadd.f32 1.0, %v2233_v15 }
 0x281   :  { %2236 = vrcp.f32 %v870_v14  ;;  %v882_v18 = vand.u32 2147483648, %v870_v14  ;;  %v880_v15 = vand.u32 2147483647, %v870_v14  ;;  %vm876_vm13 = vweird.f32 %v870_v14 }
 0x282   :  { %2238 = vrcp.f32 %v889_v27  ;;  %v901_v24 = vand.u32 2147483648, %v889_v27  ;;  %vm895_vm14 = vweird.f32 %v889_v27 }
 0x283   :  { %v883_v45 = vor.u32 1.1754944e-38, %v882_v18  ;;  %vm881_vm1 = vcmp.eq.f32.partialorder %v880_v15, 8.507059e+37 }
 0x285   :  { %v2235_v12 = vpop.eup %2234 }
 0x286   :  { %v909_v11 = vadd.f32 1.0, %v2235_v12  ;;  %v899_v12 = vand.u32 2147483647, %v889_v27 }
 0x287   :  { %v2237_v28 = vpop.eup %2236 }
 0x288   :  { %v2239_v21 = vpop.eup %2238  ;;  %v872_v20 = vmul.f32 %v2237_v28, %v870_v14  ;;  %2240 = vrcp.f32 %v909_v11  ;;  %vm877_vm11 = vweird.f32 %v2237_v28  ;;  %vm900_vm2 = vcmp.eq.f32.partialorder %v899_v12, 8.507059e+37  ;;  %v5460_v12 = vld [vmem:[#allocation21_spill] sm:$0xff] }
 0x289   :  { %v891_v19 = vmul.f32 %v2239_v21, %v889_v27  ;;  %2242 = vtanh.f32 %v845_v23  ;;  %vm896_vm12 = vweird.f32 %v2239_v21  ;;  %vm878_vm15 = vmor %vm876_vm13, %vm877_vm11  ;;  %v902_v23 = vor.u32 1.1754944e-38, %v901_v24 }
 0x28a   :  { %v873_v25 = vsub.f32 1.0, %v872_v20  ;;  %vm897_vm0 = vmor %vm895_vm14, %vm896_vm12  ;;  %v921_v18 = vand.u32 2147483648, %v909_v11  ;;  %vm915_vm4 = vweird.f32 %v909_v11 }
 0x28b   :  { %v892_v29 = vsub.f32 1.0, %v891_v19 }
 0x28c   :  { %v874_v16 = vmul.f32 %v2237_v28, %v873_v25  ;;  %v922_v15 = vor.u32 1.1754944e-38, %v921_v18  ;;  %v5472_v18 = vld [vmem:[#allocation33_spill] sm:$0xff] }
 0x28d   :  { %v893_v26 = vmul.f32 %v2239_v21, %v892_v29 }
 0x28e   :  { %v2241_v13 = vpop.eup %2240  ;;  %v875_v30 = vadd.f32 %v2237_v28, %v874_v16 }
 0x28f   :  { %v894_v20 = vadd.f32 %v2239_v21, %v893_v26  ;;  %v911_v19 = vmul.f32 %v2241_v13, %v909_v11  ;;  %v2243_v25 = vpop.eup %2242  ;;  %vm916_vm3 = vweird.f32 %v2241_v13 }
 0x290   :  { %v879_v17 = vsel %vm878_vm15, %v2237_v28, %v875_v30  ;;  %v919_v28 = vand.u32 2147483647, %v909_v11  ;;  %vm917_vm5 = vmor %vm915_vm4, %vm916_vm3  ;;  %v5459_v11 = vld [vmem:[#allocation20_spill] sm:$0xff]  ;;  %v5462_v30 = vld [vmem:[#allocation23_spill] sm:$0xff] }
 0x291   :  { %v884_v10 = vsel %vm881_vm1, %v883_v45, %v879_v17  ;;  %v898_v9 = vsel %vm897_vm0, %v2239_v21, %v894_v20  ;;  %v912_v4 = vsub.f32 1.0, %v911_v19  ;;  %v5463_v45 = vld [vmem:[#allocation24_spill] sm:$0xff]  ;;  %v5464_v20 = vld [vmem:[#allocation25_spill] sm:$0xff]  ;;  %v5465_v19 = vld [vmem:[#allocation26_spill] sm:$0xff] }
 0x292   :  { %v903_v29 = vsel %vm900_vm2, %v902_v23, %v898_v9  ;;  %v926_v8 = vmul.f32 %v2243_v25, %v884_v10  ;;  %vm920_vm6 = vcmp.eq.f32.partialorder %v919_v28, 8.507059e+37  ;;  %v5458_v10 = vld [vmem:[#allocation19_spill] sm:$0xff]  ;;  %v5467_v17 = vld [vmem:[#allocation28_spill] sm:$0xff]  ;;  %v5468_v25 = vld [vmem:[#allocation29_spill] sm:$0xff] }
 0x293   :  { %v925_v7 = vmul.f32 %v903_v29, %v3437_v22  ;;  %v913_v16 = vmul.f32 %v2241_v13, %v912_v4  ;;  %v169_v4 = vpop.permute.xlu1 %168  ;;  %v5455_v22 = vld [vmem:[#allocation16_spill] sm:$0xff]  ;;  %v5466_v23 = vld [vmem:[#allocation27_spill] sm:$0xff]  ;;  %v5469_v29 = vld [vmem:[#allocation30_spill] sm:$0xff] }
 0x294   :  { %vm170_vm7 = vcmp.eq.s32.totalorder %v169_v4, %v3211_v42  ;;  %v5473_v28 = vld [vmem:[#allocation34_spill] sm:$0xff]  ;;  %v5479_v4 = vld [vmem:[#allocation40_spill] sm:$0xff] }
 0x295   :  { %v3839_v14 = vadd.f32 %v926_v8, %v925_v7  ;;  %v914_v27 = vadd.f32 %v2241_v13, %v913_v16  ;;  %v5456_v7 = vld [vmem:[#allocation17_spill] sm:$0xff]  ;;  %v5457_v8 = vld [vmem:[#allocation18_spill] sm:$0xff]  ;;  %v5470_v16 = vld [vmem:[#allocation31_spill] sm:$0xff] }
 0x297   :  { %2244 = vtanh.f32 %v3839_v14  ;;  %v918_v24 = vsel %vm917_vm5, %v2241_v13, %v914_v27  ;;  %v5461_v13 = vld [vmem:[#allocation22_spill] sm:$0xff]  ;;  %v5471_v27 = vld [vmem:[#allocation32_spill] sm:$0xff] }
 0x298   :  { %v923_v26 = vsel %vm920_vm6, %v922_v15, %v918_v24  ;;  %v5474_v24 = vld [vmem:[#allocation35_spill] sm:$0xff]  ;;  %v5475_v15 = vld [vmem:[#allocation36_spill] sm:$0xff] }
 0x29d   :  { %v2245_v21 = vpop.eup %2244 }
 0x29e   :  { %v929_v9 = vmul.f32 %v2245_v21, %v923_v26  ;;  %v5476_v21 = vld [vmem:[#allocation37_spill] sm:$0xff]  ;;  %v5477_v26 = vld [vmem:[#allocation38_spill] sm:$0xff] }
 0x2a0   :  { %946 = vmatmul.f32.vlgmr.msra.gmra.mxu0 %v929_v9  ;;  %966 = vmatmul.f32.vlgmr.msra.gmra.mxu1 %v929_v9 }
 0x2a1   :  { %986 = vmatmul.f32.vlgmr.msra.gmra.mxu2 %v929_v9  ;;  %1006 = vmatmul.f32.vlgmr.msra.gmra.mxu3 %v929_v9  ;;  %v5478_v9 = vld [vmem:[#allocation39_spill] sm:$0xff] }
 0x2a2   :  { %1153 = vmatpush.msra.mxu0 %v3440_v31  ;;  %1173 = vmatpush.msra.mxu1 %v3443_v32 }
 0x2a3   :  { %1193 = vmatpush.msra.mxu2 %v3446_v33  ;;  %1213 = vmatpush.msra.mxu3 %v3449_v34 }
 0x2a4   :  { %1154 = vmatpush.msra.mxu0 %v3452_v35  ;;  %1174 = vmatpush.msra.mxu1 %v3455_v36 }
 0x2a5   :  { %1194 = vmatpush.msra.mxu2 %v3459_v37  ;;  %1214 = vmatpush.msra.mxu3 %v3462_v38 }
 0x2a6   :  { %1155 = vmatpush.msra.mxu0 %v3465_v39  ;;  %1175 = vmatpush.msra.mxu1 %v3468_v41 }
 0x2a7   :  { %1195 = vmatpush.msra.mxu2 %v3471_v43  ;;  %1215 = vmatpush.msra.mxu3 %v3474_v50 }
 0x2a8   :  { %2134 = vmatmul.msk.f32.vlgmr.msrb.gmra.mxu0 %vm170_vm7, %v5270_v2  ;;  %2135 = vmatmul.msk.f32.vlgmr.msrb.gmra.mxu1 %vm170_vm7, %v5270_v2 }
 0x2a9   :  { %2136 = vmatmul.msk.f32.vlgmr.msrb.gmra.mxu2 %vm170_vm7, %v5270_v2  ;;  %2137 = vmatmul.msk.f32.vlgmr.msrb.gmra.mxu3 %vm170_vm7, %v5270_v2 }
 0x2aa   :  { %1156 = vmatpush.msra.mxu0 %v3489_v62  ;;  %1176 = vmatpush.msra.mxu1 %v3492_v61 }
 0x2ab   :  { %1196 = vmatpush.msra.mxu2 %v3495_v44  ;;  %1216 = vmatpush.msra.mxu3 %v3498_v52 }
 0x2ac   :  { %1157 = vmatpush.msra.mxu0 %v3501_v48  ;;  %1177 = vmatpush.msra.mxu1 %v3504_v53 }
 0x2ad   :  { %1197 = vmatpush.msra.mxu2 %v3507_v58  ;;  %1217 = vmatpush.msra.mxu3 %v3510_v47 }
 0x2ae   :  { %1158 = vmatpush.msra.mxu0 %v3513_v59  ;;  %1178 = vmatpush.msra.mxu1 %v3516_v54 }
 0x2af   :  { %1198 = vmatpush.msra.mxu2 %v3519_v1  ;;  %1218 = vmatpush.msra.mxu3 %v3522_v60 }
 0x2b0   :  { %1159 = vmatpush.msra.mxu0 %v3525_v56  ;;  %1179 = vmatpush.msra.mxu1 %v3528_v63 }
 0x2b1   :  { %1199 = vmatpush.msra.mxu2 %v3531_v57  ;;  %1219 = vmatpush.msra.mxu3 %v3534_v49 }
 0x2b2   :  { %1160 = vmatpush.msra.mxu0 %v3537_v0  ;;  %1180 = vmatpush.msra.mxu1 %v3540_v51 }
 0x2b3   :  { %1200 = vmatpush.msra.mxu2 %v3543_v55  ;;  %1220 = vmatpush.msra.mxu3 %v3546_v46 }
 0x2b4   :  { %1161 = vmatpush.msra.mxu0 %v3549_v40  ;;  %1181 = vmatpush.msra.mxu1 %v3552_v3 }
 0x2b5   :  { %1201 = vmatpush.msra.mxu2 %v3555_v5  ;;  %1221 = vmatpush.msra.mxu3 %v3558_v6 }
 0x2b6   :  { %1162 = vmatpush.msra.mxu0 %v5455_v22  ;;  %1182 = vmatpush.msra.mxu1 %v5456_v7 }
 0x2b7   :  { %1202 = vmatpush.msra.mxu2 %v5457_v8  ;;  %1222 = vmatpush.msra.mxu3 %v5458_v10 }
 0x2b8   :  { %1163 = vmatpush.msra.mxu0 %v5459_v11  ;;  %1183 = vmatpush.msra.mxu1 %v5460_v12 }
 0x2b9   :  { %1203 = vmatpush.msra.mxu2 %v5461_v13  ;;  %1223 = vmatpush.msra.mxu3 %v5462_v30 }
 0x2ba   :  { %1164 = vmatpush.msra.mxu0 %v5463_v45  ;;  %1184 = vmatpush.msra.mxu1 %v5464_v20 }
 0x2bb   :  { %1204 = vmatpush.msra.mxu2 %v5465_v19  ;;  %1224 = vmatpush.msra.mxu3 %v5466_v23 }
 0x2bc   :  { %1165 = vmatpush.msra.mxu0 %v5467_v17  ;;  %1185 = vmatpush.msra.mxu1 %v5468_v25 }
 0x2bd   :  { %1205 = vmatpush.msra.mxu2 %v5469_v29  ;;  %1225 = vmatpush.msra.mxu3 %v5470_v16  ;;  %v5480_v29 = vld [vmem:[#allocation41_spill] sm:$0xff]  ;;  %v5481_v16 = vld [vmem:[#allocation42_spill] sm:$0xff] }
 0x2be   :  { %1166 = vmatpush.msra.mxu0 %v5471_v27  ;;  %1186 = vmatpush.msra.mxu1 %v5472_v18  ;;  %v5482_v27 = vld [vmem:[#allocation43_spill] sm:$0xff]  ;;  %v5483_v18 = vld [vmem:[#allocation44_spill] sm:$0xff] }
 0x2bf   :  { %1206 = vmatpush.msra.mxu2 %v5473_v28  ;;  %1226 = vmatpush.msra.mxu3 %v5474_v24  ;;  %v5484_v28 = vld [vmem:[#allocation45_spill] sm:$0xff]  ;;  %v5485_v24 = vld [vmem:[#allocation46_spill] sm:$0xff] }
 0x2c0   :  { %1167 = vmatpush.msra.mxu0 %v5475_v15  ;;  %1187 = vmatpush.msra.mxu1 %v5476_v21  ;;  %v5486_v15 = vld [vmem:[#allocation47_spill] sm:$0xff]  ;;  %v5487_v21 = vld [vmem:[#allocation48_spill] sm:$0xff] }
 0x2c1   :  { %1207 = vmatpush.msra.mxu2 %v5477_v26  ;;  %1227 = vmatpush.msra.mxu3 %v5478_v9  ;;  %v5488_v26 = vld [vmem:[#allocation49_spill] sm:$0xff]  ;;  %v5489_v9 = vld [vmem:[#allocation50_spill] sm:$0xff] }
 0x2c2   :  { %1168 = vmatpush.msra.mxu0 %v5479_v4  ;;  %1188 = vmatpush.msra.mxu1 %v5480_v29  ;;  %v5490_v4 = vld [vmem:[#allocation51_spill] sm:$0xff]  ;;  %v5491_v29 = vld [vmem:[#allocation52_spill] sm:$0xff] }
 0x2c3   :  { %1208 = vmatpush.msra.mxu2 %v5481_v16  ;;  %1228 = vmatpush.msra.mxu3 %v5482_v27  ;;  %v5492_v16 = vld [vmem:[#allocation53_spill] sm:$0xff]  ;;  %v5493_v27 = vld [vmem:[#allocation54_spill] sm:$0xff] }
 0x2c4   :  { %1233 = vmatpush.msrb.mxu0 %v5483_v18  ;;  %1253 = vmatpush.msrb.mxu1 %v5484_v28  ;;  %v5494_v18 = vld [vmem:[#allocation55_spill] sm:$0xff]  ;;  %v5495_v28 = vld [vmem:[#allocation56_spill] sm:$0xff] }
 0x2c5   :  { %1273 = vmatpush.msrb.mxu2 %v5485_v24  ;;  %1293 = vmatpush.msrb.mxu3 %v5486_v15  ;;  %v5496_v24 = vld [vmem:[#allocation57_spill] sm:$0xff]  ;;  %v5497_v15 = vld [vmem:[#allocation58_spill] sm:$0xff] }
 0x2c6   :  { %1234 = vmatpush.msrb.mxu0 %v5487_v21  ;;  %1254 = vmatpush.msrb.mxu1 %v5488_v26  ;;  %v5498_v21 = vld [vmem:[#allocation59_spill] sm:$0xff]  ;;  %v5499_v26 = vld [vmem:[#allocation60_spill] sm:$0xff] }
 0x2c7   :  { %1274 = vmatpush.msrb.mxu2 %v5489_v9  ;;  %1294 = vmatpush.msrb.mxu3 %v5490_v4  ;;  %v5500_v9 = vld [vmem:[#allocation61_spill] sm:$0xff]  ;;  %v5501_v4 = vld [vmem:[#allocation62_spill] sm:$0xff] }
 0x2c8   :  { %1235 = vmatpush.msrb.mxu0 %v5491_v29  ;;  %1255 = vmatpush.msrb.mxu1 %v5492_v16  ;;  %v5502_v29 = vld [vmem:[#allocation63_spill] sm:$0xff]  ;;  %v5503_v16 = vld [vmem:[#allocation64_spill] sm:$0xff] }
 0x2c9   :  { %1275 = vmatpush.msrb.mxu2 %v5493_v27  ;;  %1295 = vmatpush.msrb.mxu3 %v5494_v18  ;;  %v5504_v27 = vld [vmem:[#allocation65_spill] sm:$0xff]  ;;  %v5505_v18 = vld [vmem:[#allocation66_spill] sm:$0xff] }
 0x2ca   :  { %1236 = vmatpush.msrb.mxu0 %v5495_v28  ;;  %1256 = vmatpush.msrb.mxu1 %v5496_v24  ;;  %v5506_v28 = vld [vmem:[#allocation67_spill] sm:$0xff]  ;;  %v5507_v24 = vld [vmem:[#allocation68_spill] sm:$0xff] }
 0x2cb   :  { %1276 = vmatpush.msrb.mxu2 %v5497_v15  ;;  %1296 = vmatpush.msrb.mxu3 %v5498_v21  ;;  %v5508_v15 = vld [vmem:[#allocation69_spill] sm:$0xff]  ;;  %v5509_v21 = vld [vmem:[#allocation70_spill] sm:$0xff] }
 0x2cc   :  { %1237 = vmatpush.msrb.mxu0 %v5499_v26  ;;  %1257 = vmatpush.msrb.mxu1 %v5500_v9  ;;  %v5510_v26 = vld [vmem:[#allocation71_spill] sm:$0xff]  ;;  %v5511_v9 = vld [vmem:[#allocation72_spill] sm:$0xff] }
 0x2cd   :  { %1277 = vmatpush.msrb.mxu2 %v5501_v4  ;;  %1297 = vmatpush.msrb.mxu3 %v5502_v29  ;;  %v5512_v4 = vld [vmem:[#allocation73_spill] sm:$0xff]  ;;  %v5513_v29 = vld [vmem:[#allocation74_spill] sm:$0xff] }
 0x2ce   :  { %1238 = vmatpush.msrb.mxu0 %v5503_v16  ;;  %1258 = vmatpush.msrb.mxu1 %v5504_v27  ;;  %v5514_v16 = vld [vmem:[#allocation75_spill] sm:$0xff]  ;;  %v5515_v27 = vld [vmem:[#allocation76_spill] sm:$0xff] }
 0x2cf   :  { %1278 = vmatpush.msrb.mxu2 %v5505_v18  ;;  %1298 = vmatpush.msrb.mxu3 %v5506_v28  ;;  %v5516_v18 = vld [vmem:[#allocation77_spill] sm:$0xff]  ;;  %v5517_v28 = vld [vmem:[#allocation78_spill] sm:$0xff] }
 0x2d0   :  { %1239 = vmatpush.msrb.mxu0 %v5507_v24  ;;  %1259 = vmatpush.msrb.mxu1 %v5508_v15  ;;  %v5518_v24 = vld [vmem:[#allocation79_spill] sm:$0xff]  ;;  %v5519_v15 = vld [vmem:[#allocation80_spill] sm:$0xff] }
 0x2d1   :  { %1279 = vmatpush.msrb.mxu2 %v5509_v21  ;;  %1299 = vmatpush.msrb.mxu3 %v5510_v26  ;;  %v5520_v21 = vld [vmem:[#allocation81_spill] sm:$0xff]  ;;  %v5521_v26 = vld [vmem:[#allocation82_spill] sm:$0xff] }
 0x2d2   :  { %1240 = vmatpush.msrb.mxu0 %v5511_v9  ;;  %1260 = vmatpush.msrb.mxu1 %v5512_v4  ;;  %v5522_v9 = vld [vmem:[#allocation83_spill] sm:$0xff]  ;;  %v5523_v4 = vld [vmem:[#allocation84_spill] sm:$0xff] }
 0x2d3   :  { %1280 = vmatpush.msrb.mxu2 %v5513_v29  ;;  %1300 = vmatpush.msrb.mxu3 %v5514_v16  ;;  %v5524_v29 = vld [vmem:[#allocation85_spill] sm:$0xff]  ;;  %v5525_v16 = vld [vmem:[#allocation86_spill] sm:$0xff] }
 0x2d4   :  { %1241 = vmatpush.msrb.mxu0 %v5515_v27  ;;  %1261 = vmatpush.msrb.mxu1 %v5516_v18  ;;  %v5526_v27 = vld [vmem:[#allocation87_spill] sm:$0xff]  ;;  %v5527_v18 = vld [vmem:[#allocation88_spill] sm:$0xff] }
 0x2d5   :  { %1281 = vmatpush.msrb.mxu2 %v5517_v28  ;;  %1301 = vmatpush.msrb.mxu3 %v5518_v24  ;;  %v5528_v28 = vld [vmem:[#allocation89_spill] sm:$0xff]  ;;  %v5529_v24 = vld [vmem:[#allocation90_spill] sm:$0xff] }
 0x2d6   :  { %1242 = vmatpush.msrb.mxu0 %v5519_v15  ;;  %1262 = vmatpush.msrb.mxu1 %v5520_v21  ;;  %v5530_v15 = vld [vmem:[#allocation91_spill] sm:$0xff]  ;;  %v5531_v21 = vld [vmem:[#allocation92_spill] sm:$0xff] }
 0x2d7   :  { %1282 = vmatpush.msrb.mxu2 %v5521_v26  ;;  %1302 = vmatpush.msrb.mxu3 %v5522_v9  ;;  %v5532_v26 = vld [vmem:[#allocation93_spill] sm:$0xff]  ;;  %v5533_v9 = vld [vmem:[#allocation94_spill] sm:$0xff] }
 0x2d8   :  { %1243 = vmatpush.msrb.mxu0 %v5523_v4  ;;  %1263 = vmatpush.msrb.mxu1 %v5524_v29  ;;  %v5534_v4 = vld [vmem:[#allocation95_spill] sm:$0xff]  ;;  %v5535_v29 = vld [vmem:[#allocation96_spill] sm:$0xff] }
 0x2d9   :  { %1283 = vmatpush.msrb.mxu2 %v5525_v16  ;;  %1303 = vmatpush.msrb.mxu3 %v5526_v27  ;;  %v5536_v16 = vld [vmem:[#allocation97_spill] sm:$0xff]  ;;  %v5537_v27 = vld [vmem:[#allocation98_spill] sm:$0xff] }
 0x2da   :  { %1244 = vmatpush.msrb.mxu0 %v5527_v18  ;;  %1264 = vmatpush.msrb.mxu1 %v5528_v28  ;;  %v5538_v18 = vld [vmem:[#allocation99_spill] sm:$0xff]  ;;  %v5539_v28 = vld [vmem:[#allocation100_spill] sm:$0xff] }
 0x2db   :  { %1284 = vmatpush.msrb.mxu2 %v5529_v24  ;;  %1304 = vmatpush.msrb.mxu3 %v5530_v15  ;;  %v5540_v24 = vld [vmem:[#allocation101_spill] sm:$0xff]  ;;  %v5541_v15 = vld [vmem:[#allocation102_spill] sm:$0xff] }
 0x2dc   :  { %1245 = vmatpush.msrb.mxu0 %v5531_v21  ;;  %1265 = vmatpush.msrb.mxu1 %v5532_v26  ;;  %v5542_v21 = vld [vmem:[#allocation103_spill] sm:$0xff]  ;;  %v5543_v26 = vld [vmem:[#allocation104_spill] sm:$0xff] }
 0x2dd   :  { %1285 = vmatpush.msrb.mxu2 %v5533_v9  ;;  %1305 = vmatpush.msrb.mxu3 %v5534_v4  ;;  %v5544_v9 = vld [vmem:[#allocation105_spill] sm:$0xff]  ;;  %v5545_v4 = vld [vmem:[#allocation106_spill] sm:$0xff] }
 0x2de   :  { %1246 = vmatpush.msrb.mxu0 %v5535_v29  ;;  %1266 = vmatpush.msrb.mxu1 %v5536_v16  ;;  %v5546_v29 = vld [vmem:[#allocation107_spill] sm:$0xff] }
 0x2df   :  { %1286 = vmatpush.msrb.mxu2 %v5537_v27  ;;  %1306 = vmatpush.msrb.mxu3 %v5538_v18 }
 0x2e0   :  { %1247 = vmatpush.msrb.mxu0 %v5539_v28  ;;  %1267 = vmatpush.msrb.mxu1 %v5540_v24 }
 0x2e1   :  { %1287 = vmatpush.msrb.mxu2 %v5541_v15  ;;  %1307 = vmatpush.msrb.mxu3 %v5542_v21 }
 0x2e2   :  { %1248 = vmatpush.msrb.mxu0 %v5543_v26  ;;  %1268 = vmatpush.msrb.mxu1 %v5544_v9 }
 0x2e3   :  { %1288 = vmatpush.msrb.mxu2 %v5545_v4  ;;  %1308 = vmatpush.msrb.mxu3 %v5546_v29 }
 0x31d   :  { %v947_v16 = vpop.f32.mrf.mxu0  ;;  %v967_v27 = vpop.f32.mrf.mxu1 }
 0x324   :  { %v1007_v25 = vpop.f32.mrf.mxu3  ;;  %v987_v21 = vpop.f32.mrf.mxu2 }
 0x325   :  { %v1027_v18 = vpop.f32.mrf.mxu0  ;;  %v1047_v17 = vpop.f32.mrf.mxu1 }
 0x326   :  { %v1028_v28 = vadd.f32 %v1027_v18, %v947_v16  ;;  %v1048_v23 = vadd.f32 %v1047_v17, %v967_v27 }
 0x328   :  { %v2138_v24 = vmul.f32 -1.442695, %v1028_v28  ;;  %v2139_v19 = vmul.f32 -1.442695, %v1048_v23 }
 0x32a   :  { %2246 = vpow2.f32 %v2138_v24  ;;  %v2727_v24 = vmov 5  }
 0x32b   :  { %2248 = vpow2.f32 %v2139_v19  ;;  %2193 = vset.pattern.permute.xlu2 %v2727_v24 }
 0x32c   :  { %v1087_v15 = vpop.f32.mrf.mxu3  ;;  %v1067_v30 = vpop.f32.mrf.mxu2 }
 0x32d   :  { %v1088_v26 = vadd.f32 %v1087_v15, %v1007_v25  ;;  %v1068_v17 = vadd.f32 %v1067_v30, %v987_v21 }
 0x32f   :  { %v2140_v20 = vmul.f32 -1.442695, %v1088_v26  ;;  %v5547_v26 = vld [vmem:[#allocation15_spill] sm:$0xff] }
 0x330   :  { %v2247_v9 = vpop.eup %2246  ;;  %180 = vperm.xlu2 %2193, %v5547_v26  }
 0x331   :  { %v2249_v45 = vpop.eup %2248  ;;  %v1093_v4 = vadd.f32 1.0, %v2247_v9  ;;  %2250 = vpow2.f32 %v2140_v20 }
 0x332   :  { %v1112_v29 = vadd.f32 1.0, %v2249_v45 }
 0x333   :  { %2252 = vrcp.f32 %v1093_v4  ;;  %v1105_v25 = vand.u32 2147483648, %v1093_v4  ;;  %v1103_v45 = vand.u32 2147483647, %v1093_v4  ;;  %vm1099_vm10 = vweird.f32 %v1093_v4 }
 0x334   :  { %2254 = vrcp.f32 %v1112_v29  ;;  %v1124_v15 = vand.u32 2147483648, %v1112_v29  ;;  %vm1118_vm11 = vweird.f32 %v1112_v29 }
 0x335   :  { %vm1104_vm14 = vcmp.eq.f32.partialorder %v1103_v45, 8.507059e+37 }
 0x337   :  { %v2251_v13 = vpop.eup %2250 }
 0x338   :  { %v1132_v12 = vadd.f32 1.0, %v2251_v13  ;;  %v1122_v13 = vand.u32 2147483647, %v1112_v29 }
 0x339   :  { %v2253_v16 = vpop.eup %2252 }
 0x33a   :  { %v2255_v27 = vpop.eup %2254  ;;  %v1095_v23 = vmul.f32 %v2253_v16, %v1093_v4  ;;  %2256 = vrcp.f32 %v1132_v12  ;;  %vm1100_vm8 = vweird.f32 %v2253_v16  ;;  %vm1123_vm15 = vcmp.eq.f32.partialorder %v1122_v13, 8.507059e+37  ;;  %v5589_v13 = vld [vmem:[#allocation57_spill] sm:$0xff] }
 0x33b   :  { %v1114_v19 = vmul.f32 %v2255_v27, %v1112_v29  ;;  %2258 = vtanh.f32 %v1068_v17  ;;  %vm1119_vm9 = vweird.f32 %v2255_v27  ;;  %vm1101_vm12 = vmor %vm1099_vm10, %vm1100_vm8  ;;  %v1125_v17 = vor.u32 1.1754944e-38, %v1124_v15 }
 0x33c   :  { %v1096_v18 = vsub.f32 1.0, %v1095_v23  ;;  %v1106_v23 = vor.u32 1.1754944e-38, %v1105_v25  ;;  %vm1120_vm13 = vmor %vm1118_vm11, %vm1119_vm9  ;;  %v1144_v25 = vand.u32 2147483648, %v1132_v12  ;;  %vm1138_vm1 = vweird.f32 %v1132_v12 }
 0x33d   :  { %v1115_v28 = vsub.f32 1.0, %v1114_v19 }
 0x33e   :  { %v1097_v20 = vmul.f32 %v2253_v16, %v1096_v18  ;;  %v1145_v45 = vor.u32 1.1754944e-38, %v1144_v25  ;;  %v5601_v25 = vld [vmem:[#allocation69_spill] sm:$0xff] }
 0x33f   :  { %v1116_v9 = vmul.f32 %v2255_v27, %v1115_v28 }
 0x340   :  { %v2257_v30 = vpop.eup %2256  ;;  %v1098_v21 = vadd.f32 %v2253_v16, %v1097_v20 }
 0x341   :  { %v1117_v19 = vadd.f32 %v2255_v27, %v1116_v9  ;;  %v1134_v11 = vmul.f32 %v2257_v30, %v1132_v12  ;;  %v2259_v18 = vpop.eup %2258  ;;  %vm1139_vm0 = vweird.f32 %v2257_v30  ;;  %v5588_v9 = vld [vmem:[#allocation56_spill] sm:$0xff] }
 0x342   :  { %v1102_v24 = vsel %vm1101_vm12, %v2253_v16, %v1098_v21  ;;  %v1142_v16 = vand.u32 2147483647, %v1132_v12  ;;  %vm1140_vm2 = vmor %vm1138_vm1, %vm1139_vm0  ;;  %v5587_v12 = vld [vmem:[#allocation55_spill] sm:$0xff] }
 0x343   :  { %v1107_v10 = vsel %vm1104_vm14, %v1106_v23, %v1102_v24  ;;  %v1121_v8 = vsel %vm1120_vm13, %v2255_v27, %v1117_v19  ;;  %v1135_v26 = vsub.f32 1.0, %v1134_v11  ;;  %v5591_v21 = vld [vmem:[#allocation59_spill] sm:$0xff]  ;;  %v5592_v23 = vld [vmem:[#allocation60_spill] sm:$0xff]  ;;  %v5593_v19 = vld [vmem:[#allocation61_spill] sm:$0xff] }
 0x344   :  { %v1126_v28 = vsel %vm1123_vm15, %v1125_v17, %v1121_v8  ;;  %v1149_v7 = vmul.f32 %v2259_v18, %v1107_v10  ;;  %vm1143_vm3 = vcmp.eq.f32.partialorder %v1142_v16, 8.507059e+37  ;;  %v5586_v10 = vld [vmem:[#allocation54_spill] sm:$0xff]  ;;  %v5595_v24 = vld [vmem:[#allocation63_spill] sm:$0xff]  ;;  %v5596_v18 = vld [vmem:[#allocation64_spill] sm:$0xff] }
 0x345   :  { %v1148_v22 = vmul.f32 %v1126_v28, %v3839_v14  ;;  %v1136_v20 = vmul.f32 %v2257_v30, %v1135_v26  ;;  %v175_v14 = vpop.permute.xlu2 %174  ;;  %v5594_v17 = vld [vmem:[#allocation62_spill] sm:$0xff]  ;;  %v5597_v26 = vld [vmem:[#allocation65_spill] sm:$0xff] }
 0x346   :  { %vm176_vm4 = vcmp.eq.s32.totalorder %v175_v14, %v3211_v42  ;;  %v5598_v28 = vld [vmem:[#allocation66_spill] sm:$0xff]  ;;  %v5608_v14 = vld [vmem:[#allocation76_spill] sm:$0xff] }
 0x347   :  { %v3977_v4 = vadd.f32 %v1149_v7, %v1148_v22  ;;  %v1137_v29 = vadd.f32 %v2257_v30, %v1136_v20  ;;  %v5584_v22 = vld [vmem:[#allocation52_spill] sm:$0xff]  ;;  %v5585_v7 = vld [vmem:[#allocation53_spill] sm:$0xff]  ;;  %v5599_v20 = vld [vmem:[#allocation67_spill] sm:$0xff] }
 0x348   :  { %v5602_v16 = vld [vmem:[#allocation70_spill] sm:$0xff] }
 0x349   :  { %2260 = vtanh.f32 %v3977_v4  ;;  %v1141_v15 = vsel %vm1140_vm2, %v2257_v30, %v1137_v29  ;;  %v5590_v30 = vld [vmem:[#allocation58_spill] sm:$0xff]  ;;  %v5600_v29 = vld [vmem:[#allocation68_spill] sm:$0xff] }
 0x34a   :  { %v1146_v11 = vsel %vm1143_vm3, %v1145_v45, %v1141_v15  ;;  %v5603_v15 = vld [vmem:[#allocation71_spill] sm:$0xff]  ;;  %v5604_v45 = vld [vmem:[#allocation72_spill] sm:$0xff] }
 0x34f   :  { %v2261_v27 = vpop.eup %2260 }
 0x350   :  { %v1152_v8 = vmul.f32 %v2261_v27, %v1146_v11  ;;  %v5605_v27 = vld [vmem:[#allocation73_spill] sm:$0xff]  ;;  %v5606_v11 = vld [vmem:[#allocation74_spill] sm:$0xff] }
 0x352   :  { %1169 = vmatmul.f32.vlgmr.msra.gmra.mxu0 %v1152_v8  ;;  %1189 = vmatmul.f32.vlgmr.msra.gmra.mxu1 %v1152_v8 }
 0x353   :  { %1209 = vmatmul.f32.vlgmr.msra.gmra.mxu2 %v1152_v8  ;;  %1229 = vmatmul.f32.vlgmr.msra.gmra.mxu3 %v1152_v8  ;;  %v5607_v8 = vld [vmem:[#allocation75_spill] sm:$0xff] }
 0x354   :  { %1376 = vmatpush.msra.mxu0 %v3440_v31  ;;  %1396 = vmatpush.msra.mxu1 %v3443_v32  ;;  %v5548_v31 = vld [vmem:[#allocation16_spill] sm:$0xff]  ;;  %v5549_v32 = vld [vmem:[#allocation17_spill] sm:$0xff] }
 0x355   :  { %1416 = vmatpush.msra.mxu2 %v3446_v33  ;;  %1436 = vmatpush.msra.mxu3 %v3449_v34  ;;  %v5550_v33 = vld [vmem:[#allocation18_spill] sm:$0xff]  ;;  %v5551_v34 = vld [vmem:[#allocation19_spill] sm:$0xff] }
 0x356   :  { %1377 = vmatpush.msra.mxu0 %v3452_v35  ;;  %1397 = vmatpush.msra.mxu1 %v3455_v36  ;;  %v5552_v35 = vld [vmem:[#allocation20_spill] sm:$0xff]  ;;  %v5553_v36 = vld [vmem:[#allocation21_spill] sm:$0xff] }
 0x357   :  { %1417 = vmatpush.msra.mxu2 %v3459_v37  ;;  %1437 = vmatpush.msra.mxu3 %v3462_v38  ;;  %v5554_v37 = vld [vmem:[#allocation22_spill] sm:$0xff]  ;;  %v5555_v38 = vld [vmem:[#allocation23_spill] sm:$0xff] }
 0x358   :  { %1378 = vmatpush.msra.mxu0 %v3465_v39  ;;  %1398 = vmatpush.msra.mxu1 %v3468_v41  ;;  %v5556_v39 = vld [vmem:[#allocation24_spill] sm:$0xff]  ;;  %v5557_v41 = vld [vmem:[#allocation25_spill] sm:$0xff] }
 0x359   :  { %1418 = vmatpush.msra.mxu2 %v3471_v43  ;;  %1438 = vmatpush.msra.mxu3 %v3474_v50  ;;  %v5558_v43 = vld [vmem:[#allocation26_spill] sm:$0xff]  ;;  %v5559_v50 = vld [vmem:[#allocation27_spill] sm:$0xff] }
 0x35a   :  { %2141 = vmatmul.msk.f32.vlgmr.msrb.gmra.mxu0 %vm176_vm4, %v5270_v2  ;;  %2142 = vmatmul.msk.f32.vlgmr.msrb.gmra.mxu1 %vm176_vm4, %v5270_v2 }
 0x35b   :  { %2143 = vmatmul.msk.f32.vlgmr.msrb.gmra.mxu2 %vm176_vm4, %v5270_v2  ;;  %2144 = vmatmul.msk.f32.vlgmr.msrb.gmra.mxu3 %vm176_vm4, %v5270_v2 }
 0x35c   :  { %1379 = vmatpush.msra.mxu0 %v3489_v62  ;;  %1399 = vmatpush.msra.mxu1 %v3492_v61  ;;  %v5560_v62 = vld [vmem:[#allocation28_spill] sm:$0xff]  ;;  %v5561_v61 = vld [vmem:[#allocation29_spill] sm:$0xff] }
 0x35d   :  { %1419 = vmatpush.msra.mxu2 %v3495_v44  ;;  %1439 = vmatpush.msra.mxu3 %v3498_v52  ;;  %v5562_v44 = vld [vmem:[#allocation30_spill] sm:$0xff]  ;;  %v5563_v52 = vld [vmem:[#allocation31_spill] sm:$0xff] }
 0x35e   :  { %1380 = vmatpush.msra.mxu0 %v3501_v48  ;;  %1400 = vmatpush.msra.mxu1 %v3504_v53  ;;  %v5564_v48 = vld [vmem:[#allocation32_spill] sm:$0xff]  ;;  %v5565_v53 = vld [vmem:[#allocation33_spill] sm:$0xff] }
 0x35f   :  { %1420 = vmatpush.msra.mxu2 %v3507_v58  ;;  %1440 = vmatpush.msra.mxu3 %v3510_v47  ;;  %v5566_v58 = vld [vmem:[#allocation34_spill] sm:$0xff]  ;;  %v5567_v47 = vld [vmem:[#allocation35_spill] sm:$0xff] }
 0x360   :  { %1381 = vmatpush.msra.mxu0 %v3513_v59  ;;  %1401 = vmatpush.msra.mxu1 %v3516_v54  ;;  %v5568_v59 = vld [vmem:[#allocation36_spill] sm:$0xff]  ;;  %v5569_v54 = vld [vmem:[#allocation37_spill] sm:$0xff] }
 0x361   :  { %1421 = vmatpush.msra.mxu2 %v3519_v1  ;;  %1441 = vmatpush.msra.mxu3 %v3522_v60  ;;  %v5570_v1 = vld [vmem:[#allocation38_spill] sm:$0xff]  ;;  %v5571_v60 = vld [vmem:[#allocation39_spill] sm:$0xff] }
 0x362   :  { %1382 = vmatpush.msra.mxu0 %v3525_v56  ;;  %1402 = vmatpush.msra.mxu1 %v3528_v63  ;;  %v5572_v56 = vld [vmem:[#allocation40_spill] sm:$0xff]  ;;  %v5573_v63 = vld [vmem:[#allocation41_spill] sm:$0xff] }
 0x363   :  { %1422 = vmatpush.msra.mxu2 %v3531_v57  ;;  %1442 = vmatpush.msra.mxu3 %v3534_v49  ;;  %v5574_v57 = vld [vmem:[#allocation42_spill] sm:$0xff]  ;;  %v5575_v49 = vld [vmem:[#allocation43_spill] sm:$0xff] }
 0x364   :  { %1383 = vmatpush.msra.mxu0 %v3537_v0  ;;  %1403 = vmatpush.msra.mxu1 %v3540_v51  ;;  %v5576_v0 = vld [vmem:[#allocation44_spill] sm:$0xff]  ;;  %v5577_v51 = vld [vmem:[#allocation45_spill] sm:$0xff] }
 0x365   :  { %1423 = vmatpush.msra.mxu2 %v3543_v55  ;;  %1443 = vmatpush.msra.mxu3 %v3546_v46  ;;  %v5578_v55 = vld [vmem:[#allocation46_spill] sm:$0xff]  ;;  %v5579_v46 = vld [vmem:[#allocation47_spill] sm:$0xff] }
 0x366   :  { %1384 = vmatpush.msra.mxu0 %v3549_v40  ;;  %1404 = vmatpush.msra.mxu1 %v3552_v3  ;;  %v5580_v40 = vld [vmem:[#allocation48_spill] sm:$0xff]  ;;  %v5581_v3 = vld [vmem:[#allocation49_spill] sm:$0xff] }
 0x367   :  { %1424 = vmatpush.msra.mxu2 %v3555_v5  ;;  %1444 = vmatpush.msra.mxu3 %v3558_v6  ;;  %v5582_v5 = vld [vmem:[#allocation50_spill] sm:$0xff]  ;;  %v5583_v6 = vld [vmem:[#allocation51_spill] sm:$0xff] }
 0x368   :  { %1385 = vmatpush.msra.mxu0 %v5548_v31  ;;  %1405 = vmatpush.msra.mxu1 %v5549_v32  ;;  %v5609_v31 = vld [vmem:[#allocation77_spill] sm:$0xff]  ;;  %v5610_v32 = vld [vmem:[#allocation78_spill] sm:$0xff] }
 0x369   :  { %1425 = vmatpush.msra.mxu2 %v5550_v33  ;;  %1445 = vmatpush.msra.mxu3 %v5551_v34  ;;  %v5611_v33 = vld [vmem:[#allocation79_spill] sm:$0xff]  ;;  %v5612_v34 = vld [vmem:[#allocation80_spill] sm:$0xff] }
 0x36a   :  { %1386 = vmatpush.msra.mxu0 %v5552_v35  ;;  %1406 = vmatpush.msra.mxu1 %v5553_v36  ;;  %v5613_v35 = vld [vmem:[#allocation81_spill] sm:$0xff]  ;;  %v5614_v36 = vld [vmem:[#allocation82_spill] sm:$0xff] }
 0x36b   :  { %1426 = vmatpush.msra.mxu2 %v5554_v37  ;;  %1446 = vmatpush.msra.mxu3 %v5555_v38  ;;  %v5615_v37 = vld [vmem:[#allocation83_spill] sm:$0xff]  ;;  %v5616_v38 = vld [vmem:[#allocation84_spill] sm:$0xff] }
 0x36c   :  { %1387 = vmatpush.msra.mxu0 %v5556_v39  ;;  %1407 = vmatpush.msra.mxu1 %v5557_v41  ;;  %v5617_v39 = vld [vmem:[#allocation85_spill] sm:$0xff]  ;;  %v5618_v41 = vld [vmem:[#allocation86_spill] sm:$0xff] }
 0x36d   :  { %1427 = vmatpush.msra.mxu2 %v5558_v43  ;;  %1447 = vmatpush.msra.mxu3 %v5559_v50  ;;  %v5619_v43 = vld [vmem:[#allocation87_spill] sm:$0xff]  ;;  %v5620_v50 = vld [vmem:[#allocation88_spill] sm:$0xff] }
 0x36e   :  { %1388 = vmatpush.msra.mxu0 %v5560_v62  ;;  %1408 = vmatpush.msra.mxu1 %v5561_v61  ;;  %v5621_v62 = vld [vmem:[#allocation89_spill] sm:$0xff]  ;;  %v5622_v61 = vld [vmem:[#allocation90_spill] sm:$0xff] }
 0x36f   :  { %1428 = vmatpush.msra.mxu2 %v5562_v44  ;;  %1448 = vmatpush.msra.mxu3 %v5563_v52  ;;  %v5623_v44 = vld [vmem:[#allocation91_spill] sm:$0xff]  ;;  %v5624_v52 = vld [vmem:[#allocation92_spill] sm:$0xff] }
 0x370   :  { %1389 = vmatpush.msra.mxu0 %v5564_v48  ;;  %1409 = vmatpush.msra.mxu1 %v5565_v53  ;;  %v5625_v48 = vld [vmem:[#allocation93_spill] sm:$0xff]  ;;  %v5626_v53 = vld [vmem:[#allocation94_spill] sm:$0xff] }
 0x371   :  { %1429 = vmatpush.msra.mxu2 %v5566_v58  ;;  %1449 = vmatpush.msra.mxu3 %v5567_v47  ;;  %v5627_v58 = vld [vmem:[#allocation95_spill] sm:$0xff]  ;;  %v5628_v47 = vld [vmem:[#allocation96_spill] sm:$0xff] }
 0x372   :  { %1390 = vmatpush.msra.mxu0 %v5568_v59  ;;  %1410 = vmatpush.msra.mxu1 %v5569_v54  ;;  %v5629_v59 = vld [vmem:[#allocation97_spill] sm:$0xff]  ;;  %v5630_v54 = vld [vmem:[#allocation98_spill] sm:$0xff] }
 0x373   :  { %1430 = vmatpush.msra.mxu2 %v5570_v1  ;;  %1450 = vmatpush.msra.mxu3 %v5571_v60  ;;  %v5631_v1 = vld [vmem:[#allocation99_spill] sm:$0xff]  ;;  %v5632_v60 = vld [vmem:[#allocation100_spill] sm:$0xff] }
 0x374   :  { %1391 = vmatpush.msra.mxu0 %v5572_v56  ;;  %1411 = vmatpush.msra.mxu1 %v5573_v63  ;;  %v5633_v56 = vld [vmem:[#allocation101_spill] sm:$0xff]  ;;  %v5634_v63 = vld [vmem:[#allocation102_spill] sm:$0xff] }
 0x375   :  { %1431 = vmatpush.msra.mxu2 %v5574_v57  ;;  %1451 = vmatpush.msra.mxu3 %v5575_v49  ;;  %v5635_v57 = vld [vmem:[#allocation103_spill] sm:$0xff]  ;;  %v5636_v49 = vld [vmem:[#allocation104_spill] sm:$0xff] }
 0x376   :  { %1456 = vmatpush.msrb.mxu0 %v5576_v0  ;;  %1476 = vmatpush.msrb.mxu1 %v5577_v51  ;;  %v5637_v0 = vld [vmem:[#allocation105_spill] sm:$0xff]  ;;  %v5638_v51 = vld [vmem:[#allocation106_spill] sm:$0xff] }
 0x377   :  { %1496 = vmatpush.msrb.mxu2 %v5578_v55  ;;  %1516 = vmatpush.msrb.mxu3 %v5579_v46  ;;  %v5639_v55 = vld [vmem:[#allocation107_spill] sm:$0xff] }
 0x378   :  { %1457 = vmatpush.msrb.mxu0 %v5580_v40  ;;  %1477 = vmatpush.msrb.mxu1 %v5581_v3 }
 0x379   :  { %1497 = vmatpush.msrb.mxu2 %v5582_v5  ;;  %1517 = vmatpush.msrb.mxu3 %v5583_v6 }
 0x37a   :  { %1458 = vmatpush.msrb.mxu0 %v5584_v22  ;;  %1478 = vmatpush.msrb.mxu1 %v5585_v7 }
 0x37b   :  { %1498 = vmatpush.msrb.mxu2 %v5586_v10  ;;  %1518 = vmatpush.msrb.mxu3 %v5587_v12 }
 0x37c   :  { %1459 = vmatpush.msrb.mxu0 %v5588_v9  ;;  %1479 = vmatpush.msrb.mxu1 %v5589_v13 }
 0x37d   :  { %1499 = vmatpush.msrb.mxu2 %v5590_v30  ;;  %1519 = vmatpush.msrb.mxu3 %v5591_v21 }
 0x37e   :  { %1460 = vmatpush.msrb.mxu0 %v5592_v23  ;;  %1480 = vmatpush.msrb.mxu1 %v5593_v19 }
 0x37f   :  { %1500 = vmatpush.msrb.mxu2 %v5594_v17  ;;  %1520 = vmatpush.msrb.mxu3 %v5595_v24 }
 0x380   :  { %1461 = vmatpush.msrb.mxu0 %v5596_v18  ;;  %1481 = vmatpush.msrb.mxu1 %v5597_v26 }
 0x381   :  { %1501 = vmatpush.msrb.mxu2 %v5598_v28  ;;  %1521 = vmatpush.msrb.mxu3 %v5599_v20 }
 0x382   :  { %1462 = vmatpush.msrb.mxu0 %v5600_v29  ;;  %1482 = vmatpush.msrb.mxu1 %v5601_v25 }
 0x383   :  { %1502 = vmatpush.msrb.mxu2 %v5602_v16  ;;  %1522 = vmatpush.msrb.mxu3 %v5603_v15 }
 0x384   :  { %1463 = vmatpush.msrb.mxu0 %v5604_v45  ;;  %1483 = vmatpush.msrb.mxu1 %v5605_v27 }
 0x385   :  { %1503 = vmatpush.msrb.mxu2 %v5606_v11  ;;  %1523 = vmatpush.msrb.mxu3 %v5607_v8  ;;  %v2728_v8 = vmov 6  }
 0x386   :  { %1464 = vmatpush.msrb.mxu0 %v5608_v14  ;;  %1484 = vmatpush.msrb.mxu1 %v5609_v31 }
 0x387   :  { %1504 = vmatpush.msrb.mxu2 %v5610_v32  ;;  %1524 = vmatpush.msrb.mxu3 %v5611_v33  ;;  %v4113_v33 = vld [vmem:[#allocation2] sm:$0x3] }
 0x388   :  { %1465 = vmatpush.msrb.mxu0 %v5612_v34  ;;  %1485 = vmatpush.msrb.mxu1 %v5613_v35 }
 0x389   :  { %1505 = vmatpush.msrb.mxu2 %v5614_v36  ;;  %1525 = vmatpush.msrb.mxu3 %v5615_v37 }
 0x38a   :  { %1466 = vmatpush.msrb.mxu0 %v5616_v38  ;;  %1486 = vmatpush.msrb.mxu1 %v5617_v39 }
 0x38b   :  { %1506 = vmatpush.msrb.mxu2 %v5618_v41  ;;  %1526 = vmatpush.msrb.mxu3 %v5619_v43 }
 0x38c   :  { %1467 = vmatpush.msrb.mxu0 %v5620_v50  ;;  %1487 = vmatpush.msrb.mxu1 %v5621_v62 }
 0x38d   :  { %1507 = vmatpush.msrb.mxu2 %v5622_v61  ;;  %1527 = vmatpush.msrb.mxu3 %v5623_v44 }
 0x38e   :  { %1468 = vmatpush.msrb.mxu0 %v5624_v52  ;;  %1488 = vmatpush.msrb.mxu1 %v5625_v48 }
 0x38f   :  { %1508 = vmatpush.msrb.mxu2 %v5626_v53  ;;  %1528 = vmatpush.msrb.mxu3 %v5627_v58 }
 0x390   :  { %1469 = vmatpush.msrb.mxu0 %v5628_v47  ;;  %1489 = vmatpush.msrb.mxu1 %v5629_v59 }
 0x391   :  { %1509 = vmatpush.msrb.mxu2 %v5630_v54  ;;  %1529 = vmatpush.msrb.mxu3 %v5631_v1 }
 0x392   :  { %1470 = vmatpush.msrb.mxu0 %v5632_v60  ;;  %1490 = vmatpush.msrb.mxu1 %v5633_v56 }
 0x393   :  { %1510 = vmatpush.msrb.mxu2 %v5634_v63  ;;  %1530 = vmatpush.msrb.mxu3 %v5635_v57 }
 0x394   :  { %1471 = vmatpush.msrb.mxu0 %v5636_v49  ;;  %1491 = vmatpush.msrb.mxu1 %v5637_v0 }
 0x395   :  { %1511 = vmatpush.msrb.mxu2 %v5638_v51  ;;  %1531 = vmatpush.msrb.mxu3 %v5639_v55  ;;  %v4120_v51 = vld [vmem:[#allocation7 + $0x1e0] sm:$0xff]  ;;  %v4123_v55 = vld [vmem:[#allocation7 + $0x1e8] sm:$0xff] }
 0x396   :  { %2194 = vset.pattern.permute.xlu1 %v2728_v8  ;;  %v4223_v8 = vld [vmem:[#allocation7 + $0x110] sm:$0xff] }
 0x397   :  { %186 = vperm.xlu1 %2194, %v4113_v33  }
 0x3cf   :  { %v1170_v46 = vpop.f32.mrf.mxu0  ;;  %v1190_v40 = vpop.f32.mrf.mxu1 }
 0x3d6   :  { %v1230_v3 = vpop.f32.mrf.mxu3  ;;  %v1210_v9 = vpop.f32.mrf.mxu2 }
 0x3d7   :  { %v1250_v5 = vpop.f32.mrf.mxu0  ;;  %v1270_v6 = vpop.f32.mrf.mxu1 }
 0x3d8   :  { %v1251_v22 = vadd.f32 %v1250_v5, %v1170_v46  ;;  %v1271_v7 = vadd.f32 %v1270_v6, %v1190_v40  ;;  %v4126_v46 = vld [vmem:[#allocation7 + $0x1f0] sm:$0xff]  ;;  %v4129_v40 = vld [vmem:[#allocation7 + $0x1f8] sm:$0xff]  ;;  %v4135_v5 = vld [vmem:[#allocation7 + $0x1c8] sm:$0xff] }
 0x3d9   :  { %v4139_v6 = vld [vmem:[#allocation7 + $0x1d0] sm:$0xff] }
 0x3da   :  { %v2145_v10 = vmul.f32 -1.442695, %v1251_v22  ;;  %v2146_v12 = vmul.f32 -1.442695, %v1271_v7  ;;  %v4142_v22 = vld [vmem:[#allocation7 + $0x1d8] sm:$0xff]  ;;  %v4145_v7 = vld [vmem:[#allocation7 + $0x1a0] sm:$0xff] }
 0x3dc   :  { %2262 = vpow2.f32 %v2145_v10  ;;  %v4148_v10 = vld [vmem:[#allocation7 + $0x1a8] sm:$0xff] }
 0x3dd   :  { %2264 = vpow2.f32 %v2146_v12  ;;  %v4151_v12 = vld [vmem:[#allocation7 + $0x1b0] sm:$0xff] }
 0x3de   :  { %v1310_v13 = vpop.f32.mrf.mxu3  ;;  %v1290_v18 = vpop.f32.mrf.mxu2 }
 0x3df   :  { %v1311_v30 = vadd.f32 %v1310_v13, %v1230_v3  ;;  %v1291_v29 = vadd.f32 %v1290_v18, %v1210_v9  ;;  %v4132_v3 = vld [vmem:[#allocation7 + $0x1c0] sm:$0xff]  ;;  %v4154_v9 = vld [vmem:[#allocation7 + $0x1b8] sm:$0xff] }
 0x3e0   :  { %v4169_v13 = vld [vmem:[#allocation7 + $0x180] sm:$0xff]  ;;  %v4190_v18 = vld [vmem:[#allocation7 + $0x178] sm:$0xff] }
 0x3e1   :  { %v2147_v21 = vmul.f32 -1.442695, %v1311_v30  ;;  %v4172_v30 = vld [vmem:[#allocation7 + $0x188] sm:$0xff] }
 0x3e2   :  { %v2263_v23 = vpop.eup %2262 }
 0x3e3   :  { %v2265_v19 = vpop.eup %2264  ;;  %v1316_v17 = vadd.f32 1.0, %v2263_v23  ;;  %2266 = vpow2.f32 %v2147_v21  ;;  %v4175_v21 = vld [vmem:[#allocation7 + $0x190] sm:$0xff]  ;;  %v4178_v23 = vld [vmem:[#allocation7 + $0x198] sm:$0xff] }
 0x3e4   :  { %v1335_v24 = vadd.f32 1.0, %v2265_v19  ;;  %v4181_v19 = vld [vmem:[#allocation7 + $0x160] sm:$0xff] }
 0x3e5   :  { %2268 = vrcp.f32 %v1316_v17  ;;  %v1328_v11 = vand.u32 2147483648, %v1316_v17  ;;  %v1326_v32 = vand.u32 2147483647, %v1316_v17  ;;  %vm1322_vm7 = vweird.f32 %v1316_v17 }
 0x3e6   :  { %2270 = vrcp.f32 %v1335_v24  ;;  %v1347_v14 = vand.u32 2147483648, %v1335_v24  ;;  %v1345_v35 = vand.u32 2147483647, %v1335_v24  ;;  %vm1341_vm8 = vweird.f32 %v1335_v24 }
 0x3e7   :  { %v1329_v38 = vor.u32 1.1754944e-38, %v1328_v11  ;;  %vm1327_vm11 = vcmp.eq.f32.partialorder %v1326_v32, 8.507059e+37  ;;  %v4220_v11 = vld [vmem:[#allocation7 + $0x108] sm:$0xff] }
 0x3e8   :  { %v1348_v43 = vor.u32 1.1754944e-38, %v1347_v14  ;;  %vm1346_vm12 = vcmp.eq.f32.partialorder %v1345_v35, 8.507059e+37  ;;  %v4226_v14 = vld [vmem:[#allocation7 + $0x118] sm:$0xff]  ;;  %v4232_v32 = vld [vmem:[#allocation7 + $0xe8] sm:$0xff] }
 0x3e9   :  { %v2267_v26 = vpop.eup %2266  ;;  %v4238_v35 = vld [vmem:[#allocation7 + $0xf8] sm:$0xff] }
 0x3ea   :  { %v1355_v28 = vadd.f32 1.0, %v2267_v26  ;;  %v4193_v26 = vld [vmem:[#allocation7 + $0x140] sm:$0xff] }
 0x3eb   :  { %v2269_v20 = vpop.eup %2268 }
 0x3ec   :  { %v2271_v25 = vpop.eup %2270  ;;  %v1318_v16 = vmul.f32 %v2269_v20, %v1316_v17  ;;  %2272 = vrcp.f32 %v1355_v28  ;;  %vm1323_vm5 = vweird.f32 %v2269_v20  ;;  %v1367_v1 = vand.u32 2147483648, %v1355_v28  ;;  %v4184_v17 = vld [vmem:[#allocation7 + $0x168] sm:$0xff] }
 0x3ed   :  { %v1337_v15 = vmul.f32 %v2271_v25, %v1335_v24  ;;  %2274 = vtanh.f32 %v1291_v29  ;;  %vm1342_vm6 = vweird.f32 %v2271_v25  ;;  %vm1324_vm9 = vmor %vm1322_vm7, %vm1323_vm5  ;;  %vm1361_vm14 = vweird.f32 %v1355_v28  ;;  %v4187_v24 = vld [vmem:[#allocation7 + $0x170] sm:$0xff]  ;;  %v4202_v29 = vld [vmem:[#allocation7 + $0x158] sm:$0xff] }
 0x3ee   :  { %v1319_v45 = vsub.f32 1.0, %v1318_v16  ;;  %vm1343_vm10 = vmor %vm1341_vm8, %vm1342_vm6  ;;  %v1365_v60 = vand.u32 2147483647, %v1355_v28  ;;  %v1368_v63 = vor.u32 1.1754944e-38, %v1367_v1  ;;  %v4208_v16 = vld [vmem:[#allocation7 + $0x128] sm:$0xff]  ;;  %v4289_v1 = vld [vmem:[#allocation7 + $0x40] sm:$0xff] }
 0x3ef   :  { %v1338_v27 = vsub.f32 1.0, %v1337_v15  ;;  %v4211_v15 = vld [vmem:[#allocation7 + $0x130] sm:$0xff]  ;;  %5656 = vst [vmem:[#allocation31_spill] sm:$0xff] %v4289_v1 }
 0x3f0   :  { %v1320_v31 = vmul.f32 %v2269_v20, %v1319_v45  ;;  %vm1366_vm0 = vcmp.eq.f32.partialorder %v1365_v60, 8.507059e+37  ;;  %v4214_v45 = vld [vmem:[#allocation7 + $0x138] sm:$0xff]  ;;  %v4292_v60 = vld [vmem:[#allocation7 + $0x48] sm:$0xff] }
 0x3f1   :  { %v1339_v34 = vmul.f32 %v2271_v25, %v1338_v27  ;;  %v4217_v27 = vld [vmem:[#allocation7 + $0x100] sm:$0xff]  ;;  %5657 = vst [vmem:[#allocation32_spill] sm:$0xff] %v4292_v60 }
 0x3f2   :  { %v2273_v36 = vpop.eup %2272  ;;  %v1321_v37 = vadd.f32 %v2269_v20, %v1320_v31  ;;  %v4229_v31 = vld [vmem:[#allocation7 + $0xe0] sm:$0xff] }
 0x3f3   :  { %v1340_v39 = vadd.f32 %v2271_v25, %v1339_v34  ;;  %v1357_v41 = vmul.f32 %v2273_v36, %v1355_v28  ;;  %v2275_v62 = vpop.eup %2274  ;;  %vm1362_vm13 = vweird.f32 %v2273_v36  ;;  %v4196_v28 = vld [vmem:[#allocation7 + $0x148] sm:$0xff]  ;;  %v4235_v34 = vld [vmem:[#allocation7 + $0xf0] sm:$0xff] }
 0x3f4   :  { %v1325_v50 = vsel %vm1324_vm9, %v2269_v20, %v1321_v37  ;;  %vm1363_vm15 = vmor %vm1361_vm14, %vm1362_vm13  ;;  %v4199_v20 = vld [vmem:[#allocation7 + $0x150] sm:$0xff]  ;;  %v4244_v37 = vld [vmem:[#allocation7 + $0xc8] sm:$0xff] }
 0x3f5   :  { %v1330_v61 = vsel %vm1327_vm11, %v1329_v38, %v1325_v50  ;;  %v1344_v44 = vsel %vm1343_vm10, %v2271_v25, %v1340_v39  ;;  %v1358_v52 = vsub.f32 1.0, %v1357_v41  ;;  %v4205_v25 = vld [vmem:[#allocation7 + $0x120] sm:$0xff]  ;;  %5641 = vst [vmem:[#allocation16_spill] sm:$0xff] %v4244_v37  ;;  %v4247_v38 = vld [vmem:[#allocation7 + $0xd0] sm:$0xff]  ;;  %v4250_v39 = vld [vmem:[#allocation7 + $0xd8] sm:$0xff] }
 0x3f6   :  { %v1349_v48 = vsel %vm1346_vm12, %v1348_v43, %v1344_v44  ;;  %v1372_v53 = vmul.f32 %v2275_v62, %v1330_v61  ;;  %5642 = vst [vmem:[#allocation17_spill] sm:$0xff] %v4247_v38  ;;  %v4253_v41 = vld [vmem:[#allocation7 + $0xa0] sm:$0xff]  ;;  %v4256_v43 = vld [vmem:[#allocation7 + $0xa8] sm:$0xff]  ;;  %v4259_v50 = vld [vmem:[#allocation7 + $0xb0] sm:$0xff] }
 0x3f7   :  { %v1371_v58 = vmul.f32 %v1349_v48, %v3977_v4  ;;  %v1359_v47 = vmul.f32 %v2273_v36, %v1358_v52  ;;  %v181_v4 = vpop.permute.xlu2 %180  ;;  %5643 = vst [vmem:[#allocation18_spill] sm:$0xff] %v4250_v39  ;;  %v4262_v62 = vld [vmem:[#allocation7 + $0xb8] sm:$0xff]  ;;  %v4265_v61 = vld [vmem:[#allocation7 + $0x80] sm:$0xff]  ;;  %v4268_v44 = vld [vmem:[#allocation7 + $0x88] sm:$0xff] }
 0x3f8   :  { %vm182_vm1 = vcmp.eq.s32.totalorder %v181_v4, %v3211_v42  ;;  %5644 = vst [vmem:[#allocation19_spill] sm:$0xff] %v4253_v41  ;;  %v4271_v52 = vld [vmem:[#allocation7 + $0x90] sm:$0xff]  ;;  %v4274_v48 = vld [vmem:[#allocation7 + $0x98] sm:$0xff] }
 0x3f9   :  { %v4117_v59 = vadd.f32 %v1372_v53, %v1371_v58  ;;  %v1360_v54 = vadd.f32 %v2273_v36, %v1359_v47  ;;  %5645 = vst [vmem:[#allocation20_spill] sm:$0xff] %v4256_v43  ;;  %v4277_v53 = vld [vmem:[#allocation7 + $0x60] sm:$0xff]  ;;  %v4280_v58 = vld [vmem:[#allocation7 + $0x68] sm:$0xff]  ;;  %v4283_v47 = vld [vmem:[#allocation7 + $0x70] sm:$0xff] }
 0x3fa   :  { %5646 = vst [vmem:[#allocation21_spill] sm:$0xff] %v4259_v50  ;;  %v4310_v4 = vld [vmem:[#allocation7 + $0x38] sm:$0xff] }
 0x3fb   :  { %2276 = vtanh.f32 %v4117_v59  ;;  %v1364_v56 = vsel %vm1363_vm15, %v2273_v36, %v1360_v54  ;;  %v4241_v36 = vld [vmem:[#allocation7 + $0xc0] sm:$0xff]  ;;  %5647 = vst [vmem:[#allocation22_spill] sm:$0xff] %v4262_v62  ;;  %v4286_v54 = vld [vmem:[#allocation7 + $0x78] sm:$0xff] }
 0x3fc   :  { %v1369_v49 = vsel %vm1366_vm0, %v1368_v63, %v1364_v56  ;;  %5640 = vst [vmem:[#allocation15_spill] sm:$0xff] %v4241_v36  ;;  %v4295_v56 = vld [vmem:[#allocation7 + $0x50] sm:$0xff]  ;;  %v4298_v63 = vld [vmem:[#allocation7 + $0x58] sm:$0xff] }
 0x3fd   :  { %5648 = vst [vmem:[#allocation23_spill] sm:$0xff] %v4265_v61 }
 0x3fe   :  { %5649 = vst [vmem:[#allocation24_spill] sm:$0xff] %v4268_v44 }
 0x3ff   :  { %5650 = vst [vmem:[#allocation25_spill] sm:$0xff] %v4271_v52 }
 0x400   :  { %5651 = vst [vmem:[#allocation26_spill] sm:$0xff] %v4274_v48 }
 0x401   :  { %v2277_v57 = vpop.eup %2276  ;;  %5652 = vst [vmem:[#allocation27_spill] sm:$0xff] %v4277_v53 }
 0x402   :  { %v1375_v0 = vmul.f32 %v2277_v57, %v1369_v49  ;;  %5653 = vst [vmem:[#allocation28_spill] sm:$0xff] %v4280_v58  ;;  %v4301_v57 = vld [vmem:[#allocation7 + $0x20] sm:$0xff]  ;;  %v4304_v49 = vld [vmem:[#allocation7 + $0x28] sm:$0xff] }
 0x403   :  { %5654 = vst [vmem:[#allocation29_spill] sm:$0xff] %v4283_v47 }
 0x404   :  { %1392 = vmatmul.f32.vlgmr.msra.gmra.mxu0 %v1375_v0  ;;  %1412 = vmatmul.f32.vlgmr.msra.gmra.mxu1 %v1375_v0  ;;  %5655 = vst [vmem:[#allocation30_spill] sm:$0xff] %v4286_v54 }
 0x405   :  { %1432 = vmatmul.f32.vlgmr.msra.gmra.mxu2 %v1375_v0  ;;  %1452 = vmatmul.f32.vlgmr.msra.gmra.mxu3 %v1375_v0  ;;  %5658 = vst [vmem:[#allocation33_spill] sm:$0xff] %v4295_v56  ;;  %v4307_v0 = vld [vmem:[#allocation7 + $0x30] sm:$0xff] }
 0x406   :  { %1599 = vmatpush.msra.mxu0 %v4120_v51  ;;  %1619 = vmatpush.msra.mxu1 %v4123_v55  ;;  %5659 = vst [vmem:[#allocation34_spill] sm:$0xff] %v4298_v63 }
 0x407   :  { %1639 = vmatpush.msra.mxu2 %v4126_v46  ;;  %1659 = vmatpush.msra.mxu3 %v4129_v40  ;;  %5660 = vst [vmem:[#allocation35_spill] sm:$0xff] %v4301_v57 }
 0x408   :  { %1600 = vmatpush.msra.mxu0 %v4132_v3  ;;  %1620 = vmatpush.msra.mxu1 %v4135_v5  ;;  %5661 = vst [vmem:[#allocation36_spill] sm:$0xff] %v4304_v49 }
 0x409   :  { %1640 = vmatpush.msra.mxu2 %v4139_v6  ;;  %1660 = vmatpush.msra.mxu3 %v4142_v22  ;;  %5662 = vst [vmem:[#allocation37_spill] sm:$0xff] %v4307_v0 }
 0x40a   :  { %1601 = vmatpush.msra.mxu0 %v4145_v7  ;;  %1621 = vmatpush.msra.mxu1 %v4148_v10  ;;  %5663 = vst [vmem:[#allocation38_spill] sm:$0xff] %v4310_v4 }
 0x40b   :  { %1641 = vmatpush.msra.mxu2 %v4151_v12  ;;  %1661 = vmatpush.msra.mxu3 %v4154_v9 }
 0x40c   :  { %2148 = vmatmul.msk.f32.vlgmr.msrb.gmra.mxu0 %vm182_vm1, %v5270_v2  ;;  %2149 = vmatmul.msk.f32.vlgmr.msrb.gmra.mxu1 %vm182_vm1, %v5270_v2 }
 0x40d   :  { %2150 = vmatmul.msk.f32.vlgmr.msrb.gmra.mxu2 %vm182_vm1, %v5270_v2  ;;  %2151 = vmatmul.msk.f32.vlgmr.msrb.gmra.mxu3 %vm182_vm1, %v5270_v2 }
 0x40e   :  { %1602 = vmatpush.msra.mxu0 %v4169_v13  ;;  %1622 = vmatpush.msra.mxu1 %v4172_v30 }
 0x40f   :  { %1642 = vmatpush.msra.mxu2 %v4175_v21  ;;  %1662 = vmatpush.msra.mxu3 %v4178_v23 }
 0x410   :  { %1603 = vmatpush.msra.mxu0 %v4181_v19  ;;  %1623 = vmatpush.msra.mxu1 %v4184_v17 }
 0x411   :  { %1643 = vmatpush.msra.mxu2 %v4187_v24  ;;  %1663 = vmatpush.msra.mxu3 %v4190_v18 }
 0x412   :  { %1604 = vmatpush.msra.mxu0 %v4193_v26  ;;  %1624 = vmatpush.msra.mxu1 %v4196_v28 }
 0x413   :  { %1644 = vmatpush.msra.mxu2 %v4199_v20  ;;  %1664 = vmatpush.msra.mxu3 %v4202_v29 }
 0x414   :  { %1605 = vmatpush.msra.mxu0 %v4205_v25  ;;  %1625 = vmatpush.msra.mxu1 %v4208_v16 }
 0x415   :  { %1645 = vmatpush.msra.mxu2 %v4211_v15  ;;  %1665 = vmatpush.msra.mxu3 %v4214_v45 }
 0x416   :  { %1606 = vmatpush.msra.mxu0 %v4217_v27  ;;  %1626 = vmatpush.msra.mxu1 %v4220_v11 }
 0x417   :  { %1646 = vmatpush.msra.mxu2 %v4223_v8  ;;  %1666 = vmatpush.msra.mxu3 %v4226_v14 }
 0x418   :  { %1607 = vmatpush.msra.mxu0 %v4229_v31  ;;  %1627 = vmatpush.msra.mxu1 %v4232_v32 }
 0x419   :  { %1647 = vmatpush.msra.mxu2 %v4235_v34  ;;  %1667 = vmatpush.msra.mxu3 %v4238_v35 }
 0x41a   :  { %1608 = vmatpush.msra.mxu0 %v4241_v36  ;;  %1628 = vmatpush.msra.mxu1 %v4244_v37 }
 0x41b   :  { %1648 = vmatpush.msra.mxu2 %v4247_v38  ;;  %1668 = vmatpush.msra.mxu3 %v4250_v39 }
 0x41c   :  { %1609 = vmatpush.msra.mxu0 %v4253_v41  ;;  %1629 = vmatpush.msra.mxu1 %v4256_v43 }
 0x41d   :  { %1649 = vmatpush.msra.mxu2 %v4259_v50  ;;  %1669 = vmatpush.msra.mxu3 %v4262_v62 }
 0x41e   :  { %1610 = vmatpush.msra.mxu0 %v4265_v61  ;;  %1630 = vmatpush.msra.mxu1 %v4268_v44 }
 0x41f   :  { %1650 = vmatpush.msra.mxu2 %v4271_v52  ;;  %1670 = vmatpush.msra.mxu3 %v4274_v48 }
 0x420   :  { %1611 = vmatpush.msra.mxu0 %v4277_v53  ;;  %1631 = vmatpush.msra.mxu1 %v4280_v58 }
 0x421   :  { %1651 = vmatpush.msra.mxu2 %v4283_v47  ;;  %1671 = vmatpush.msra.mxu3 %v4286_v54 }
 0x422   :  { %1612 = vmatpush.msra.mxu0 %v4289_v1  ;;  %1632 = vmatpush.msra.mxu1 %v4292_v60 }
 0x423   :  { %1652 = vmatpush.msra.mxu2 %v4295_v56  ;;  %1672 = vmatpush.msra.mxu3 %v4298_v63  ;;  %v4313_v56 = vld [vmem:[#allocation7] sm:$0xff]  ;;  %v4316_v63 = vld [vmem:[#allocation7 + $0x8] sm:$0xff] }
 0x424   :  { %1613 = vmatpush.msra.mxu0 %v4301_v57  ;;  %1633 = vmatpush.msra.mxu1 %v4304_v49  ;;  %5664 = vst [vmem:[#allocation39_spill] sm:$0xff] %v4313_v56  ;;  %v4319_v57 = vld [vmem:[#allocation7 + $0x10] sm:$0xff]  ;;  %v4322_v49 = vld [vmem:[#allocation7 + $0x18] sm:$0xff] }
 0x425   :  { %1653 = vmatpush.msra.mxu2 %v4307_v0  ;;  %1673 = vmatpush.msra.mxu3 %v4310_v4  ;;  %5665 = vst [vmem:[#allocation40_spill] sm:$0xff] %v4316_v63  ;;  %v4325_v0 = vld [vmem:[#allocation5 + $0x1e0] sm:$0xff]  ;;  %v4328_v4 = vld [vmem:[#allocation5 + $0x1e8] sm:$0xff] }
 0x426   :  { %1614 = vmatpush.msra.mxu0 %v4313_v56  ;;  %1634 = vmatpush.msra.mxu1 %v4316_v63  ;;  %5666 = vst [vmem:[#allocation41_spill] sm:$0xff] %v4319_v57  ;;  %v4331_v56 = vld [vmem:[#allocation5 + $0x1f0] sm:$0xff]  ;;  %v4334_v63 = vld [vmem:[#allocation5 + $0x1f8] sm:$0xff] }
 0x427   :  { %1654 = vmatpush.msra.mxu2 %v4319_v57  ;;  %5667 = vst [vmem:[#allocation42_spill] sm:$0xff] %v4322_v49  ;;  %1674 = vmatpush.msra.mxu3 %v4322_v49  ;;  %v4337_v57 = vld [vmem:[#allocation5 + $0x1c0] sm:$0xff]  ;;  %v4340_v49 = vld [vmem:[#allocation5 + $0x1c8] sm:$0xff] }
 0x428   :  { %5668 = vst [vmem:[#allocation43_spill] sm:$0xff] %v4325_v0  ;;  %1679 = vmatpush.msrb.mxu0 %v4325_v0  ;;  %1699 = vmatpush.msrb.mxu1 %v4328_v4  ;;  %v4343_v0 = vld [vmem:[#allocation5 + $0x1d0] sm:$0xff] }
 0x429   :  { %5669 = vst [vmem:[#allocation44_spill] sm:$0xff] %v4328_v4  ;;  %1719 = vmatpush.msrb.mxu2 %v4331_v56  ;;  %1739 = vmatpush.msrb.mxu3 %v4334_v63  ;;  %v4346_v4 = vld [vmem:[#allocation5 + $0x1d8] sm:$0xff] }
 0x42a   :  { %5670 = vst [vmem:[#allocation45_spill] sm:$0xff] %v4331_v56  ;;  %1680 = vmatpush.msrb.mxu0 %v4337_v57  ;;  %1700 = vmatpush.msrb.mxu1 %v4340_v49  ;;  %v4349_v56 = vld [vmem:[#allocation5 + $0x1a0] sm:$0xff] }
 0x42b   :  { %5671 = vst [vmem:[#allocation46_spill] sm:$0xff] %v4334_v63  ;;  %1720 = vmatpush.msrb.mxu2 %v4343_v0  ;;  %1740 = vmatpush.msrb.mxu3 %v4346_v4  ;;  %v4352_v63 = vld [vmem:[#allocation5 + $0x1a8] sm:$0xff] }
 0x42c   :  { %5672 = vst [vmem:[#allocation47_spill] sm:$0xff] %v4337_v57  ;;  %1681 = vmatpush.msrb.mxu0 %v4349_v56  ;;  %1701 = vmatpush.msrb.mxu1 %v4352_v63  ;;  %v4355_v57 = vld [vmem:[#allocation5 + $0x1b0] sm:$0xff] }
 0x42d   :  { %5673 = vst [vmem:[#allocation48_spill] sm:$0xff] %v4340_v49  ;;  %1721 = vmatpush.msrb.mxu2 %v4355_v57  ;;  %v4358_v49 = vld [vmem:[#allocation5 + $0x1b8] sm:$0xff] }
 0x42e   :  { %5674 = vst [vmem:[#allocation49_spill] sm:$0xff] %v4343_v0  ;;  %1741 = vmatpush.msrb.mxu3 %v4358_v49  ;;  %v4361_v0 = vld [vmem:[#allocation5 + $0x180] sm:$0xff] }
 0x42f   :  { %5675 = vst [vmem:[#allocation50_spill] sm:$0xff] %v4346_v4  ;;  %1682 = vmatpush.msrb.mxu0 %v4361_v0  ;;  %v4364_v4 = vld [vmem:[#allocation5 + $0x188] sm:$0xff] }
 0x430   :  { %5676 = vst [vmem:[#allocation51_spill] sm:$0xff] %v4349_v56  ;;  %1702 = vmatpush.msrb.mxu1 %v4364_v4  ;;  %v4367_v56 = vld [vmem:[#allocation5 + $0x190] sm:$0xff] }
 0x431   :  { %5677 = vst [vmem:[#allocation52_spill] sm:$0xff] %v4352_v63  ;;  %1722 = vmatpush.msrb.mxu2 %v4367_v56  ;;  %v4370_v63 = vld [vmem:[#allocation5 + $0x198] sm:$0xff] }
 0x432   :  { %5678 = vst [vmem:[#allocation53_spill] sm:$0xff] %v4355_v57  ;;  %1742 = vmatpush.msrb.mxu3 %v4370_v63  ;;  %v4373_v57 = vld [vmem:[#allocation5 + $0x160] sm:$0xff] }
 0x433   :  { %5679 = vst [vmem:[#allocation54_spill] sm:$0xff] %v4358_v49  ;;  %1683 = vmatpush.msrb.mxu0 %v4373_v57  ;;  %v4376_v49 = vld [vmem:[#allocation5 + $0x168] sm:$0xff] }
 0x434   :  { %5680 = vst [vmem:[#allocation55_spill] sm:$0xff] %v4361_v0  ;;  %1703 = vmatpush.msrb.mxu1 %v4376_v49  ;;  %v4379_v0 = vld [vmem:[#allocation5 + $0x170] sm:$0xff] }
 0x435   :  { %5681 = vst [vmem:[#allocation56_spill] sm:$0xff] %v4364_v4  ;;  %1723 = vmatpush.msrb.mxu2 %v4379_v0  ;;  %v4382_v4 = vld [vmem:[#allocation5 + $0x178] sm:$0xff] }
 0x436   :  { %5682 = vst [vmem:[#allocation57_spill] sm:$0xff] %v4367_v56  ;;  %1743 = vmatpush.msrb.mxu3 %v4382_v4  ;;  %v4385_v56 = vld [vmem:[#allocation5 + $0x140] sm:$0xff] }
 0x437   :  { %5683 = vst [vmem:[#allocation58_spill] sm:$0xff] %v4370_v63  ;;  %1684 = vmatpush.msrb.mxu0 %v4385_v56  ;;  %v4388_v63 = vld [vmem:[#allocation5 + $0x148] sm:$0xff] }
 0x438   :  { %5684 = vst [vmem:[#allocation59_spill] sm:$0xff] %v4373_v57  ;;  %1704 = vmatpush.msrb.mxu1 %v4388_v63  ;;  %v4391_v57 = vld [vmem:[#allocation5 + $0x150] sm:$0xff] }
 0x439   :  { %5685 = vst [vmem:[#allocation60_spill] sm:$0xff] %v4376_v49  ;;  %1724 = vmatpush.msrb.mxu2 %v4391_v57  ;;  %v4394_v49 = vld [vmem:[#allocation5 + $0x158] sm:$0xff] }
 0x43a   :  { %5686 = vst [vmem:[#allocation61_spill] sm:$0xff] %v4379_v0  ;;  %1744 = vmatpush.msrb.mxu3 %v4394_v49  ;;  %v4397_v0 = vld [vmem:[#allocation5 + $0x120] sm:$0xff] }
 0x43b   :  { %5687 = vst [vmem:[#allocation62_spill] sm:$0xff] %v4382_v4  ;;  %1685 = vmatpush.msrb.mxu0 %v4397_v0  ;;  %v4400_v4 = vld [vmem:[#allocation5 + $0x128] sm:$0xff] }
 0x43c   :  { %5688 = vst [vmem:[#allocation63_spill] sm:$0xff] %v4385_v56  ;;  %1705 = vmatpush.msrb.mxu1 %v4400_v4  ;;  %v4403_v56 = vld [vmem:[#allocation5 + $0x130] sm:$0xff] }
 0x43d   :  { %5689 = vst [vmem:[#allocation64_spill] sm:$0xff] %v4388_v63  ;;  %1725 = vmatpush.msrb.mxu2 %v4403_v56  ;;  %v4406_v63 = vld [vmem:[#allocation5 + $0x138] sm:$0xff] }
 0x43e   :  { %5690 = vst [vmem:[#allocation65_spill] sm:$0xff] %v4391_v57  ;;  %1745 = vmatpush.msrb.mxu3 %v4406_v63  ;;  %v4409_v57 = vld [vmem:[#allocation5 + $0x100] sm:$0xff] }
 0x43f   :  { %5691 = vst [vmem:[#allocation66_spill] sm:$0xff] %v4394_v49  ;;  %1686 = vmatpush.msrb.mxu0 %v4409_v57  ;;  %v4412_v49 = vld [vmem:[#allocation5 + $0x108] sm:$0xff] }
 0x440   :  { %5692 = vst [vmem:[#allocation67_spill] sm:$0xff] %v4397_v0  ;;  %1706 = vmatpush.msrb.mxu1 %v4412_v49  ;;  %v4415_v0 = vld [vmem:[#allocation5 + $0x110] sm:$0xff] }
 0x441   :  { %5693 = vst [vmem:[#allocation68_spill] sm:$0xff] %v4400_v4  ;;  %1726 = vmatpush.msrb.mxu2 %v4415_v0  ;;  %v4418_v4 = vld [vmem:[#allocation5 + $0x118] sm:$0xff] }
 0x442   :  { %5694 = vst [vmem:[#allocation69_spill] sm:$0xff] %v4403_v56  ;;  %1746 = vmatpush.msrb.mxu3 %v4418_v4  ;;  %v4421_v56 = vld [vmem:[#allocation5 + $0xe0] sm:$0xff] }
 0x443   :  { %5695 = vst [vmem:[#allocation70_spill] sm:$0xff] %v4406_v63  ;;  %1687 = vmatpush.msrb.mxu0 %v4421_v56  ;;  %v4424_v63 = vld [vmem:[#allocation5 + $0xe8] sm:$0xff] }
 0x444   :  { %5696 = vst [vmem:[#allocation71_spill] sm:$0xff] %v4409_v57  ;;  %1707 = vmatpush.msrb.mxu1 %v4424_v63  ;;  %v4427_v57 = vld [vmem:[#allocation5 + $0xf0] sm:$0xff] }
 0x445   :  { %5697 = vst [vmem:[#allocation72_spill] sm:$0xff] %v4412_v49  ;;  %1727 = vmatpush.msrb.mxu2 %v4427_v57  ;;  %v4430_v49 = vld [vmem:[#allocation5 + $0xf8] sm:$0xff] }
 0x446   :  { %5698 = vst [vmem:[#allocation73_spill] sm:$0xff] %v4415_v0  ;;  %1747 = vmatpush.msrb.mxu3 %v4430_v49  ;;  %v4433_v0 = vld [vmem:[#allocation5 + $0xc0] sm:$0xff] }
 0x447   :  { %5699 = vst [vmem:[#allocation74_spill] sm:$0xff] %v4418_v4  ;;  %1688 = vmatpush.msrb.mxu0 %v4433_v0  ;;  %v4436_v4 = vld [vmem:[#allocation5 + $0xc8] sm:$0xff] }
 0x448   :  { %5700 = vst [vmem:[#allocation75_spill] sm:$0xff] %v4421_v56  ;;  %1708 = vmatpush.msrb.mxu1 %v4436_v4  ;;  %v4439_v56 = vld [vmem:[#allocation5 + $0xd0] sm:$0xff] }
 0x449   :  { %5701 = vst [vmem:[#allocation76_spill] sm:$0xff] %v4424_v63  ;;  %1728 = vmatpush.msrb.mxu2 %v4439_v56  ;;  %v4442_v63 = vld [vmem:[#allocation5 + $0xd8] sm:$0xff] }
 0x44a   :  { %5702 = vst [vmem:[#allocation77_spill] sm:$0xff] %v4427_v57  ;;  %1748 = vmatpush.msrb.mxu3 %v4442_v63  ;;  %v4445_v57 = vld [vmem:[#allocation5 + $0xa0] sm:$0xff] }
 0x44b   :  { %5703 = vst [vmem:[#allocation78_spill] sm:$0xff] %v4430_v49  ;;  %1689 = vmatpush.msrb.mxu0 %v4445_v57  ;;  %v4448_v49 = vld [vmem:[#allocation5 + $0xa8] sm:$0xff] }
 0x44c   :  { %5704 = vst [vmem:[#allocation79_spill] sm:$0xff] %v4433_v0  ;;  %1709 = vmatpush.msrb.mxu1 %v4448_v49  ;;  %v4451_v0 = vld [vmem:[#allocation5 + $0xb0] sm:$0xff] }
 0x44d   :  { %5705 = vst [vmem:[#allocation80_spill] sm:$0xff] %v4436_v4  ;;  %1729 = vmatpush.msrb.mxu2 %v4451_v0  ;;  %v4454_v4 = vld [vmem:[#allocation5 + $0xb8] sm:$0xff] }
 0x44e   :  { %5706 = vst [vmem:[#allocation81_spill] sm:$0xff] %v4439_v56  ;;  %1749 = vmatpush.msrb.mxu3 %v4454_v4  ;;  %v4457_v56 = vld [vmem:[#allocation5 + $0x80] sm:$0xff] }
 0x44f   :  { %5707 = vst [vmem:[#allocation82_spill] sm:$0xff] %v4442_v63  ;;  %1690 = vmatpush.msrb.mxu0 %v4457_v56  ;;  %v4460_v63 = vld [vmem:[#allocation5 + $0x88] sm:$0xff] }
 0x450   :  { %5708 = vst [vmem:[#allocation83_spill] sm:$0xff] %v4445_v57  ;;  %1710 = vmatpush.msrb.mxu1 %v4460_v63  ;;  %v4463_v57 = vld [vmem:[#allocation5 + $0x90] sm:$0xff] }
 0x451   :  { %5709 = vst [vmem:[#allocation84_spill] sm:$0xff] %v4448_v49  ;;  %1730 = vmatpush.msrb.mxu2 %v4463_v57  ;;  %v4466_v49 = vld [vmem:[#allocation5 + $0x98] sm:$0xff] }
 0x452   :  { %5710 = vst [vmem:[#allocation85_spill] sm:$0xff] %v4451_v0  ;;  %1750 = vmatpush.msrb.mxu3 %v4466_v49  ;;  %v4469_v0 = vld [vmem:[#allocation5 + $0x60] sm:$0xff] }
 0x453   :  { %5711 = vst [vmem:[#allocation86_spill] sm:$0xff] %v4454_v4  ;;  %1691 = vmatpush.msrb.mxu0 %v4469_v0  ;;  %v4472_v4 = vld [vmem:[#allocation5 + $0x68] sm:$0xff] }
 0x454   :  { %5712 = vst [vmem:[#allocation87_spill] sm:$0xff] %v4457_v56  ;;  %1711 = vmatpush.msrb.mxu1 %v4472_v4  ;;  %v4475_v56 = vld [vmem:[#allocation5 + $0x70] sm:$0xff] }
 0x455   :  { %5713 = vst [vmem:[#allocation88_spill] sm:$0xff] %v4460_v63  ;;  %1731 = vmatpush.msrb.mxu2 %v4475_v56  ;;  %v4478_v63 = vld [vmem:[#allocation5 + $0x78] sm:$0xff] }
 0x456   :  { %5714 = vst [vmem:[#allocation89_spill] sm:$0xff] %v4463_v57  ;;  %1751 = vmatpush.msrb.mxu3 %v4478_v63  ;;  %v4481_v57 = vld [vmem:[#allocation5 + $0x40] sm:$0xff] }
 0x457   :  { %5715 = vst [vmem:[#allocation90_spill] sm:$0xff] %v4466_v49  ;;  %1692 = vmatpush.msrb.mxu0 %v4481_v57  ;;  %v4484_v49 = vld [vmem:[#allocation5 + $0x48] sm:$0xff] }
 0x458   :  { %5716 = vst [vmem:[#allocation91_spill] sm:$0xff] %v4469_v0  ;;  %1712 = vmatpush.msrb.mxu1 %v4484_v49  ;;  %v4487_v0 = vld [vmem:[#allocation5 + $0x50] sm:$0xff] }
 0x459   :  { %5717 = vst [vmem:[#allocation92_spill] sm:$0xff] %v4472_v4  ;;  %1732 = vmatpush.msrb.mxu2 %v4487_v0  ;;  %v4490_v4 = vld [vmem:[#allocation5 + $0x58] sm:$0xff] }
 0x45a   :  { %5718 = vst [vmem:[#allocation93_spill] sm:$0xff] %v4475_v56  ;;  %1752 = vmatpush.msrb.mxu3 %v4490_v4  ;;  %v4493_v56 = vld [vmem:[#allocation5 + $0x20] sm:$0xff] }
 0x45b   :  { %5719 = vst [vmem:[#allocation94_spill] sm:$0xff] %v4478_v63  ;;  %1693 = vmatpush.msrb.mxu0 %v4493_v56  ;;  %v4496_v63 = vld [vmem:[#allocation5 + $0x28] sm:$0xff] }
 0x45c   :  { %5720 = vst [vmem:[#allocation95_spill] sm:$0xff] %v4481_v57  ;;  %1713 = vmatpush.msrb.mxu1 %v4496_v63  ;;  %v4499_v57 = vld [vmem:[#allocation5 + $0x30] sm:$0xff] }
 0x45d   :  { %5721 = vst [vmem:[#allocation96_spill] sm:$0xff] %v4484_v49  ;;  %1733 = vmatpush.msrb.mxu2 %v4499_v57  ;;  %v4502_v49 = vld [vmem:[#allocation5 + $0x38] sm:$0xff] }
 0x45e   :  { %5722 = vst [vmem:[#allocation97_spill] sm:$0xff] %v4487_v0  ;;  %1753 = vmatpush.msrb.mxu3 %v4502_v49  ;;  %v4505_v0 = vld [vmem:[#allocation5] sm:$0xff] }
 0x45f   :  { %5723 = vst [vmem:[#allocation98_spill] sm:$0xff] %v4490_v4  ;;  %1694 = vmatpush.msrb.mxu0 %v4505_v0  ;;  %v4508_v4 = vld [vmem:[#allocation5 + $0x8] sm:$0xff] }
 0x460   :  { %5724 = vst [vmem:[#allocation99_spill] sm:$0xff] %v4493_v56  ;;  %1714 = vmatpush.msrb.mxu1 %v4508_v4  ;;  %v4511_v56 = vld [vmem:[#allocation5 + $0x10] sm:$0xff] }
 0x461   :  { %5725 = vst [vmem:[#allocation100_spill] sm:$0xff] %v4496_v63  ;;  %1734 = vmatpush.msrb.mxu2 %v4511_v56  ;;  %v4514_v63 = vld [vmem:[#allocation5 + $0x18] sm:$0xff] }
 0x462   :  { %5726 = vst [vmem:[#allocation101_spill] sm:$0xff] %v4499_v57  ;;  %1754 = vmatpush.msrb.mxu3 %v4514_v63 }
 0x463   :  { %5727 = vst [vmem:[#allocation102_spill] sm:$0xff] %v4502_v49 }
 0x464   :  { %5728 = vst [vmem:[#allocation103_spill] sm:$0xff] %v4505_v0 }
 0x465   :  { %5729 = vst [vmem:[#allocation104_spill] sm:$0xff] %v4508_v4 }
 0x466   :  { %5730 = vst [vmem:[#allocation105_spill] sm:$0xff] %v4511_v56 }
 0x467   :  { %5731 = vst [vmem:[#allocation106_spill] sm:$0xff] %v4514_v63 }
 0x481   :  { %v1393_v57 = vpop.f32.mrf.mxu0  ;;  %v1413_v60 = vpop.f32.mrf.mxu1 }
 0x488   :  { %v1453_v1 = vpop.f32.mrf.mxu3  ;;  %v1433_v4 = vpop.f32.mrf.mxu2 }
 0x489   :  { %v1473_v49 = vpop.f32.mrf.mxu0  ;;  %v1493_v54 = vpop.f32.mrf.mxu1 }
 0x48a   :  { %v1474_v47 = vadd.f32 %v1473_v49, %v1393_v57  ;;  %v1494_v58 = vadd.f32 %v1493_v54, %v1413_v60 }
 0x48c   :  { %v2152_v0 = vmul.f32 -1.442695, %v1474_v47  ;;  %v2153_v53 = vmul.f32 -1.442695, %v1494_v58 }
 0x48e   :  { %2278 = vpow2.f32 %v2152_v0 }
 0x48f   :  { %2280 = vpow2.f32 %v2153_v53 }
 0x490   :  { %v1533_v48 = vpop.f32.mrf.mxu3  ;;  %v1513_v50 = vpop.f32.mrf.mxu2 }
 0x491   :  { %v1534_v52 = vadd.f32 %v1533_v48, %v1453_v1  ;;  %v1514_v54 = vadd.f32 %v1513_v50, %v1433_v4 }
 0x493   :  { %v2154_v44 = vmul.f32 -1.442695, %v1534_v52  ;;  %v2729_v52 = vmov 7  }
 0x494   :  { %v2279_v56 = vpop.eup %2278  ;;  %2195 = vset.pattern.permute.xlu2 %v2729_v52  ;;  %2196 = vset.pattern.permute.xlu0 %v2729_v52 }
 0x495   :  { %v2281_v61 = vpop.eup %2280  ;;  %v1539_v62 = vadd.f32 1.0, %v2279_v56  ;;  %2282 = vpow2.f32 %v2154_v44  ;;  %192 = vperm.xlu2 %2195, %v4113_v33  }
 0x496   :  { %v1558_v63 = vadd.f32 1.0, %v2281_v61 }
 0x497   :  { %2284 = vrcp.f32 %v1539_v62  ;;  %v1551_v48 = vand.u32 2147483648, %v1539_v62  ;;  %v1549_v1 = vand.u32 2147483647, %v1539_v62  ;;  %vm1545_vm4 = vweird.f32 %v1539_v62 }
 0x498   :  { %2286 = vrcp.f32 %v1558_v63  ;;  %v1570_v44 = vand.u32 2147483648, %v1558_v63  ;;  %v1568_v50 = vand.u32 2147483647, %v1558_v63  ;;  %vm1564_vm5 = vweird.f32 %v1558_v63 }
 0x499   :  { %v1552_v4 = vor.u32 1.1754944e-38, %v1551_v48  ;;  %vm1550_vm8 = vcmp.eq.f32.partialorder %v1549_v1, 8.507059e+37 }
 0x49a   :  { %vm1569_vm9 = vcmp.eq.f32.partialorder %v1568_v50, 8.507059e+37  ;;  %v5772_v50 = vld [vmem:[#allocation55_spill] sm:$0xff] }
 0x49b   :  { %v2283_v43 = vpop.eup %2282 }
 0x49c   :  { %v1578_v41 = vadd.f32 1.0, %v2283_v43 }
 0x49d   :  { %v2285_v57 = vpop.eup %2284 }
 0x49e   :  { %v2287_v47 = vpop.eup %2286  ;;  %v1541_v58 = vmul.f32 %v2285_v57, %v1539_v62  ;;  %2288 = vrcp.f32 %v1578_v41  ;;  %vm1546_vm2 = vweird.f32 %v2285_v57  ;;  %v1590_v48 = vand.u32 2147483648, %v1578_v41 }
 0x49f   :  { %v1560_v53 = vmul.f32 %v2287_v47, %v1558_v63  ;;  %2290 = vtanh.f32 %v1514_v54  ;;  %vm1565_vm3 = vweird.f32 %v2287_v47  ;;  %vm1547_vm6 = vmor %vm1545_vm4, %vm1546_vm2  ;;  %vm1584_vm11 = vweird.f32 %v1578_v41 }
 0x4a0   :  { %v1542_v60 = vsub.f32 1.0, %v1541_v58  ;;  %vm1566_vm7 = vmor %vm1564_vm5, %vm1565_vm3  ;;  %v1591_v1 = vor.u32 1.1754944e-38, %v1590_v48  ;;  %v5785_v48 = vld [vmem:[#allocation68_spill] sm:$0xff] }
 0x4a1   :  { %v1561_v49 = vsub.f32 1.0, %v1560_v53  ;;  %v1571_v53 = vor.u32 1.1754944e-38, %v1570_v44 }
 0x4a2   :  { %v1543_v61 = vmul.f32 %v2285_v57, %v1542_v60 }
 0x4a3   :  { %v1562_v43 = vmul.f32 %v2287_v47, %v1561_v49 }
 0x4a4   :  { %v2289_v56 = vpop.eup %2288  ;;  %v1544_v0 = vadd.f32 %v2285_v57, %v1543_v61 }
 0x4a5   :  { %v1563_v58 = vadd.f32 %v2287_v47, %v1562_v43  ;;  %v1580_v54 = vmul.f32 %v2289_v56, %v1578_v41  ;;  %v2291_v60 = vpop.eup %2290  ;;  %vm1585_vm10 = vweird.f32 %v2289_v56 }
 0x4a6   :  { %v1548_v52 = vsel %vm1547_vm6, %v2285_v57, %v1544_v0  ;;  %v1588_v57 = vand.u32 2147483647, %v1578_v41  ;;  %vm1586_vm12 = vmor %vm1584_vm11, %vm1585_vm10  ;;  %v5771_v41 = vld [vmem:[#allocation54_spill] sm:$0xff]  ;;  %v5774_v0 = vld [vmem:[#allocation57_spill] sm:$0xff] }
 0x4a7   :  { %v1553_v39 = vsel %vm1550_vm8, %v1552_v4, %v1548_v52  ;;  %v1567_v38 = vsel %vm1566_vm7, %v2287_v47, %v1563_v58  ;;  %v1581_v33 = vsub.f32 1.0, %v1580_v54  ;;  %v5775_v4 = vld [vmem:[#allocation58_spill] sm:$0xff]  ;;  %v5776_v58 = vld [vmem:[#allocation59_spill] sm:$0xff]  ;;  %v5777_v54 = vld [vmem:[#allocation60_spill] sm:$0xff] }
 0x4a8   :  { %v1572_v49 = vsel %vm1569_vm9, %v1571_v53, %v1567_v38  ;;  %v1595_v37 = vmul.f32 %v2291_v60, %v1553_v39  ;;  %vm1589_vm13 = vcmp.eq.f32.partialorder %v1588_v57, 8.507059e+37  ;;  %v5770_v39 = vld [vmem:[#allocation53_spill] sm:$0xff]  ;;  %v5779_v52 = vld [vmem:[#allocation62_spill] sm:$0xff]  ;;  %v5780_v60 = vld [vmem:[#allocation63_spill] sm:$0xff] }
 0x4a9   :  { %v1594_v36 = vmul.f32 %v1572_v49, %v4117_v59  ;;  %v1582_v61 = vmul.f32 %v2289_v56, %v1581_v33  ;;  %v187_v59 = vpop.permute.xlu1 %186  ;;  %v5778_v53 = vld [vmem:[#allocation61_spill] sm:$0xff]  ;;  %v5781_v33 = vld [vmem:[#allocation64_spill] sm:$0xff] }
 0x4aa   :  { %vm188_vm14 = vcmp.eq.s32.totalorder %v187_v59, %v3211_v42  ;;  %v5782_v49 = vld [vmem:[#allocation65_spill] sm:$0xff]  ;;  %v5792_v59 = vld [vmem:[#allocation75_spill] sm:$0xff] }
 0x4ab   :  { %v4519_v62 = vadd.f32 %v1595_v37, %v1594_v36  ;;  %v1583_v63 = vadd.f32 %v2289_v56, %v1582_v61  ;;  %v5768_v36 = vld [vmem:[#allocation51_spill] sm:$0xff]  ;;  %v5769_v37 = vld [vmem:[#allocation52_spill] sm:$0xff]  ;;  %v5783_v61 = vld [vmem:[#allocation66_spill] sm:$0xff] }
 0x4ac   :  { %v5786_v57 = vld [vmem:[#allocation69_spill] sm:$0xff] }
 0x4ad   :  { %2292 = vtanh.f32 %v4519_v62  ;;  %v1587_v44 = vsel %vm1586_vm12, %v2289_v56, %v1583_v63  ;;  %v5773_v56 = vld [vmem:[#allocation56_spill] sm:$0xff]  ;;  %v5784_v63 = vld [vmem:[#allocation67_spill] sm:$0xff] }
 0x4ae   :  { %v1592_v43 = vsel %vm1589_vm13, %v1591_v1, %v1587_v44  ;;  %v5787_v44 = vld [vmem:[#allocation70_spill] sm:$0xff]  ;;  %v5788_v1 = vld [vmem:[#allocation71_spill] sm:$0xff] }
 0x4b3   :  { %v2293_v47 = vpop.eup %2292 }
 0x4b4   :  { %v1598_v38 = vmul.f32 %v2293_v47, %v1592_v43  ;;  %v5789_v47 = vld [vmem:[#allocation72_spill] sm:$0xff]  ;;  %v5790_v43 = vld [vmem:[#allocation73_spill] sm:$0xff] }
 0x4b6   :  { %1615 = vmatmul.f32.vlgmr.msra.gmra.mxu0 %v1598_v38  ;;  %1635 = vmatmul.f32.vlgmr.msra.gmra.mxu1 %v1598_v38 }
 0x4b7   :  { %1655 = vmatmul.f32.vlgmr.msra.gmra.mxu2 %v1598_v38  ;;  %1675 = vmatmul.f32.vlgmr.msra.gmra.mxu3 %v1598_v38  ;;  %v5791_v38 = vld [vmem:[#allocation74_spill] sm:$0xff] }
 0x4b8   :  { %1822 = vmatpush.msra.mxu0 %v4120_v51  ;;  %1842 = vmatpush.msra.mxu1 %v4123_v55  ;;  %v5732_v51 = vld [vmem:[#allocation15_spill] sm:$0xff]  ;;  %v5733_v55 = vld [vmem:[#allocation16_spill] sm:$0xff] }
 0x4b9   :  { %1862 = vmatpush.msra.mxu2 %v4126_v46  ;;  %1882 = vmatpush.msra.mxu3 %v4129_v40  ;;  %v5734_v46 = vld [vmem:[#allocation17_spill] sm:$0xff]  ;;  %v5735_v40 = vld [vmem:[#allocation18_spill] sm:$0xff] }
 0x4ba   :  { %1823 = vmatpush.msra.mxu0 %v4132_v3  ;;  %1843 = vmatpush.msra.mxu1 %v4135_v5  ;;  %v5736_v3 = vld [vmem:[#allocation19_spill] sm:$0xff]  ;;  %v5737_v5 = vld [vmem:[#allocation20_spill] sm:$0xff] }
 0x4bb   :  { %1863 = vmatpush.msra.mxu2 %v4139_v6  ;;  %1883 = vmatpush.msra.mxu3 %v4142_v22  ;;  %v5738_v6 = vld [vmem:[#allocation21_spill] sm:$0xff]  ;;  %v5739_v22 = vld [vmem:[#allocation22_spill] sm:$0xff] }
 0x4bc   :  { %1824 = vmatpush.msra.mxu0 %v4145_v7  ;;  %1844 = vmatpush.msra.mxu1 %v4148_v10  ;;  %v5740_v7 = vld [vmem:[#allocation23_spill] sm:$0xff]  ;;  %v5741_v10 = vld [vmem:[#allocation24_spill] sm:$0xff] }
 0x4bd   :  { %1864 = vmatpush.msra.mxu2 %v4151_v12  ;;  %1884 = vmatpush.msra.mxu3 %v4154_v9  ;;  %v5742_v12 = vld [vmem:[#allocation25_spill] sm:$0xff]  ;;  %v5743_v9 = vld [vmem:[#allocation26_spill] sm:$0xff] }
 0x4be   :  { %2155 = vmatmul.msk.f32.vlgmr.msrb.gmra.mxu0 %vm188_vm14, %v5270_v2  ;;  %2156 = vmatmul.msk.f32.vlgmr.msrb.gmra.mxu1 %vm188_vm14, %v5270_v2 }
 0x4bf   :  { %2157 = vmatmul.msk.f32.vlgmr.msrb.gmra.mxu2 %vm188_vm14, %v5270_v2  ;;  %2158 = vmatmul.msk.f32.vlgmr.msrb.gmra.mxu3 %vm188_vm14, %v5270_v2 }
 0x4c0   :  { %1825 = vmatpush.msra.mxu0 %v4169_v13  ;;  %1845 = vmatpush.msra.mxu1 %v4172_v30  ;;  %v5744_v13 = vld [vmem:[#allocation27_spill] sm:$0xff]  ;;  %v5745_v30 = vld [vmem:[#allocation28_spill] sm:$0xff] }
 0x4c1   :  { %1865 = vmatpush.msra.mxu2 %v4175_v21  ;;  %1885 = vmatpush.msra.mxu3 %v4178_v23  ;;  %v5746_v21 = vld [vmem:[#allocation29_spill] sm:$0xff]  ;;  %v5747_v23 = vld [vmem:[#allocation30_spill] sm:$0xff] }
 0x4c2   :  { %1826 = vmatpush.msra.mxu0 %v4181_v19  ;;  %1846 = vmatpush.msra.mxu1 %v4184_v17  ;;  %v5748_v19 = vld [vmem:[#allocation31_spill] sm:$0xff]  ;;  %v5749_v17 = vld [vmem:[#allocation32_spill] sm:$0xff] }
 0x4c3   :  { %1866 = vmatpush.msra.mxu2 %v4187_v24  ;;  %1886 = vmatpush.msra.mxu3 %v4190_v18  ;;  %v5750_v24 = vld [vmem:[#allocation33_spill] sm:$0xff]  ;;  %v5751_v18 = vld [vmem:[#allocation34_spill] sm:$0xff] }
 0x4c4   :  { %1827 = vmatpush.msra.mxu0 %v4193_v26  ;;  %1847 = vmatpush.msra.mxu1 %v4196_v28  ;;  %v5752_v26 = vld [vmem:[#allocation35_spill] sm:$0xff]  ;;  %v5753_v28 = vld [vmem:[#allocation36_spill] sm:$0xff] }
 0x4c5   :  { %1867 = vmatpush.msra.mxu2 %v4199_v20  ;;  %1887 = vmatpush.msra.mxu3 %v4202_v29  ;;  %v5754_v20 = vld [vmem:[#allocation37_spill] sm:$0xff]  ;;  %v5755_v29 = vld [vmem:[#allocation38_spill] sm:$0xff] }
 0x4c6   :  { %1828 = vmatpush.msra.mxu0 %v4205_v25  ;;  %1848 = vmatpush.msra.mxu1 %v4208_v16  ;;  %v5756_v25 = vld [vmem:[#allocation39_spill] sm:$0xff]  ;;  %v5757_v16 = vld [vmem:[#allocation40_spill] sm:$0xff] }
 0x4c7   :  { %1868 = vmatpush.msra.mxu2 %v4211_v15  ;;  %1888 = vmatpush.msra.mxu3 %v4214_v45  ;;  %v5758_v15 = vld [vmem:[#allocation41_spill] sm:$0xff]  ;;  %v5759_v45 = vld [vmem:[#allocation42_spill] sm:$0xff] }
 0x4c8   :  { %1829 = vmatpush.msra.mxu0 %v4217_v27  ;;  %1849 = vmatpush.msra.mxu1 %v4220_v11  ;;  %v5760_v27 = vld [vmem:[#allocation43_spill] sm:$0xff]  ;;  %v5761_v11 = vld [vmem:[#allocation44_spill] sm:$0xff] }
 0x4c9   :  { %1869 = vmatpush.msra.mxu2 %v4223_v8  ;;  %1889 = vmatpush.msra.mxu3 %v4226_v14  ;;  %v5762_v8 = vld [vmem:[#allocation45_spill] sm:$0xff]  ;;  %v5763_v14 = vld [vmem:[#allocation46_spill] sm:$0xff] }
 0x4ca   :  { %1830 = vmatpush.msra.mxu0 %v4229_v31  ;;  %1850 = vmatpush.msra.mxu1 %v4232_v32  ;;  %v5764_v31 = vld [vmem:[#allocation47_spill] sm:$0xff]  ;;  %v5765_v32 = vld [vmem:[#allocation48_spill] sm:$0xff] }
 0x4cb   :  { %1870 = vmatpush.msra.mxu2 %v4235_v34  ;;  %1890 = vmatpush.msra.mxu3 %v4238_v35  ;;  %v5766_v34 = vld [vmem:[#allocation49_spill] sm:$0xff]  ;;  %v5767_v35 = vld [vmem:[#allocation50_spill] sm:$0xff] }
 0x4cc   :  { %1831 = vmatpush.msra.mxu0 %v5732_v51  ;;  %1851 = vmatpush.msra.mxu1 %v5733_v55  ;;  %v5793_v51 = vld [vmem:[#allocation76_spill] sm:$0xff]  ;;  %v5794_v55 = vld [vmem:[#allocation77_spill] sm:$0xff] }
 0x4cd   :  { %1871 = vmatpush.msra.mxu2 %v5734_v46  ;;  %1891 = vmatpush.msra.mxu3 %v5735_v40  ;;  %v5795_v46 = vld [vmem:[#allocation78_spill] sm:$0xff]  ;;  %v5796_v40 = vld [vmem:[#allocation79_spill] sm:$0xff] }
 0x4ce   :  { %1832 = vmatpush.msra.mxu0 %v5736_v3  ;;  %1852 = vmatpush.msra.mxu1 %v5737_v5  ;;  %v5797_v3 = vld [vmem:[#allocation80_spill] sm:$0xff]  ;;  %v5798_v5 = vld [vmem:[#allocation81_spill] sm:$0xff] }
 0x4cf   :  { %1872 = vmatpush.msra.mxu2 %v5738_v6  ;;  %1892 = vmatpush.msra.mxu3 %v5739_v22  ;;  %v5799_v6 = vld [vmem:[#allocation82_spill] sm:$0xff]  ;;  %v5800_v22 = vld [vmem:[#allocation83_spill] sm:$0xff] }
 0x4d0   :  { %1833 = vmatpush.msra.mxu0 %v5740_v7  ;;  %1853 = vmatpush.msra.mxu1 %v5741_v10  ;;  %v5801_v7 = vld [vmem:[#allocation84_spill] sm:$0xff]  ;;  %v5802_v10 = vld [vmem:[#allocation85_spill] sm:$0xff] }
 0x4d1   :  { %1873 = vmatpush.msra.mxu2 %v5742_v12  ;;  %1893 = vmatpush.msra.mxu3 %v5743_v9  ;;  %v5803_v12 = vld [vmem:[#allocation86_spill] sm:$0xff]  ;;  %v5804_v9 = vld [vmem:[#allocation87_spill] sm:$0xff] }
 0x4d2   :  { %1834 = vmatpush.msra.mxu0 %v5744_v13  ;;  %1854 = vmatpush.msra.mxu1 %v5745_v30  ;;  %v5805_v13 = vld [vmem:[#allocation88_spill] sm:$0xff]  ;;  %v5806_v30 = vld [vmem:[#allocation89_spill] sm:$0xff] }
 0x4d3   :  { %1874 = vmatpush.msra.mxu2 %v5746_v21  ;;  %1894 = vmatpush.msra.mxu3 %v5747_v23  ;;  %v5807_v21 = vld [vmem:[#allocation90_spill] sm:$0xff]  ;;  %v5808_v23 = vld [vmem:[#allocation91_spill] sm:$0xff] }
 0x4d4   :  { %1835 = vmatpush.msra.mxu0 %v5748_v19  ;;  %1855 = vmatpush.msra.mxu1 %v5749_v17  ;;  %v5809_v19 = vld [vmem:[#allocation92_spill] sm:$0xff]  ;;  %v5810_v17 = vld [vmem:[#allocation93_spill] sm:$0xff] }
 0x4d5   :  { %1875 = vmatpush.msra.mxu2 %v5750_v24  ;;  %1895 = vmatpush.msra.mxu3 %v5751_v18  ;;  %v5811_v24 = vld [vmem:[#allocation94_spill] sm:$0xff]  ;;  %v5812_v18 = vld [vmem:[#allocation95_spill] sm:$0xff] }
 0x4d6   :  { %1836 = vmatpush.msra.mxu0 %v5752_v26  ;;  %1856 = vmatpush.msra.mxu1 %v5753_v28  ;;  %v5813_v26 = vld [vmem:[#allocation96_spill] sm:$0xff]  ;;  %v5814_v28 = vld [vmem:[#allocation97_spill] sm:$0xff] }
 0x4d7   :  { %1876 = vmatpush.msra.mxu2 %v5754_v20  ;;  %1896 = vmatpush.msra.mxu3 %v5755_v29  ;;  %v5815_v20 = vld [vmem:[#allocation98_spill] sm:$0xff]  ;;  %v5816_v29 = vld [vmem:[#allocation99_spill] sm:$0xff] }
 0x4d8   :  { %1837 = vmatpush.msra.mxu0 %v5756_v25  ;;  %1857 = vmatpush.msra.mxu1 %v5757_v16  ;;  %v5817_v25 = vld [vmem:[#allocation100_spill] sm:$0xff]  ;;  %v5818_v16 = vld [vmem:[#allocation101_spill] sm:$0xff] }
 0x4d9   :  { %1877 = vmatpush.msra.mxu2 %v5758_v15  ;;  %1897 = vmatpush.msra.mxu3 %v5759_v45  ;;  %v5819_v15 = vld [vmem:[#allocation102_spill] sm:$0xff]  ;;  %v5820_v45 = vld [vmem:[#allocation103_spill] sm:$0xff] }
 0x4da   :  { %1902 = vmatpush.msrb.mxu0 %v5760_v27  ;;  %1922 = vmatpush.msrb.mxu1 %v5761_v11  ;;  %v5821_v27 = vld [vmem:[#allocation104_spill] sm:$0xff]  ;;  %v5822_v11 = vld [vmem:[#allocation105_spill] sm:$0xff] }
 0x4db   :  { %1942 = vmatpush.msrb.mxu2 %v5762_v8  ;;  %1962 = vmatpush.msrb.mxu3 %v5763_v14  ;;  %v5823_v8 = vld [vmem:[#allocation106_spill] sm:$0xff] }
 0x4dc   :  { %1903 = vmatpush.msrb.mxu0 %v5764_v31  ;;  %1923 = vmatpush.msrb.mxu1 %v5765_v32 }
 0x4dd   :  { %1943 = vmatpush.msrb.mxu2 %v5766_v34  ;;  %1963 = vmatpush.msrb.mxu3 %v5767_v35 }
 0x4de   :  { %1904 = vmatpush.msrb.mxu0 %v5768_v36  ;;  %1924 = vmatpush.msrb.mxu1 %v5769_v37 }
 0x4df   :  { %1944 = vmatpush.msrb.mxu2 %v5770_v39  ;;  %1964 = vmatpush.msrb.mxu3 %v5771_v41 }
 0x4e0   :  { %1905 = vmatpush.msrb.mxu0 %v5772_v50  ;;  %1925 = vmatpush.msrb.mxu1 %v5773_v56 }
 0x4e1   :  { %1945 = vmatpush.msrb.mxu2 %v5774_v0  ;;  %1965 = vmatpush.msrb.mxu3 %v5775_v4 }
 0x4e2   :  { %1906 = vmatpush.msrb.mxu0 %v5776_v58  ;;  %1926 = vmatpush.msrb.mxu1 %v5777_v54 }
 0x4e3   :  { %1946 = vmatpush.msrb.mxu2 %v5778_v53  ;;  %1966 = vmatpush.msrb.mxu3 %v5779_v52 }
 0x4e4   :  { %1907 = vmatpush.msrb.mxu0 %v5780_v60  ;;  %1927 = vmatpush.msrb.mxu1 %v5781_v33 }
 0x4e5   :  { %1947 = vmatpush.msrb.mxu2 %v5782_v49  ;;  %1967 = vmatpush.msrb.mxu3 %v5783_v61 }
 0x4e6   :  { %1908 = vmatpush.msrb.mxu0 %v5784_v63  ;;  %1928 = vmatpush.msrb.mxu1 %v5785_v48 }
 0x4e7   :  { %1948 = vmatpush.msrb.mxu2 %v5786_v57  ;;  %1968 = vmatpush.msrb.mxu3 %v5787_v44 }
 0x4e8   :  { %1909 = vmatpush.msrb.mxu0 %v5788_v1  ;;  %1929 = vmatpush.msrb.mxu1 %v5789_v47 }
 0x4e9   :  { %1949 = vmatpush.msrb.mxu2 %v5790_v43  ;;  %1969 = vmatpush.msrb.mxu3 %v5791_v38 }
 0x4ea   :  { %1910 = vmatpush.msrb.mxu0 %v5792_v59  ;;  %1930 = vmatpush.msrb.mxu1 %v5793_v51 }
 0x4eb   :  { %1950 = vmatpush.msrb.mxu2 %v5794_v55  ;;  %1970 = vmatpush.msrb.mxu3 %v5795_v46 }
 0x4ec   :  { %1911 = vmatpush.msrb.mxu0 %v5796_v40  ;;  %1931 = vmatpush.msrb.mxu1 %v5797_v3 }
 0x4ed   :  { %1951 = vmatpush.msrb.mxu2 %v5798_v5  ;;  %1971 = vmatpush.msrb.mxu3 %v5799_v6 }
 0x4ee   :  { %1912 = vmatpush.msrb.mxu0 %v5800_v22  ;;  %1932 = vmatpush.msrb.mxu1 %v5801_v7 }
 0x4ef   :  { %1952 = vmatpush.msrb.mxu2 %v5802_v10  ;;  %1972 = vmatpush.msrb.mxu3 %v5803_v12 }
 0x4f0   :  { %1913 = vmatpush.msrb.mxu0 %v5804_v9  ;;  %1933 = vmatpush.msrb.mxu1 %v5805_v13 }
 0x4f1   :  { %1953 = vmatpush.msrb.mxu2 %v5806_v30  ;;  %1973 = vmatpush.msrb.mxu3 %v5807_v21 }
 0x4f2   :  { %1914 = vmatpush.msrb.mxu0 %v5808_v23  ;;  %1934 = vmatpush.msrb.mxu1 %v5809_v19 }
 0x4f3   :  { %1954 = vmatpush.msrb.mxu2 %v5810_v17  ;;  %1974 = vmatpush.msrb.mxu3 %v5811_v24 }
 0x4f4   :  { %1915 = vmatpush.msrb.mxu0 %v5812_v18  ;;  %1935 = vmatpush.msrb.mxu1 %v5813_v26 }
 0x4f5   :  { %1955 = vmatpush.msrb.mxu2 %v5814_v28  ;;  %1975 = vmatpush.msrb.mxu3 %v5815_v20 }
 0x4f6   :  { %1916 = vmatpush.msrb.mxu0 %v5816_v29  ;;  %1936 = vmatpush.msrb.mxu1 %v5817_v25 }
 0x4f7   :  { %1956 = vmatpush.msrb.mxu2 %v5818_v16  ;;  %1976 = vmatpush.msrb.mxu3 %v5819_v15 }
 0x4f8   :  { %1917 = vmatpush.msrb.mxu0 %v5820_v45  ;;  %1937 = vmatpush.msrb.mxu1 %v5821_v27  ;;  %v2060_v45 = vld [vmem:[#allocation8 + $0x78] sm:$0xff]  ;;  %v2059_v27 = vld [vmem:[#allocation8 + $0x70] sm:$0xff] }
 0x4f9   :  { %1957 = vmatpush.msrb.mxu2 %v5822_v11  ;;  %1977 = vmatpush.msrb.mxu3 %v5823_v8  ;;  %v2058_v11 = vld [vmem:[#allocation8 + $0x68] sm:$0xff]  ;;  %v2057_v8 = vld [vmem:[#allocation8 + $0x60] sm:$0xff] }
 0x533   :  { %v1616_v14 = vpop.f32.mrf.mxu0  ;;  %v1636_v31 = vpop.f32.mrf.mxu1 }
 0x53a   :  { %v1676_v32 = vpop.f32.mrf.mxu3  ;;  %v1656_v50 = vpop.f32.mrf.mxu2 }
 0x53b   :  { %v1696_v34 = vpop.f32.mrf.mxu0  ;;  %v1716_v35 = vpop.f32.mrf.mxu1 }
 0x53c   :  { %v1697_v36 = vadd.f32 %v1696_v34, %v1616_v14  ;;  %v1717_v37 = vadd.f32 %v1716_v35, %v1636_v31  ;;  %v2056_v14 = vld [vmem:[#allocation8 + $0x58] sm:$0xff]  ;;  %v2055_v31 = vld [vmem:[#allocation8 + $0x50] sm:$0xff]  ;;  %v2054_v34 = vld [vmem:[#allocation8 + $0x48] sm:$0xff] }
 0x53d   :  { %v2053_v35 = vld [vmem:[#allocation8 + $0x40] sm:$0xff] }
 0x53e   :  { %v2159_v39 = vmul.f32 -1.442695, %v1697_v36  ;;  %v2160_v41 = vmul.f32 -1.442695, %v1717_v37  ;;  %v2052_v36 = vld [vmem:[#allocation8 + $0x38] sm:$0xff]  ;;  %v2051_v37 = vld [vmem:[#allocation8 + $0x30] sm:$0xff] }
 0x540   :  { %2294 = vpow2.f32 %v2159_v39 }
 0x541   :  { %2296 = vpow2.f32 %v2160_v41 }
 0x542   :  { %v1756_v56 = vpop.f32.mrf.mxu3  ;;  %v1736_v60 = vpop.f32.mrf.mxu2 }
 0x543   :  { %v1757_v0 = vadd.f32 %v1756_v56, %v1676_v32  ;;  %v1737_v63 = vadd.f32 %v1736_v60, %v1656_v50 }
 0x545   :  { %v2161_v4 = vmul.f32 -1.442695, %v1757_v0  ;;  %v2050_v0 = vld [vmem:[#allocation8 + $0x28] sm:$0xff] }
 0x546   :  { %v2295_v58 = vpop.eup %2294 }
 0x547   :  { %v2297_v54 = vpop.eup %2296  ;;  %v1762_v53 = vadd.f32 1.0, %v2295_v58  ;;  %2298 = vpow2.f32 %v2161_v4 }
 0x548   :  { %v1781_v52 = vadd.f32 1.0, %v2297_v54  ;;  %v2049_v54 = vld [vmem:[#allocation8 + $0x20] sm:$0xff] }
 0x549   :  { %2300 = vrcp.f32 %v1762_v53  ;;  %v1774_v43 = vand.u32 2147483648, %v1762_v53  ;;  %v1772_v51 = vand.u32 2147483647, %v1762_v53  ;;  %vm1768_vm1 = vweird.f32 %v1762_v53 }
 0x54a   :  { %2302 = vrcp.f32 %v1781_v52  ;;  %v1793_v38 = vand.u32 2147483648, %v1781_v52  ;;  %v1791_v46 = vand.u32 2147483647, %v1781_v52  ;;  %vm1787_vm2 = vweird.f32 %v1781_v52 }
 0x54b   :  { %v1775_v5 = vor.u32 1.1754944e-38, %v1774_v43  ;;  %vm1773_vm5 = vcmp.eq.f32.partialorder %v1772_v51, 8.507059e+37 }
 0x54c   :  { %v1794_v7 = vor.u32 1.1754944e-38, %v1793_v38  ;;  %vm1792_vm6 = vcmp.eq.f32.partialorder %v1791_v46, 8.507059e+37 }
 0x54d   :  { %v2299_v33 = vpop.eup %2298 }
 0x54e   :  { %v1801_v49 = vadd.f32 1.0, %v2299_v33 }
 0x54f   :  { %v2301_v61 = vpop.eup %2300 }
 0x550   :  { %v2303_v48 = vpop.eup %2302  ;;  %v1764_v57 = vmul.f32 %v2301_v61, %v1762_v53  ;;  %2304 = vrcp.f32 %v1801_v49  ;;  %vm1769_vm15 = vweird.f32 %v2301_v61  ;;  %v1813_v26 = vand.u32 2147483648, %v1801_v49  ;;  %v2048_v53 = vld [vmem:[#allocation8 + $0x18] sm:$0xff] }
 0x551   :  { %v1783_v44 = vmul.f32 %v2303_v48, %v1781_v52  ;;  %2306 = vtanh.f32 %v1737_v63  ;;  %vm1788_vm0 = vweird.f32 %v2303_v48  ;;  %vm1770_vm3 = vmor %vm1768_vm1, %vm1769_vm15  ;;  %vm1807_vm8 = vweird.f32 %v1801_v49  ;;  %v2047_v52 = vld [vmem:[#allocation8 + $0x10] sm:$0xff]  ;;  %v2045_v63 = vld [vmem:[#allocation8] sm:$0xff] }
 0x552   :  { %v1765_v1 = vsub.f32 1.0, %v1764_v57  ;;  %vm1789_vm4 = vmor %vm1787_vm2, %vm1788_vm0  ;;  %v1811_v28 = vand.u32 2147483647, %v1801_v49  ;;  %v1814_v29 = vor.u32 1.1754944e-38, %v1813_v26 }
 0x553   :  { %v1784_v47 = vsub.f32 1.0, %v1783_v44 }
 0x554   :  { %v1766_v59 = vmul.f32 %v2301_v61, %v1765_v1  ;;  %vm1812_vm10 = vcmp.eq.f32.partialorder %v1811_v28, 8.507059e+37 }
 0x555   :  { %v1785_v55 = vmul.f32 %v2303_v48, %v1784_v47 }
 0x556   :  { %v2305_v40 = vpop.eup %2304  ;;  %v1767_v3 = vadd.f32 %v2301_v61, %v1766_v59 }
 0x557   :  { %v1786_v6 = vadd.f32 %v2303_v48, %v1785_v55  ;;  %v1803_v22 = vmul.f32 %v2305_v40, %v1801_v49  ;;  %v2307_v12 = vpop.eup %2306  ;;  %vm1808_vm7 = vweird.f32 %v2305_v40  ;;  %v2046_v49 = vld [vmem:[#allocation8 + $0x8] sm:$0xff] }
 0x558   :  { %v1771_v10 = vsel %vm1770_vm3, %v2301_v61, %v1767_v3  ;;  %vm1809_vm9 = vmor %vm1807_vm8, %vm1808_vm7 }
 0x559   :  { %v1776_v9 = vsel %vm1773_vm5, %v1775_v5, %v1771_v10  ;;  %v1790_v13 = vsel %vm1789_vm4, %v2303_v48, %v1786_v6  ;;  %v1804_v30 = vsub.f32 1.0, %v1803_v22 }
 0x55a   :  { %v1795_v21 = vsel %vm1792_vm6, %v1794_v7, %v1790_v13  ;;  %v1818_v23 = vmul.f32 %v2307_v12, %v1776_v9 }
 0x55b   :  { %v1817_v19 = vmul.f32 %v1795_v21, %v4519_v62  ;;  %v1805_v17 = vmul.f32 %v2305_v40, %v1804_v30  ;;  %v193_v62 = vpop.permute.xlu2 %192 }
 0x55c   :  { %vm194_vm11 = vcmp.eq.s32.totalorder %v193_v62, %v3211_v42 }
 0x55d   :  { %v4656_v24 = vadd.f32 %v1818_v23, %v1817_v19  ;;  %v1806_v18 = vadd.f32 %v2305_v40, %v1805_v17 }
 0x55f   :  { %2308 = vtanh.f32 %v4656_v24  ;;  %v1810_v20 = vsel %vm1809_vm9, %v2305_v40, %v1806_v18 }
 0x560   :  { %v1815_v16 = vsel %vm1812_vm10, %v1814_v29, %v1810_v20 }
 0x565   :  { %v2309_v25 = vpop.eup %2308 }
 0x566   :  { %v1821_v15 = vmul.f32 %v2309_v25, %v1815_v16 }
 0x568   :  { %1838 = vmatmul.f32.vlgmr.msra.gmra.mxu0 %v1821_v15  ;;  %1858 = vmatmul.f32.vlgmr.msra.gmra.mxu1 %v1821_v15 }
 0x569   :  { %1878 = vmatmul.f32.vlgmr.msra.gmra.mxu2 %v1821_v15  ;;  %1898 = vmatmul.f32.vlgmr.msra.gmra.mxu3 %v1821_v15 }
 0x56a   :  { %2065 = vmatpush.msra.mxu0 %v2060_v45 }
 0x56c   :  { %2066 = vmatpush.msra.mxu0 %v2059_v27 }
 0x56e   :  { %2067 = vmatpush.msra.mxu0 %v2058_v11 }
 0x570   :  { %2162 = vmatmul.msk.f32.vlgmr.msrb.gmra.mxu0 %vm194_vm11, %v5270_v2  ;;  %2163 = vmatmul.msk.f32.vlgmr.msrb.gmra.mxu1 %vm194_vm11, %v5270_v2 }
 0x571   :  { %2164 = vmatmul.msk.f32.vlgmr.msrb.gmra.mxu2 %vm194_vm11, %v5270_v2  ;;  %2165 = vmatmul.msk.f32.vlgmr.msrb.gmra.mxu3 %vm194_vm11, %v5270_v2 }
 0x572   :  { %2068 = vmatpush.msra.mxu0 %v2057_v8 }
 0x574   :  { %2069 = vmatpush.msra.mxu0 %v2056_v14 }
 0x576   :  { %2070 = vmatpush.msra.mxu0 %v2055_v31 }
 0x578   :  { %2071 = vmatpush.msra.mxu0 %v2054_v34 }
 0x57a   :  { %2072 = vmatpush.msra.mxu0 %v2053_v35 }
 0x57c   :  { %2073 = vmatpush.msra.mxu0 %v2052_v36 }
 0x57e   :  { %2074 = vmatpush.msra.mxu0 %v2051_v37 }
 0x580   :  { %2075 = vmatpush.msra.mxu0 %v2050_v0 }
 0x582   :  { %2076 = vmatpush.msra.mxu0 %v2049_v54 }
 0x584   :  { %2077 = vmatpush.msra.mxu0 %v2048_v53 }
 0x586   :  { %2078 = vmatpush.msra.mxu0 %v2047_v52 }
 0x588   :  { %2079 = vmatpush.msra.mxu0 %v2046_v49 }
 0x58a   :  { %2080 = vmatpush.msra.mxu0 %v2045_v63 }
 0x5e5   :  { %v1839_v42 = vpop.f32.mrf.mxu0  ;;  %v1859_v32 = vpop.f32.mrf.mxu1 }
 0x5ec   :  { %v1899_v2 = vpop.f32.mrf.mxu3  ;;  %v1879_v60 = vpop.f32.mrf.mxu2 }
 0x5ed   :  { %v1919_v39 = vpop.f32.mrf.mxu0  ;;  %v1939_v41 = vpop.f32.mrf.mxu1 }
 0x5ee   :  { %v1920_v50 = vadd.f32 %v1919_v39, %v1839_v42  ;;  %v1940_v56 = vadd.f32 %v1939_v41, %v1859_v32 }
 0x5f0   :  { %v2166_v4 = vmul.f32 -1.442695, %v1920_v50  ;;  %v2167_v58 = vmul.f32 -1.442695, %v1940_v56 }
 0x5f2   :  { %2310 = vpow2.f32 %v2166_v4 }
 0x5f3   :  { %2312 = vpow2.f32 %v2167_v58 }
 0x5f4   :  { %v1979_v33 = vpop.f32.mrf.mxu3  ;;  %v1959_v43 = vpop.f32.mrf.mxu2 }
 0x5f5   :  { %v1980_v61 = vadd.f32 %v1979_v33, %v1899_v2  ;;  %v1960_v55 = vadd.f32 %v1959_v43, %v1879_v60 }
 0x5f7   :  { %v2168_v48 = vmul.f32 -1.442695, %v1980_v61 }
 0x5f8   :  { %v2311_v57 = vpop.eup %2310 }
 0x5f9   :  { %v2313_v44 = vpop.eup %2312  ;;  %v1985_v1 = vadd.f32 1.0, %v2311_v57  ;;  %2314 = vpow2.f32 %v2168_v48 }
 0x5fa   :  { %v2004_v47 = vadd.f32 1.0, %v2313_v44 }
 0x5fb   :  { %2316 = vrcp.f32 %v1985_v1  ;;  %v1997_v22 = vand.u32 2147483648, %v1985_v1  ;;  %v1995_v12 = vand.u32 2147483647, %v1985_v1  ;;  %vm1991_vm14 = vweird.f32 %v1985_v1 }
 0x5fc   :  { %2318 = vrcp.f32 %v2004_v47  ;;  %v2016_v7 = vand.u32 2147483648, %v2004_v47  ;;  %v2014_v13 = vand.u32 2147483647, %v2004_v47  ;;  %vm2010_vm15 = vweird.f32 %v2004_v47 }
 0x5fd   :  { %v1998_v23 = vor.u32 1.1754944e-38, %v1997_v22  ;;  %vm1996_vm2 = vcmp.eq.f32.partialorder %v1995_v12, 8.507059e+37 }
 0x5fe   :  { %v2017_v18 = vor.u32 1.1754944e-38, %v2016_v7  ;;  %vm2015_vm3 = vcmp.eq.f32.partialorder %v2014_v13, 8.507059e+37 }
 0x5ff   :  { %v2315_v38 = vpop.eup %2314 }
 0x600   :  { %v2024_v59 = vadd.f32 1.0, %v2315_v38 }
 0x601   :  { %v2317_v51 = vpop.eup %2316 }
 0x602   :  { %v2319_v46 = vpop.eup %2318  ;;  %v1987_v40 = vmul.f32 %v2317_v51, %v1985_v1  ;;  %2320 = vrcp.f32 %v2024_v59  ;;  %vm1992_vm12 = vweird.f32 %v2317_v51  ;;  %v2036_v8 = vand.u32 2147483648, %v2024_v59 }
 0x603   :  { %v2006_v3 = vmul.f32 %v2319_v46, %v2004_v47  ;;  %2322 = vtanh.f32 %v1960_v55  ;;  %vm2011_vm13 = vweird.f32 %v2319_v46  ;;  %vm1993_vm0 = vmor %vm1991_vm14, %vm1992_vm12  ;;  %vm2030_vm5 = vweird.f32 %v2024_v59 }
 0x604   :  { %v1988_v5 = vsub.f32 1.0, %v1987_v40  ;;  %vm2012_vm1 = vmor %vm2010_vm15, %vm2011_vm13  ;;  %v2034_v14 = vand.u32 2147483647, %v2024_v59  ;;  %v2037_v42 = vor.u32 1.1754944e-38, %v2036_v8 }
 0x605   :  { %v2007_v6 = vsub.f32 1.0, %v2006_v3 }
 0x606   :  { %v1989_v10 = vmul.f32 %v2317_v51, %v1988_v5  ;;  %vm2035_vm7 = vcmp.eq.f32.partialorder %v2034_v14, 8.507059e+37 }
 0x607   :  { %v2008_v9 = vmul.f32 %v2319_v46, %v2007_v6 }
 0x608   :  { %v2321_v30 = vpop.eup %2320  ;;  %v1990_v21 = vadd.f32 %v2317_v51, %v1989_v10 }
 0x609   :  { %v2009_v19 = vadd.f32 %v2319_v46, %v2008_v9  ;;  %v2026_v17 = vmul.f32 %v2321_v30, %v2024_v59  ;;  %v2323_v28 = vpop.eup %2322  ;;  %vm2031_vm4 = vweird.f32 %v2321_v30 }
 0x60a   :  { %v1994_v26 = vsel %vm1993_vm0, %v2317_v51, %v1990_v21  ;;  %vm2032_vm6 = vmor %vm2030_vm5, %vm2031_vm4 }
 0x60b   :  { %v1999_v20 = vsel %vm1996_vm2, %v1998_v23, %v1994_v26  ;;  %v2013_v29 = vsel %vm2012_vm1, %v2319_v46, %v2009_v19  ;;  %v2027_v25 = vsub.f32 1.0, %v2026_v17 }
 0x60c   :  { %v2018_v16 = vsel %vm2015_vm3, %v2017_v18, %v2013_v29  ;;  %v2041_v15 = vmul.f32 %v2323_v28, %v1999_v20 }
 0x60d   :  { %v2040_v62 = vmul.f32 %v2018_v16, %v4656_v24  ;;  %v2028_v45 = vmul.f32 %v2321_v30, %v2027_v25  ;;  %v2197_v24 = vld [vmem:[%s4675_s4] ss:$0 sm:$0xff] }
 0x60f   :  { %v2042_v27 = vadd.f32 %v2041_v15, %v2040_v62  ;;  %v2029_v11 = vadd.f32 %v2321_v30, %v2028_v45 }
 0x611   :  { %2324 = vtanh.f32 %v2042_v27  ;;  %v2033_v31 = vsel %vm2032_vm6, %v2321_v30, %v2029_v11 }
 0x612   :  { %v2038_v34 = vsel %vm2035_vm7, %v2037_v42, %v2033_v31 }
 0x617   :  { %v2325_v32 = vpop.eup %2324 }
 0x618   :  { %v2044_v35 = vmul.f32 %v2325_v32, %v2038_v34 }
 0x61a   :  { %2081 = vmatmul.f32.vlgmr.msra.gmra.mxu0 %v2044_v35 }
 0x697   :  { %v2082_v36 = vpop.f32.mrf.mxu0 }
 0x698   :  { %v2083_v2 = vadd.f32 %v2197_v24, %v2082_v36 }
 0x69a   :  { %2085 = vst [vmem:[#allocation10] sm:$0x3] %v2083_v2 }
 0x69b   :  { %2096 = dma.vmem_to_hbm [thread:$0]  %s2092_s16, 32, %s2094_s19, [#allocation4]  }
 0x69c   :  { %2710 = dma.done.wait [#allocation4], 32  }
 0x69d   :  { %2711 = vsyncadd [#allocation4], 4294967264 }
 0x69e   :  { %2101 = vsyncpa [#allocation3], 1 }
 0x69f   :  { %2102 = vsyncpa [#allocation6], 1 }
 0x6a0   :  { %2103 = vsyncpa [#allocation9], 1 }
 0x6a1   :  { %2104 = vsyncpa [#allocation4], 1 }

</bundles_post_ra>
